<compile_context>
chip_gen: v7x
topology: tpu7x:2x2x1
jax: 0.10.0
libtpu: 0.0.40
codegen_flags: <defaults>
</compile_context>

<pallas_src>
import functools
from math import pi

import jax
import jax.numpy as jnp
from jax import lax
from jax.experimental import pallas as pl
from jax.experimental.pallas import tpu as pltpu


def _sample_loop_kernel(cur0_ref, sig_ref, wx_ref, wsig_ref, bias_ref, out_ref,
                        *, num_steps, c):
    """Full ARVSampler.sample_loop recurrence (v-objective) for one lane tile.

    cur0_ref : (C, L)      initial `current`, aliased to out_ref's HBM buffer
    sig_ref  : (S+1, L)    all sigma rows for this lane tile
    wx_ref   : (C, C)      net weight columns acting on `current`
    wsig_ref : (C, 1)      net weight column acting on the sigma channel
    bias_ref : (C, 1)      net bias
    out_ref  : (C, L)      running state / final output
    """
    wx = wx_ref[...]
    wsig = wsig_ref[...]
    bias = bias_ref[...]
    half_pi = jnp.float32(pi / 2)

    out_ref[...] = cur0_ref[...]

    def body(i, carry):
        cur = out_ref[...]                               # (C, L)
        sig_i = sig_ref[pl.ds(i, 1), :]                  # (1, L)
        sig_n = sig_ref[pl.ds(i + 1, 1), :]              # (1, L)
        a_i = jnp.cos(sig_i * half_pi)
        b_i = jnp.sin(sig_i * half_pi)
        a_n = jnp.cos(sig_n * half_pi)
        b_n = jnp.sin(sig_n * half_pi)
        # net(cat([current, sigma], channel)) as split-weight VPU MACs
        v = wsig * sig_i + bias                          # (C,1)*(1,L)+(C,1) -> (C,L)
        for k in range(c):                               # C is tiny & static
            v = v + wx[:, k:k + 1] * cur[k:k + 1, :]
        x_pred = a_i * cur - b_i * v
        n_pred = b_i * cur + a_i * v
        out_ref[...] = a_n * x_pred + b_n * n_pred
        return carry

    lax.fori_loop(0, num_steps, body, 0, unroll=num_steps <= 16)


def _pick_lane_tile(l, s1, c):
    """Largest lane tile (multiple of 128 dividing L) whose resident blocks fit
    comfortably under the scoped-VMEM defaults of every TPU generation
    (including v7x's 64 MiB physical VMEM)."""
    if l % 128 != 0:
        return l  # block must then span the full lane extent
    budget = 12 * 1024 * 1024                       # bytes for streamed blocks
    per_col = 4 * (2 * s1 + 4 * c)                  # sigma (dbl-buf) + state in/out
    cap = max(128, min(l, budget // max(per_col, 1)))
    cap = (cap // 128) * 128
    tile = cap
    while tile > 128 and l % tile != 0:
        tile -= 128
    return tile if l % tile == 0 else l


@functools.lru_cache(maxsize=None)
def _build_sample_loop_call(c, l, s1, tile_l):
    num_steps = s1 - 1
    n_tiles = l // tile_l
    kernel = functools.partial(_sample_loop_kernel, num_steps=num_steps, c=c)
    return pl.pallas_call(
        kernel,
        grid=(n_tiles,),
        in_specs=[
            pl.BlockSpec((c, tile_l), lambda j: (0, j)),    # current (aliased)
            pl.BlockSpec((s1, tile_l), lambda j: (0, j)),   # all sigmas for tile
            pl.BlockSpec((c, c), lambda j: (0, 0)),         # W[:, :C]
            pl.BlockSpec((c, 1), lambda j: (0, 0)),         # W[:, C:]
            pl.BlockSpec((c, 1), lambda j: (0, 0)),         # bias
        ],
        out_specs=pl.BlockSpec((c, tile_l), lambda j: (0, j)),
        out_shape=jax.ShapeDtypeStruct((c, l), jnp.float32),
        input_output_aliases={0: 0},
        compiler_params=pltpu.CompilerParams(dimension_semantics=("parallel",)),
    )


@jax.jit
def _sample_loop_jit(current, sigmas, w, bias):
    """current: (B, C, T); sigmas: (S+1, B, 1, T); w: (C, C+1); bias: (C, 1)."""
    b, c, t = current.shape
    s1 = sigmas.shape[0]
    l = b * t
    # lane-dense layout: channels on sublanes, (B*T) on lanes
    cur2d = jnp.transpose(current, (1, 0, 2)).reshape(c, l)
    sig2d = sigmas.reshape(s1, l)
    wx = w[:, :c]
    wsig = w[:, c:c + 1]
    tile_l = _pick_lane_tile(l, s1, c)
    fn = _build_sample_loop_call(c, l, s1, tile_l)
    out2d = fn(cur2d, sig2d, wx, wsig, bias)
    return jnp.transpose(out2d.reshape(c, b, t), (1, 0, 2))


class ARVSampler:
    def __init__(self, in_channels, length, num_splits, key):
        assert length % num_splits == 0, "length must be divisible by num_splits"
        self.length = length
        self.in_channels = in_channels
        self.num_splits = num_splits
        self.split_length = length // num_splits
        kw, kb = jax.random.split(key)
        # deterministic synthetic net: Conv1d(in_channels+1, in_channels, k=1)
        fan_in = in_channels + 1
        self.w = (jax.random.normal(kw, (in_channels, in_channels + 1), jnp.float32)
                  / jnp.sqrt(jnp.float32(fan_in)))
        self.b = jax.random.normal(kb, (in_channels, 1), jnp.float32) * 0.01

    def get_alpha_beta(self, sigmas):
        angle = sigmas * (pi / 2)
        return jnp.cos(angle), jnp.sin(angle)

    def get_sigmas_ladder(self, num_items, num_steps_per_split):
        b, n, l, i = num_items, self.num_splits, self.split_length, num_steps_per_split
        n_half = n // 2
        sig = jnp.linspace(1.0, 0.0, i * n_half)
        # einops: repeat(sig, '(n i) -> i b 1 (n l)', b=b, l=l, n=n_half)
        s = sig.reshape(n_half, i).T  # (i, n_half)
        sig = jnp.broadcast_to(
            s[:, None, None, :, None], (i, b, 1, n_half, l)
        ).reshape(i, b, 1, n_half * l)
        sig = jnp.flip(sig, axis=-1)
        sig = jnp.pad(sig, ((0, 1), (0, 0), (0, 0), (0, 0)))   # F.pad [..., 0, 1]
        sig = sig.at[-1, :, :, l:].set(sig[0, :, :, :-l])
        return jnp.concatenate([jnp.zeros_like(sig), sig], axis=-1)

    def sample_loop(self, current, sigmas):
        return _sample_loop_jit(current, sigmas, self.w, self.b)

    def sample_start(self, key, num_items, num_steps):
        b, c, t = num_items, self.in_channels, self.length
        sigmas = jnp.linspace(1.0, 0.0, num_steps + 1)
        sigmas = jnp.broadcast_to(sigmas[:, None, None, None], (num_steps + 1, b, 1, t))
        noise = jax.random.normal(key, (b, c, t), jnp.float32) * sigmas[0]
        return self.sample_loop(noise, sigmas)

    def forward(self, key, num_items, num_chunks, num_steps):
        assert num_chunks >= self.num_splits, f"required at least {self.num_splits} chunks"
        key, k_start, k_noise = jax.random.split(key, 3)
        start = self.sample_start(k_start, num_items, num_steps)
        if num_chunks == self.num_splits:
            return start
        b, n = num_items, self.num_splits
        assert num_steps >= n, "num_steps must be greater than num_splits"
        sigmas = self.get_sigmas_ladder(b, num_steps // n)
        alphas, betas = self.get_alpha_beta(sigmas)
        start_noise = alphas[0] * start + betas[0] * jax.random.normal(k_noise, start.shape)
        chunks = list(jnp.split(start_noise, n, axis=-1))
        for _ in range(num_chunks):  # num_shifts = num_chunks
            cur = jnp.concatenate(chunks[-n:], axis=-1)
            updated = self.sample_loop(cur, sigmas)
            chunks[-n:] = list(jnp.split(updated, n, axis=-1))
            key, kc = jax.random.split(key)
            chunks.append(jax.random.normal(
                kc, (b, self.in_channels, self.split_length), jnp.float32))
        return jnp.concatenate(chunks[:num_chunks], axis=-1)


def _sample_loop_ref(current, sigmas, w, bias):
    """Pure-JAX reference of ARVSampler.sample_loop with the synthetic net."""
    alphas = jnp.cos(sigmas * (pi / 2))
    betas = jnp.sin(sigmas * (pi / 2))
    num_steps = sigmas.shape[0] - 1
    for i in range(num_steps):
        ch = jnp.concatenate([current, sigmas[i]], axis=1)            # (b, c+1, t)
        v = jnp.einsum("oc,bct->bot", w, ch) + bias[None]             # (b, c, t)
        x_pred = alphas[i] * current - betas[i] * v
        n_pred = betas[i] * current + alphas[i] * v
        current = alphas[i + 1] * x_pred + betas[i + 1] * n_pred
    return current


if __name__ == "__main__":
    key = jax.random.PRNGKey(0)
    k_params, k_fwd, k_test = jax.random.split(key, 3)

    in_channels, length, num_splits = 4, 16, 4
    num_items, num_chunks, num_steps = 2, 6, 8

    sampler = ARVSampler(in_channels, length, num_splits, k_params)

    # sanity: Pallas sample_loop vs pure-JAX reference
    b, c, t = num_items, in_channels, length
    cur0 = jax.random.normal(k_test, (b, c, t), jnp.float32)
    sig = jnp.broadcast_to(
        jnp.linspace(1.0, 0.0, num_steps + 1)[:, None, None, None],
        (num_steps + 1, b, 1, t))
    got = jax.block_until_ready(sampler.sample_loop(cur0, sig))
    want = _sample_loop_ref(cur0, sig, sampler.w, sampler.b)
    assert jnp.allclose(got, want, atol=1e-4, rtol=1e-4), "sample_loop mismatch"

    # full forward
    out = sampler.forward(k_fwd, num_items=num_items,
                          num_chunks=num_chunks, num_steps=num_steps)
    out = jax.block_until_ready(out)
    assert out.shape == (num_items, in_channels, num_chunks * sampler.split_length)
    print("KERNEL_OK")
</pallas_src>

<mosaic_0001>
module attributes {stable_mosaic.version = 11 : i64} {
  func.func @_sample_loop_kernel(%arg0: i32, %arg1: memref<4x32xf32, #tpu.memory_space<vmem>>, %arg2: memref<9x32xf32, #tpu.memory_space<vmem>>, %arg3: memref<4x4xf32, #tpu.memory_space<vmem>>, %arg4: memref<4x1xf32, #tpu.memory_space<vmem>>, %arg5: memref<4x1xf32, #tpu.memory_space<vmem>>, %arg6: memref<4x32xf32, #tpu.memory_space<vmem>>) attributes {dimension_semantics = [#tpu.dimension_semantics<parallel>], iteration_bounds = array<i64: 1>, scalar_prefetch = 0 : i64, scratch_operands = 0 : i64, tpu.core_type = #tpu.core_type<tc>, window_params = [{transform_indices = @transform_0, window_bounds = array<i64: 4, 32>}, {transform_indices = @transform_1, window_bounds = array<i64: 9, 32>}, {pipeline_mode = #tpu.pipeline_mode<synchronous>, transform_indices = @transform_2, window_bounds = array<i64: 4, 4>}, {pipeline_mode = #tpu.pipeline_mode<synchronous>, transform_indices = @transform_3, window_bounds = array<i64: 4, 1>}, {pipeline_mode = #tpu.pipeline_mode<synchronous>, transform_indices = @transform_4, window_bounds = array<i64: 4, 1>}, {transform_indices = @transform_5, window_bounds = array<i64: 4, 32>}]} {
    %c0 = arith.constant 0 : index
    %c0_0 = arith.constant 0 : index
    %0 = vector.load %arg3[%c0, %c0_0] : memref<4x4xf32, #tpu.memory_space<vmem>>, vector<4x4xf32>
    %c0_1 = arith.constant 0 : index
    %c0_2 = arith.constant 0 : index
    %1 = vector.load %arg4[%c0_1, %c0_2] : memref<4x1xf32, #tpu.memory_space<vmem>>, vector<4x1xf32>
    %c0_3 = arith.constant 0 : index
    %c0_4 = arith.constant 0 : index
    %2 = vector.load %arg5[%c0_3, %c0_4] : memref<4x1xf32, #tpu.memory_space<vmem>>, vector<4x1xf32>
    %c0_5 = arith.constant 0 : index
    %c0_6 = arith.constant 0 : index
    %3 = vector.load %arg1[%c0_5, %c0_6] : memref<4x32xf32, #tpu.memory_space<vmem>>, vector<4x32xf32>
    %c0_7 = arith.constant 0 : index
    %c0_8 = arith.constant 0 : index
    %4 = vector.load %arg6[%c0_7, %c0_8] : memref<4x32xf32, #tpu.memory_space<vmem>>, vector<4x32xf32>
    tpu.vector_store %arg6[%c0_7, %c0_8], %3 {strides = array<i32>} : memref<4x32xf32, #tpu.memory_space<vmem>>, vector<4x32xf32>,
    %cst = arith.constant 1.57079637 : f32
    %c0_i32 = arith.constant 0 : i32
    %c0_9 = arith.constant 0 : index
    %c0_10 = arith.constant 0 : index
    %5 = vector.load %arg6[%c0_9, %c0_10] : memref<4x32xf32, #tpu.memory_space<vmem>>, vector<4x32xf32>
    %6 = arith.index_cast %c0_i32 : i32 to index
    %c0_11 = arith.constant 0 : index
    %7 = vector.load %arg2[%6, %c0_11] : memref<9x32xf32, #tpu.memory_space<vmem>>, vector<1x32xf32>
    %c1_i32 = arith.constant 1 : i32
    %8 = arith.addi %c0_i32, %c1_i32 : i32
    %9 = arith.index_cast %8 : i32 to index
    %c0_12 = arith.constant 0 : index
    %10 = vector.load %arg2[%9, %c0_12] : memref<9x32xf32, #tpu.memory_space<vmem>>, vector<1x32xf32>
    %11 = vector.broadcast %cst : f32 to vector<1x32xf32>
    %12 = arith.mulf %7, %11 : vector<1x32xf32>
    %13 = math.cos %12 : vector<1x32xf32>
    %14 = vector.broadcast %cst : f32 to vector<1x32xf32>
    %15 = arith.mulf %7, %14 : vector<1x32xf32>
    %16 = math.sin %15 : vector<1x32xf32>
    %17 = vector.broadcast %cst : f32 to vector<1x32xf32>
    %18 = arith.mulf %10, %17 : vector<1x32xf32>
    %19 = math.cos %18 : vector<1x32xf32>
    %20 = vector.broadcast %cst : f32 to vector<1x32xf32>
    %21 = arith.mulf %10, %20 : vector<1x32xf32>
    %22 = math.sin %21 : vector<1x32xf32>
    %23 = vector.broadcast %1 : vector<4x1xf32> to vector<4x32xf32>
    %24 = vector.broadcast %7 : vector<1x32xf32> to vector<4x32xf32>
    %25 = arith.mulf %23, %24 : vector<4x32xf32>
    %26 = vector.broadcast %2 : vector<4x1xf32> to vector<4x32xf32>
    %27 = arith.addf %25, %26 : vector<4x32xf32>
    %28 = vector.extract_strided_slice %0 {offsets = [0, 0], sizes = [4, 1], strides = [1, 1]} : vector<4x4xf32> to vector<4x1xf32>
    %29 = vector.extract_strided_slice %5 {offsets = [0, 0], sizes = [1, 32], strides = [1, 1]} : vector<4x32xf32> to vector<1x32xf32>
    %30 = vector.broadcast %28 : vector<4x1xf32> to vector<4x32xf32>
    %31 = vector.broadcast %29 : vector<1x32xf32> to vector<4x32xf32>
    %32 = arith.mulf %30, %31 : vector<4x32xf32>
    %33 = arith.addf %27, %32 : vector<4x32xf32>
    %34 = vector.extract_strided_slice %0 {offsets = [0, 1], sizes = [4, 1], strides = [1, 1]} : vector<4x4xf32> to vector<4x1xf32>
    %35 = vector.extract_strided_slice %5 {offsets = [1, 0], sizes = [1, 32], strides = [1, 1]} : vector<4x32xf32> to vector<1x32xf32>
    %36 = vector.broadcast %34 : vector<4x1xf32> to vector<4x32xf32>
    %37 = vector.broadcast %35 : vector<1x32xf32> to vector<4x32xf32>
    %38 = arith.mulf %36, %37 : vector<4x32xf32>
    %39 = arith.addf %33, %38 : vector<4x32xf32>
    %40 = vector.extract_strided_slice %0 {offsets = [0, 2], sizes = [4, 1], strides = [1, 1]} : vector<4x4xf32> to vector<4x1xf32>
    %41 = vector.extract_strided_slice %5 {offsets = [2, 0], sizes = [1, 32], strides = [1, 1]} : vector<4x32xf32> to vector<1x32xf32>
    %42 = vector.broadcast %40 : vector<4x1xf32> to vector<4x32xf32>
    %43 = vector.broadcast %41 : vector<1x32xf32> to vector<4x32xf32>
    %44 = arith.mulf %42, %43 : vector<4x32xf32>
    %45 = arith.addf %39, %44 : vector<4x32xf32>
    %46 = vector.extract_strided_slice %0 {offsets = [0, 3], sizes = [4, 1], strides = [1, 1]} : vector<4x4xf32> to vector<4x1xf32>
    %47 = vector.extract_strided_slice %5 {offsets = [3, 0], sizes = [1, 32], strides = [1, 1]} : vector<4x32xf32> to vector<1x32xf32>
    %48 = vector.broadcast %46 : vector<4x1xf32> to vector<4x32xf32>
    %49 = vector.broadcast %47 : vector<1x32xf32> to vector<4x32xf32>
    %50 = arith.mulf %48, %49 : vector<4x32xf32>
    %51 = arith.addf %45, %50 : vector<4x32xf32>
    %52 = vector.broadcast %13 : vector<1x32xf32> to vector<4x32xf32>
    %53 = arith.mulf %52, %5 : vector<4x32xf32>
    %54 = vector.broadcast %16 : vector<1x32xf32> to vector<4x32xf32>
    %55 = arith.mulf %54, %51 : vector<4x32xf32>
    %56 = arith.subf %53, %55 : vector<4x32xf32>
    %57 = vector.broadcast %16 : vector<1x32xf32> to vector<4x32xf32>
    %58 = arith.mulf %57, %5 : vector<4x32xf32>
    %59 = vector.broadcast %13 : vector<1x32xf32> to vector<4x32xf32>
    %60 = arith.mulf %59, %51 : vector<4x32xf32>
    %61 = arith.addf %58, %60 : vector<4x32xf32>
    %62 = vector.broadcast %19 : vector<1x32xf32> to vector<4x32xf32>
    %63 = arith.mulf %62, %56 : vector<4x32xf32>
    %64 = vector.broadcast %22 : vector<1x32xf32> to vector<4x32xf32>
    %65 = arith.mulf %64, %61 : vector<4x32xf32>
    %66 = arith.addf %63, %65 : vector<4x32xf32>
    %c0_13 = arith.constant 0 : index
    %c0_14 = arith.constant 0 : index
    %67 = vector.load %arg6[%c0_13, %c0_14] : memref<4x32xf32, #tpu.memory_space<vmem>>, vector<4x32xf32>
    tpu.vector_store %arg6[%c0_13, %c0_14], %66 {strides = array<i32>} : memref<4x32xf32, #tpu.memory_space<vmem>>, vector<4x32xf32>,
    %c1_i32_15 = arith.constant 1 : i32
    %c0_16 = arith.constant 0 : index
    %c0_17 = arith.constant 0 : index
    %68 = vector.load %arg6[%c0_16, %c0_17] : memref<4x32xf32, #tpu.memory_space<vmem>>, vector<4x32xf32>
    %69 = arith.index_cast %c1_i32_15 : i32 to index
    %c0_18 = arith.constant 0 : index
    %70 = vector.load %arg2[%69, %c0_18] : memref<9x32xf32, #tpu.memory_space<vmem>>, vector<1x32xf32>
    %c1_i32_19 = arith.constant 1 : i32
    %71 = arith.addi %c1_i32_15, %c1_i32_19 : i32
    %72 = arith.index_cast %71 : i32 to index
    %c0_20 = arith.constant 0 : index
    %73 = vector.load %arg2[%72, %c0_20] : memref<9x32xf32, #tpu.memory_space<vmem>>, vector<1x32xf32>
    %74 = vector.broadcast %cst : f32 to vector<1x32xf32>
    %75 = arith.mulf %70, %74 : vector<1x32xf32>
    %76 = math.cos %75 : vector<1x32xf32>
    %77 = vector.broadcast %cst : f32 to vector<1x32xf32>
    %78 = arith.mulf %70, %77 : vector<1x32xf32>
    %79 = math.sin %78 : vector<1x32xf32>
    %80 = vector.broadcast %cst : f32 to vector<1x32xf32>
    %81 = arith.mulf %73, %80 : vector<1x32xf32>
    %82 = math.cos %81 : vector<1x32xf32>
    %83 = vector.broadcast %cst : f32 to vector<1x32xf32>
    %84 = arith.mulf %73, %83 : vector<1x32xf32>
    %85 = math.sin %84 : vector<1x32xf32>
    %86 = vector.broadcast %1 : vector<4x1xf32> to vector<4x32xf32>
    %87 = vector.broadcast %70 : vector<1x32xf32> to vector<4x32xf32>
    %88 = arith.mulf %86, %87 : vector<4x32xf32>
    %89 = vector.broadcast %2 : vector<4x1xf32> to vector<4x32xf32>
    %90 = arith.addf %88, %89 : vector<4x32xf32>
    %91 = vector.extract_strided_slice %0 {offsets = [0, 0], sizes = [4, 1], strides = [1, 1]} : vector<4x4xf32> to vector<4x1xf32>
    %92 = vector.extract_strided_slice %68 {offsets = [0, 0], sizes = [1, 32], strides = [1, 1]} : vector<4x32xf32> to vector<1x32xf32>
    %93 = vector.broadcast %91 : vector<4x1xf32> to vector<4x32xf32>
    %94 = vector.broadcast %92 : vector<1x32xf32> to vector<4x32xf32>
    %95 = arith.mulf %93, %94 : vector<4x32xf32>
    %96 = arith.addf %90, %95 : vector<4x32xf32>
    %97 = vector.extract_strided_slice %0 {offsets = [0, 1], sizes = [4, 1], strides = [1, 1]} : vector<4x4xf32> to vector<4x1xf32>
    %98 = vector.extract_strided_slice %68 {offsets = [1, 0], sizes = [1, 32], strides = [1, 1]} : vector<4x32xf32> to vector<1x32xf32>
    %99 = vector.broadcast %97 : vector<4x1xf32> to vector<4x32xf32>
    %100 = vector.broadcast %98 : vector<1x32xf32> to vector<4x32xf32>
    %101 = arith.mulf %99, %100 : vector<4x32xf32>
    %102 = arith.addf %96, %101 : vector<4x32xf32>
    %103 = vector.extract_strided_slice %0 {offsets = [0, 2], sizes = [4, 1], strides = [1, 1]} : vector<4x4xf32> to vector<4x1xf32>
    %104 = vector.extract_strided_slice %68 {offsets = [2, 0], sizes = [1, 32], strides = [1, 1]} : vector<4x32xf32> to vector<1x32xf32>
    %105 = vector.broadcast %103 : vector<4x1xf32> to vector<4x32xf32>
    %106 = vector.broadcast %104 : vector<1x32xf32> to vector<4x32xf32>
    %107 = arith.mulf %105, %106 : vector<4x32xf32>
    %108 = arith.addf %102, %107 : vector<4x32xf32>
    %109 = vector.extract_strided_slice %0 {offsets = [0, 3], sizes = [4, 1], strides = [1, 1]} : vector<4x4xf32> to vector<4x1xf32>
    %110 = vector.extract_strided_slice %68 {offsets = [3, 0], sizes = [1, 32], strides = [1, 1]} : vector<4x32xf32> to vector<1x32xf32>
    %111 = vector.broadcast %109 : vector<4x1xf32> to vector<4x32xf32>
    %112 = vector.broadcast %110 : vector<1x32xf32> to vector<4x32xf32>
    %113 = arith.mulf %111, %112 : vector<4x32xf32>
    %114 = arith.addf %108, %113 : vector<4x32xf32>
    %115 = vector.broadcast %76 : vector<1x32xf32> to vector<4x32xf32>
    %116 = arith.mulf %115, %68 : vector<4x32xf32>
    %117 = vector.broadcast %79 : vector<1x32xf32> to vector<4x32xf32>
    %118 = arith.mulf %117, %114 : vector<4x32xf32>
    %119 = arith.subf %116, %118 : vector<4x32xf32>
    %120 = vector.broadcast %79 : vector<1x32xf32> to vector<4x32xf32>
    %121 = arith.mulf %120, %68 : vector<4x32xf32>
    %122 = vector.broadcast %76 : vector<1x32xf32> to vector<4x32xf32>
    %123 = arith.mulf %122, %114 : vector<4x32xf32>
    %124 = arith.addf %121, %123 : vector<4x32xf32>
    %125 = vector.broadcast %82 : vector<1x32xf32> to vector<4x32xf32>
    %126 = arith.mulf %125, %119 : vector<4x32xf32>
    %127 = vector.broadcast %85 : vector<1x32xf32> to vector<4x32xf32>
    %128 = arith.mulf %127, %124 : vector<4x32xf32>
    %129 = arith.addf %126, %128 : vector<4x32xf32>
    %c0_21 = arith.constant 0 : index
    %c0_22 = arith.constant 0 : index
    %130 = vector.load %arg6[%c0_21, %c0_22] : memref<4x32xf32, #tpu.memory_space<vmem>>, vector<4x32xf32>
    tpu.vector_store %arg6[%c0_21, %c0_22], %129 {strides = array<i32>} : memref<4x32xf32, #tpu.memory_space<vmem>>, vector<4x32xf32>,
    %c2_i32 = arith.constant 2 : i32
    %c0_23 = arith.constant 0 : index
    %c0_24 = arith.constant 0 : index
    %131 = vector.load %arg6[%c0_23, %c0_24] : memref<4x32xf32, #tpu.memory_space<vmem>>, vector<4x32xf32>
    %132 = arith.index_cast %c2_i32 : i32 to index
    %c0_25 = arith.constant 0 : index
    %133 = vector.load %arg2[%132, %c0_25] : memref<9x32xf32, #tpu.memory_space<vmem>>, vector<1x32xf32>
    %c1_i32_26 = arith.constant 1 : i32
    %134 = arith.addi %c2_i32, %c1_i32_26 : i32
    %135 = arith.index_cast %134 : i32 to index
    %c0_27 = arith.constant 0 : index
    %136 = vector.load %arg2[%135, %c0_27] : memref<9x32xf32, #tpu.memory_space<vmem>>, vector<1x32xf32>
    %137 = vector.broadcast %cst : f32 to vector<1x32xf32>
    %138 = arith.mulf %133, %137 : vector<1x32xf32>
    %139 = math.cos %138 : vector<1x32xf32>
    %140 = vector.broadcast %cst : f32 to vector<1x32xf32>
    %141 = arith.mulf %133, %140 : vector<1x32xf32>
    %142 = math.sin %141 : vector<1x32xf32>
    %143 = vector.broadcast %cst : f32 to vector<1x32xf32>
    %144 = arith.mulf %136, %143 : vector<1x32xf32>
    %145 = math.cos %144 : vector<1x32xf32>
    %146 = vector.broadcast %cst : f32 to vector<1x32xf32>
    %147 = arith.mulf %136, %146 : vector<1x32xf32>
    %148 = math.sin %147 : vector<1x32xf32>
    %149 = vector.broadcast %1 : vector<4x1xf32> to vector<4x32xf32>
    %150 = vector.broadcast %133 : vector<1x32xf32> to vector<4x32xf32>
    %151 = arith.mulf %149, %150 : vector<4x32xf32>
    %152 = vector.broadcast %2 : vector<4x1xf32> to vector<4x32xf32>
    %153 = arith.addf %151, %152 : vector<4x32xf32>
    %154 = vector.extract_strided_slice %0 {offsets = [0, 0], sizes = [4, 1], strides = [1, 1]} : vector<4x4xf32> to vector<4x1xf32>
    %155 = vector.extract_strided_slice %131 {offsets = [0, 0], sizes = [1, 32], strides = [1, 1]} : vector<4x32xf32> to vector<1x32xf32>
    %156 = vector.broadcast %154 : vector<4x1xf32> to vector<4x32xf32>
    %157 = vector.broadcast %155 : vector<1x32xf32> to vector<4x32xf32>
    %158 = arith.mulf %156, %157 : vector<4x32xf32>
    %159 = arith.addf %153, %158 : vector<4x32xf32>
    %160 = vector.extract_strided_slice %0 {offsets = [0, 1], sizes = [4, 1], strides = [1, 1]} : vector<4x4xf32> to vector<4x1xf32>
    %161 = vector.extract_strided_slice %131 {offsets = [1, 0], sizes = [1, 32], strides = [1, 1]} : vector<4x32xf32> to vector<1x32xf32>
    %162 = vector.broadcast %160 : vector<4x1xf32> to vector<4x32xf32>
    %163 = vector.broadcast %161 : vector<1x32xf32> to vector<4x32xf32>
    %164 = arith.mulf %162, %163 : vector<4x32xf32>
    %165 = arith.addf %159, %164 : vector<4x32xf32>
    %166 = vector.extract_strided_slice %0 {offsets = [0, 2], sizes = [4, 1], strides = [1, 1]} : vector<4x4xf32> to vector<4x1xf32>
    %167 = vector.extract_strided_slice %131 {offsets = [2, 0], sizes = [1, 32], strides = [1, 1]} : vector<4x32xf32> to vector<1x32xf32>
    %168 = vector.broadcast %166 : vector<4x1xf32> to vector<4x32xf32>
    %169 = vector.broadcast %167 : vector<1x32xf32> to vector<4x32xf32>
    %170 = arith.mulf %168, %169 : vector<4x32xf32>
    %171 = arith.addf %165, %170 : vector<4x32xf32>
    %172 = vector.extract_strided_slice %0 {offsets = [0, 3], sizes = [4, 1], strides = [1, 1]} : vector<4x4xf32> to vector<4x1xf32>
    %173 = vector.extract_strided_slice %131 {offsets = [3, 0], sizes = [1, 32], strides = [1, 1]} : vector<4x32xf32> to vector<1x32xf32>
    %174 = vector.broadcast %172 : vector<4x1xf32> to vector<4x32xf32>
    %175 = vector.broadcast %173 : vector<1x32xf32> to vector<4x32xf32>
    %176 = arith.mulf %174, %175 : vector<4x32xf32>
    %177 = arith.addf %171, %176 : vector<4x32xf32>
    %178 = vector.broadcast %139 : vector<1x32xf32> to vector<4x32xf32>
    %179 = arith.mulf %178, %131 : vector<4x32xf32>
    %180 = vector.broadcast %142 : vector<1x32xf32> to vector<4x32xf32>
    %181 = arith.mulf %180, %177 : vector<4x32xf32>
    %182 = arith.subf %179, %181 : vector<4x32xf32>
    %183 = vector.broadcast %142 : vector<1x32xf32> to vector<4x32xf32>
    %184 = arith.mulf %183, %131 : vector<4x32xf32>
    %185 = vector.broadcast %139 : vector<1x32xf32> to vector<4x32xf32>
    %186 = arith.mulf %185, %177 : vector<4x32xf32>
    %187 = arith.addf %184, %186 : vector<4x32xf32>
    %188 = vector.broadcast %145 : vector<1x32xf32> to vector<4x32xf32>
    %189 = arith.mulf %188, %182 : vector<4x32xf32>
    %190 = vector.broadcast %148 : vector<1x32xf32> to vector<4x32xf32>
    %191 = arith.mulf %190, %187 : vector<4x32xf32>
    %192 = arith.addf %189, %191 : vector<4x32xf32>
    %c0_28 = arith.constant 0 : index
    %c0_29 = arith.constant 0 : index
    %193 = vector.load %arg6[%c0_28, %c0_29] : memref<4x32xf32, #tpu.memory_space<vmem>>, vector<4x32xf32>
    tpu.vector_store %arg6[%c0_28, %c0_29], %192 {strides = array<i32>} : memref<4x32xf32, #tpu.memory_space<vmem>>, vector<4x32xf32>,
    %c3_i32 = arith.constant 3 : i32
    %c0_30 = arith.constant 0 : index
    %c0_31 = arith.constant 0 : index
    %194 = vector.load %arg6[%c0_30, %c0_31] : memref<4x32xf32, #tpu.memory_space<vmem>>, vector<4x32xf32>
    %195 = arith.index_cast %c3_i32 : i32 to index
    %c0_32 = arith.constant 0 : index
    %196 = vector.load %arg2[%195, %c0_32] : memref<9x32xf32, #tpu.memory_space<vmem>>, vector<1x32xf32>
    %c1_i32_33 = arith.constant 1 : i32
    %197 = arith.addi %c3_i32, %c1_i32_33 : i32
    %198 = arith.index_cast %197 : i32 to index
    %c0_34 = arith.constant 0 : index
    %199 = vector.load %arg2[%198, %c0_34] : memref<9x32xf32, #tpu.memory_space<vmem>>, vector<1x32xf32>
    %200 = vector.broadcast %cst : f32 to vector<1x32xf32>
    %201 = arith.mulf %196, %200 : vector<1x32xf32>
    %202 = math.cos %201 : vector<1x32xf32>
    %203 = vector.broadcast %cst : f32 to vector<1x32xf32>
    %204 = arith.mulf %196, %203 : vector<1x32xf32>
    %205 = math.sin %204 : vector<1x32xf32>
    %206 = vector.broadcast %cst : f32 to vector<1x32xf32>
    %207 = arith.mulf %199, %206 : vector<1x32xf32>
    %208 = math.cos %207 : vector<1x32xf32>
    %209 = vector.broadcast %cst : f32 to vector<1x32xf32>
    %210 = arith.mulf %199, %209 : vector<1x32xf32>
    %211 = math.sin %210 : vector<1x32xf32>
    %212 = vector.broadcast %1 : vector<4x1xf32> to vector<4x32xf32>
    %213 = vector.broadcast %196 : vector<1x32xf32> to vector<4x32xf32>
    %214 = arith.mulf %212, %213 : vector<4x32xf32>
    %215 = vector.broadcast %2 : vector<4x1xf32> to vector<4x32xf32>
    %216 = arith.addf %214, %215 : vector<4x32xf32>
    %217 = vector.extract_strided_slice %0 {offsets = [0, 0], sizes = [4, 1], strides = [1, 1]} : vector<4x4xf32> to vector<4x1xf32>
    %218 = vector.extract_strided_slice %194 {offsets = [0, 0], sizes = [1, 32], strides = [1, 1]} : vector<4x32xf32> to vector<1x32xf32>
    %219 = vector.broadcast %217 : vector<4x1xf32> to vector<4x32xf32>
    %220 = vector.broadcast %218 : vector<1x32xf32> to vector<4x32xf32>
    %221 = arith.mulf %219, %220 : vector<4x32xf32>
    %222 = arith.addf %216, %221 : vector<4x32xf32>
    %223 = vector.extract_strided_slice %0 {offsets = [0, 1], sizes = [4, 1], strides = [1, 1]} : vector<4x4xf32> to vector<4x1xf32>
    %224 = vector.extract_strided_slice %194 {offsets = [1, 0], sizes = [1, 32], strides = [1, 1]} : vector<4x32xf32> to vector<1x32xf32>
    %225 = vector.broadcast %223 : vector<4x1xf32> to vector<4x32xf32>
    %226 = vector.broadcast %224 : vector<1x32xf32> to vector<4x32xf32>
    %227 = arith.mulf %225, %226 : vector<4x32xf32>
    %228 = arith.addf %222, %227 : vector<4x32xf32>
    %229 = vector.extract_strided_slice %0 {offsets = [0, 2], sizes = [4, 1], strides = [1, 1]} : vector<4x4xf32> to vector<4x1xf32>
    %230 = vector.extract_strided_slice %194 {offsets = [2, 0], sizes = [1, 32], strides = [1, 1]} : vector<4x32xf32> to vector<1x32xf32>
    %231 = vector.broadcast %229 : vector<4x1xf32> to vector<4x32xf32>
    %232 = vector.broadcast %230 : vector<1x32xf32> to vector<4x32xf32>
    %233 = arith.mulf %231, %232 : vector<4x32xf32>
    %234 = arith.addf %228, %233 : vector<4x32xf32>
    %235 = vector.extract_strided_slice %0 {offsets = [0, 3], sizes = [4, 1], strides = [1, 1]} : vector<4x4xf32> to vector<4x1xf32>
    %236 = vector.extract_strided_slice %194 {offsets = [3, 0], sizes = [1, 32], strides = [1, 1]} : vector<4x32xf32> to vector<1x32xf32>
    %237 = vector.broadcast %235 : vector<4x1xf32> to vector<4x32xf32>
    %238 = vector.broadcast %236 : vector<1x32xf32> to vector<4x32xf32>
    %239 = arith.mulf %237, %238 : vector<4x32xf32>
    %240 = arith.addf %234, %239 : vector<4x32xf32>
    %241 = vector.broadcast %202 : vector<1x32xf32> to vector<4x32xf32>
    %242 = arith.mulf %241, %194 : vector<4x32xf32>
    %243 = vector.broadcast %205 : vector<1x32xf32> to vector<4x32xf32>
    %244 = arith.mulf %243, %240 : vector<4x32xf32>
    %245 = arith.subf %242, %244 : vector<4x32xf32>
    %246 = vector.broadcast %205 : vector<1x32xf32> to vector<4x32xf32>
    %247 = arith.mulf %246, %194 : vector<4x32xf32>
    %248 = vector.broadcast %202 : vector<1x32xf32> to vector<4x32xf32>
    %249 = arith.mulf %248, %240 : vector<4x32xf32>
    %250 = arith.addf %247, %249 : vector<4x32xf32>
    %251 = vector.broadcast %208 : vector<1x32xf32> to vector<4x32xf32>
    %252 = arith.mulf %251, %245 : vector<4x32xf32>
    %253 = vector.broadcast %211 : vector<1x32xf32> to vector<4x32xf32>
    %254 = arith.mulf %253, %250 : vector<4x32xf32>
    %255 = arith.addf %252, %254 : vector<4x32xf32>
    %c0_35 = arith.constant 0 : index
    %c0_36 = arith.constant 0 : index
    %256 = vector.load %arg6[%c0_35, %c0_36] : memref<4x32xf32, #tpu.memory_space<vmem>>, vector<4x32xf32>
    tpu.vector_store %arg6[%c0_35, %c0_36], %255 {strides = array<i32>} : memref<4x32xf32, #tpu.memory_space<vmem>>, vector<4x32xf32>,
    %c4_i32 = arith.constant 4 : i32
    %c0_37 = arith.constant 0 : index
    %c0_38 = arith.constant 0 : index
    %257 = vector.load %arg6[%c0_37, %c0_38] : memref<4x32xf32, #tpu.memory_space<vmem>>, vector<4x32xf32>
    %258 = arith.index_cast %c4_i32 : i32 to index
    %c0_39 = arith.constant 0 : index
    %259 = vector.load %arg2[%258, %c0_39] : memref<9x32xf32, #tpu.memory_space<vmem>>, vector<1x32xf32>
    %c1_i32_40 = arith.constant 1 : i32
    %260 = arith.addi %c4_i32, %c1_i32_40 : i32
    %261 = arith.index_cast %260 : i32 to index
    %c0_41 = arith.constant 0 : index
    %262 = vector.load %arg2[%261, %c0_41] : memref<9x32xf32, #tpu.memory_space<vmem>>, vector<1x32xf32>
    %263 = vector.broadcast %cst : f32 to vector<1x32xf32>
    %264 = arith.mulf %259, %263 : vector<1x32xf32>
    %265 = math.cos %264 : vector<1x32xf32>
    %266 = vector.broadcast %cst : f32 to vector<1x32xf32>
    %267 = arith.mulf %259, %266 : vector<1x32xf32>
    %268 = math.sin %267 : vector<1x32xf32>
    %269 = vector.broadcast %cst : f32 to vector<1x32xf32>
    %270 = arith.mulf %262, %269 : vector<1x32xf32>
    %271 = math.cos %270 : vector<1x32xf32>
    %272 = vector.broadcast %cst : f32 to vector<1x32xf32>
    %273 = arith.mulf %262, %272 : vector<1x32xf32>
    %274 = math.sin %273 : vector<1x32xf32>
    %275 = vector.broadcast %1 : vector<4x1xf32> to vector<4x32xf32>
    %276 = vector.broadcast %259 : vector<1x32xf32> to vector<4x32xf32>
    %277 = arith.mulf %275, %276 : vector<4x32xf32>
    %278 = vector.broadcast %2 : vector<4x1xf32> to vector<4x32xf32>
    %279 = arith.addf %277, %278 : vector<4x32xf32>
    %280 = vector.extract_strided_slice %0 {offsets = [0, 0], sizes = [4, 1], strides = [1, 1]} : vector<4x4xf32> to vector<4x1xf32>
    %281 = vector.extract_strided_slice %257 {offsets = [0, 0], sizes = [1, 32], strides = [1, 1]} : vector<4x32xf32> to vector<1x32xf32>
    %282 = vector.broadcast %280 : vector<4x1xf32> to vector<4x32xf32>
    %283 = vector.broadcast %281 : vector<1x32xf32> to vector<4x32xf32>
    %284 = arith.mulf %282, %283 : vector<4x32xf32>
    %285 = arith.addf %279, %284 : vector<4x32xf32>
    %286 = vector.extract_strided_slice %0 {offsets = [0, 1], sizes = [4, 1], strides = [1, 1]} : vector<4x4xf32> to vector<4x1xf32>
    %287 = vector.extract_strided_slice %257 {offsets = [1, 0], sizes = [1, 32], strides = [1, 1]} : vector<4x32xf32> to vector<1x32xf32>
    %288 = vector.broadcast %286 : vector<4x1xf32> to vector<4x32xf32>
    %289 = vector.broadcast %287 : vector<1x32xf32> to vector<4x32xf32>
    %290 = arith.mulf %288, %289 : vector<4x32xf32>
    %291 = arith.addf %285, %290 : vector<4x32xf32>
    %292 = vector.extract_strided_slice %0 {offsets = [0, 2], sizes = [4, 1], strides = [1, 1]} : vector<4x4xf32> to vector<4x1xf32>
    %293 = vector.extract_strided_slice %257 {offsets = [2, 0], sizes = [1, 32], strides = [1, 1]} : vector<4x32xf32> to vector<1x32xf32>
    %294 = vector.broadcast %292 : vector<4x1xf32> to vector<4x32xf32>
    %295 = vector.broadcast %293 : vector<1x32xf32> to vector<4x32xf32>
    %296 = arith.mulf %294, %295 : vector<4x32xf32>
    %297 = arith.addf %291, %296 : vector<4x32xf32>
    %298 = vector.extract_strided_slice %0 {offsets = [0, 3], sizes = [4, 1], strides = [1, 1]} : vector<4x4xf32> to vector<4x1xf32>
    %299 = vector.extract_strided_slice %257 {offsets = [3, 0], sizes = [1, 32], strides = [1, 1]} : vector<4x32xf32> to vector<1x32xf32>
    %300 = vector.broadcast %298 : vector<4x1xf32> to vector<4x32xf32>
    %301 = vector.broadcast %299 : vector<1x32xf32> to vector<4x32xf32>
    %302 = arith.mulf %300, %301 : vector<4x32xf32>
    %303 = arith.addf %297, %302 : vector<4x32xf32>
    %304 = vector.broadcast %265 : vector<1x32xf32> to vector<4x32xf32>
    %305 = arith.mulf %304, %257 : vector<4x32xf32>
    %306 = vector.broadcast %268 : vector<1x32xf32> to vector<4x32xf32>
    %307 = arith.mulf %306, %303 : vector<4x32xf32>
    %308 = arith.subf %305, %307 : vector<4x32xf32>
    %309 = vector.broadcast %268 : vector<1x32xf32> to vector<4x32xf32>
    %310 = arith.mulf %309, %257 : vector<4x32xf32>
    %311 = vector.broadcast %265 : vector<1x32xf32> to vector<4x32xf32>
    %312 = arith.mulf %311, %303 : vector<4x32xf32>
    %313 = arith.addf %310, %312 : vector<4x32xf32>
    %314 = vector.broadcast %271 : vector<1x32xf32> to vector<4x32xf32>
    %315 = arith.mulf %314, %308 : vector<4x32xf32>
    %316 = vector.broadcast %274 : vector<1x32xf32> to vector<4x32xf32>
    %317 = arith.mulf %316, %313 : vector<4x32xf32>
    %318 = arith.addf %315, %317 : vector<4x32xf32>
    %c0_42 = arith.constant 0 : index
    %c0_43 = arith.constant 0 : index
    %319 = vector.load %arg6[%c0_42, %c0_43] : memref<4x32xf32, #tpu.memory_space<vmem>>, vector<4x32xf32>
    tpu.vector_store %arg6[%c0_42, %c0_43], %318 {strides = array<i32>} : memref<4x32xf32, #tpu.memory_space<vmem>>, vector<4x32xf32>,
    %c5_i32 = arith.constant 5 : i32
    %c0_44 = arith.constant 0 : index
    %c0_45 = arith.constant 0 : index
    %320 = vector.load %arg6[%c0_44, %c0_45] : memref<4x32xf32, #tpu.memory_space<vmem>>, vector<4x32xf32>
    %321 = arith.index_cast %c5_i32 : i32 to index
    %c0_46 = arith.constant 0 : index
    %322 = vector.load %arg2[%321, %c0_46] : memref<9x32xf32, #tpu.memory_space<vmem>>, vector<1x32xf32>
    %c1_i32_47 = arith.constant 1 : i32
    %323 = arith.addi %c5_i32, %c1_i32_47 : i32
    %324 = arith.index_cast %323 : i32 to index
    %c0_48 = arith.constant 0 : index
    %325 = vector.load %arg2[%324, %c0_48] : memref<9x32xf32, #tpu.memory_space<vmem>>, vector<1x32xf32>
    %326 = vector.broadcast %cst : f32 to vector<1x32xf32>
    %327 = arith.mulf %322, %326 : vector<1x32xf32>
    %328 = math.cos %327 : vector<1x32xf32>
    %329 = vector.broadcast %cst : f32 to vector<1x32xf32>
    %330 = arith.mulf %322, %329 : vector<1x32xf32>
    %331 = math.sin %330 : vector<1x32xf32>
    %332 = vector.broadcast %cst : f32 to vector<1x32xf32>
    %333 = arith.mulf %325, %332 : vector<1x32xf32>
    %334 = math.cos %333 : vector<1x32xf32>
    %335 = vector.broadcast %cst : f32 to vector<1x32xf32>
    %336 = arith.mulf %325, %335 : vector<1x32xf32>
    %337 = math.sin %336 : vector<1x32xf32>
    %338 = vector.broadcast %1 : vector<4x1xf32> to vector<4x32xf32>
    %339 = vector.broadcast %322 : vector<1x32xf32> to vector<4x32xf32>
    %340 = arith.mulf %338, %339 : vector<4x32xf32>
    %341 = vector.broadcast %2 : vector<4x1xf32> to vector<4x32xf32>
    %342 = arith.addf %340, %341 : vector<4x32xf32>
    %343 = vector.extract_strided_slice %0 {offsets = [0, 0], sizes = [4, 1], strides = [1, 1]} : vector<4x4xf32> to vector<4x1xf32>
    %344 = vector.extract_strided_slice %320 {offsets = [0, 0], sizes = [1, 32], strides = [1, 1]} : vector<4x32xf32> to vector<1x32xf32>
    %345 = vector.broadcast %343 : vector<4x1xf32> to vector<4x32xf32>
    %346 = vector.broadcast %344 : vector<1x32xf32> to vector<4x32xf32>
    %347 = arith.mulf %345, %346 : vector<4x32xf32>
    %348 = arith.addf %342, %347 : vector<4x32xf32>
    %349 = vector.extract_strided_slice %0 {offsets = [0, 1], sizes = [4, 1], strides = [1, 1]} : vector<4x4xf32> to vector<4x1xf32>
    %350 = vector.extract_strided_slice %320 {offsets = [1, 0], sizes = [1, 32], strides = [1, 1]} : vector<4x32xf32> to vector<1x32xf32>
    %351 = vector.broadcast %349 : vector<4x1xf32> to vector<4x32xf32>
    %352 = vector.broadcast %350 : vector<1x32xf32> to vector<4x32xf32>
    %353 = arith.mulf %351, %352 : vector<4x32xf32>
    %354 = arith.addf %348, %353 : vector<4x32xf32>
    %355 = vector.extract_strided_slice %0 {offsets = [0, 2], sizes = [4, 1], strides = [1, 1]} : vector<4x4xf32> to vector<4x1xf32>
    %356 = vector.extract_strided_slice %320 {offsets = [2, 0], sizes = [1, 32], strides = [1, 1]} : vector<4x32xf32> to vector<1x32xf32>
    %357 = vector.broadcast %355 : vector<4x1xf32> to vector<4x32xf32>
    %358 = vector.broadcast %356 : vector<1x32xf32> to vector<4x32xf32>
    %359 = arith.mulf %357, %358 : vector<4x32xf32>
    %360 = arith.addf %354, %359 : vector<4x32xf32>
    %361 = vector.extract_strided_slice %0 {offsets = [0, 3], sizes = [4, 1], strides = [1, 1]} : vector<4x4xf32> to vector<4x1xf32>
    %362 = vector.extract_strided_slice %320 {offsets = [3, 0], sizes = [1, 32], strides = [1, 1]} : vector<4x32xf32> to vector<1x32xf32>
    %363 = vector.broadcast %361 : vector<4x1xf32> to vector<4x32xf32>
    %364 = vector.broadcast %362 : vector<1x32xf32> to vector<4x32xf32>
    %365 = arith.mulf %363, %364 : vector<4x32xf32>
    %366 = arith.addf %360, %365 : vector<4x32xf32>
    %367 = vector.broadcast %328 : vector<1x32xf32> to vector<4x32xf32>
    %368 = arith.mulf %367, %320 : vector<4x32xf32>
    %369 = vector.broadcast %331 : vector<1x32xf32> to vector<4x32xf32>
    %370 = arith.mulf %369, %366 : vector<4x32xf32>
    %371 = arith.subf %368, %370 : vector<4x32xf32>
    %372 = vector.broadcast %331 : vector<1x32xf32> to vector<4x32xf32>
    %373 = arith.mulf %372, %320 : vector<4x32xf32>
    %374 = vector.broadcast %328 : vector<1x32xf32> to vector<4x32xf32>
    %375 = arith.mulf %374, %366 : vector<4x32xf32>
    %376 = arith.addf %373, %375 : vector<4x32xf32>
    %377 = vector.broadcast %334 : vector<1x32xf32> to vector<4x32xf32>
    %378 = arith.mulf %377, %371 : vector<4x32xf32>
    %379 = vector.broadcast %337 : vector<1x32xf32> to vector<4x32xf32>
    %380 = arith.mulf %379, %376 : vector<4x32xf32>
    %381 = arith.addf %378, %380 : vector<4x32xf32>
    %c0_49 = arith.constant 0 : index
    %c0_50 = arith.constant 0 : index
    %382 = vector.load %arg6[%c0_49, %c0_50] : memref<4x32xf32, #tpu.memory_space<vmem>>, vector<4x32xf32>
    tpu.vector_store %arg6[%c0_49, %c0_50], %381 {strides = array<i32>} : memref<4x32xf32, #tpu.memory_space<vmem>>, vector<4x32xf32>,
    %c6_i32 = arith.constant 6 : i32
    %c0_51 = arith.constant 0 : index
    %c0_52 = arith.constant 0 : index
    %383 = vector.load %arg6[%c0_51, %c0_52] : memref<4x32xf32, #tpu.memory_space<vmem>>, vector<4x32xf32>
    %384 = arith.index_cast %c6_i32 : i32 to index
    %c0_53 = arith.constant 0 : index
    %385 = vector.load %arg2[%384, %c0_53] : memref<9x32xf32, #tpu.memory_space<vmem>>, vector<1x32xf32>
    %c1_i32_54 = arith.constant 1 : i32
    %386 = arith.addi %c6_i32, %c1_i32_54 : i32
    %387 = arith.index_cast %386 : i32 to index
    %c0_55 = arith.constant 0 : index
    %388 = vector.load %arg2[%387, %c0_55] : memref<9x32xf32, #tpu.memory_space<vmem>>, vector<1x32xf32>
    %389 = vector.broadcast %cst : f32 to vector<1x32xf32>
    %390 = arith.mulf %385, %389 : vector<1x32xf32>
    %391 = math.cos %390 : vector<1x32xf32>
    %392 = vector.broadcast %cst : f32 to vector<1x32xf32>
    %393 = arith.mulf %385, %392 : vector<1x32xf32>
    %394 = math.sin %393 : vector<1x32xf32>
    %395 = vector.broadcast %cst : f32 to vector<1x32xf32>
    %396 = arith.mulf %388, %395 : vector<1x32xf32>
    %397 = math.cos %396 : vector<1x32xf32>
    %398 = vector.broadcast %cst : f32 to vector<1x32xf32>
    %399 = arith.mulf %388, %398 : vector<1x32xf32>
    %400 = math.sin %399 : vector<1x32xf32>
    %401 = vector.broadcast %1 : vector<4x1xf32> to vector<4x32xf32>
    %402 = vector.broadcast %385 : vector<1x32xf32> to vector<4x32xf32>
    %403 = arith.mulf %401, %402 : vector<4x32xf32>
    %404 = vector.broadcast %2 : vector<4x1xf32> to vector<4x32xf32>
    %405 = arith.addf %403, %404 : vector<4x32xf32>
    %406 = vector.extract_strided_slice %0 {offsets = [0, 0], sizes = [4, 1], strides = [1, 1]} : vector<4x4xf32> to vector<4x1xf32>
    %407 = vector.extract_strided_slice %383 {offsets = [0, 0], sizes = [1, 32], strides = [1, 1]} : vector<4x32xf32> to vector<1x32xf32>
    %408 = vector.broadcast %406 : vector<4x1xf32> to vector<4x32xf32>
    %409 = vector.broadcast %407 : vector<1x32xf32> to vector<4x32xf32>
    %410 = arith.mulf %408, %409 : vector<4x32xf32>
    %411 = arith.addf %405, %410 : vector<4x32xf32>
    %412 = vector.extract_strided_slice %0 {offsets = [0, 1], sizes = [4, 1], strides = [1, 1]} : vector<4x4xf32> to vector<4x1xf32>
    %413 = vector.extract_strided_slice %383 {offsets = [1, 0], sizes = [1, 32], strides = [1, 1]} : vector<4x32xf32> to vector<1x32xf32>
    %414 = vector.broadcast %412 : vector<4x1xf32> to vector<4x32xf32>
    %415 = vector.broadcast %413 : vector<1x32xf32> to vector<4x32xf32>
    %416 = arith.mulf %414, %415 : vector<4x32xf32>
    %417 = arith.addf %411, %416 : vector<4x32xf32>
    %418 = vector.extract_strided_slice %0 {offsets = [0, 2], sizes = [4, 1], strides = [1, 1]} : vector<4x4xf32> to vector<4x1xf32>
    %419 = vector.extract_strided_slice %383 {offsets = [2, 0], sizes = [1, 32], strides = [1, 1]} : vector<4x32xf32> to vector<1x32xf32>
    %420 = vector.broadcast %418 : vector<4x1xf32> to vector<4x32xf32>
    %421 = vector.broadcast %419 : vector<1x32xf32> to vector<4x32xf32>
    %422 = arith.mulf %420, %421 : vector<4x32xf32>
    %423 = arith.addf %417, %422 : vector<4x32xf32>
    %424 = vector.extract_strided_slice %0 {offsets = [0, 3], sizes = [4, 1], strides = [1, 1]} : vector<4x4xf32> to vector<4x1xf32>
    %425 = vector.extract_strided_slice %383 {offsets = [3, 0], sizes = [1, 32], strides = [1, 1]} : vector<4x32xf32> to vector<1x32xf32>
    %426 = vector.broadcast %424 : vector<4x1xf32> to vector<4x32xf32>
    %427 = vector.broadcast %425 : vector<1x32xf32> to vector<4x32xf32>
    %428 = arith.mulf %426, %427 : vector<4x32xf32>
    %429 = arith.addf %423, %428 : vector<4x32xf32>
    %430 = vector.broadcast %391 : vector<1x32xf32> to vector<4x32xf32>
    %431 = arith.mulf %430, %383 : vector<4x32xf32>
    %432 = vector.broadcast %394 : vector<1x32xf32> to vector<4x32xf32>
    %433 = arith.mulf %432, %429 : vector<4x32xf32>
    %434 = arith.subf %431, %433 : vector<4x32xf32>
    %435 = vector.broadcast %394 : vector<1x32xf32> to vector<4x32xf32>
    %436 = arith.mulf %435, %383 : vector<4x32xf32>
    %437 = vector.broadcast %391 : vector<1x32xf32> to vector<4x32xf32>
    %438 = arith.mulf %437, %429 : vector<4x32xf32>
    %439 = arith.addf %436, %438 : vector<4x32xf32>
    %440 = vector.broadcast %397 : vector<1x32xf32> to vector<4x32xf32>
    %441 = arith.mulf %440, %434 : vector<4x32xf32>
    %442 = vector.broadcast %400 : vector<1x32xf32> to vector<4x32xf32>
    %443 = arith.mulf %442, %439 : vector<4x32xf32>
    %444 = arith.addf %441, %443 : vector<4x32xf32>
    %c0_56 = arith.constant 0 : index
    %c0_57 = arith.constant 0 : index
    %445 = vector.load %arg6[%c0_56, %c0_57] : memref<4x32xf32, #tpu.memory_space<vmem>>, vector<4x32xf32>
    tpu.vector_store %arg6[%c0_56, %c0_57], %444 {strides = array<i32>} : memref<4x32xf32, #tpu.memory_space<vmem>>, vector<4x32xf32>,
    %c7_i32 = arith.constant 7 : i32
    %c0_58 = arith.constant 0 : index
    %c0_59 = arith.constant 0 : index
    %446 = vector.load %arg6[%c0_58, %c0_59] : memref<4x32xf32, #tpu.memory_space<vmem>>, vector<4x32xf32>
    %447 = arith.index_cast %c7_i32 : i32 to index
    %c0_60 = arith.constant 0 : index
    %448 = vector.load %arg2[%447, %c0_60] : memref<9x32xf32, #tpu.memory_space<vmem>>, vector<1x32xf32>
    %c1_i32_61 = arith.constant 1 : i32
    %449 = arith.addi %c7_i32, %c1_i32_61 : i32
    %450 = arith.index_cast %449 : i32 to index
    %c0_62 = arith.constant 0 : index
    %451 = vector.load %arg2[%450, %c0_62] : memref<9x32xf32, #tpu.memory_space<vmem>>, vector<1x32xf32>
    %452 = vector.broadcast %cst : f32 to vector<1x32xf32>
    %453 = arith.mulf %448, %452 : vector<1x32xf32>
    %454 = math.cos %453 : vector<1x32xf32>
    %455 = vector.broadcast %cst : f32 to vector<1x32xf32>
    %456 = arith.mulf %448, %455 : vector<1x32xf32>
    %457 = math.sin %456 : vector<1x32xf32>
    %458 = vector.broadcast %cst : f32 to vector<1x32xf32>
    %459 = arith.mulf %451, %458 : vector<1x32xf32>
    %460 = math.cos %459 : vector<1x32xf32>
    %461 = vector.broadcast %cst : f32 to vector<1x32xf32>
    %462 = arith.mulf %451, %461 : vector<1x32xf32>
    %463 = math.sin %462 : vector<1x32xf32>
    %464 = vector.broadcast %1 : vector<4x1xf32> to vector<4x32xf32>
    %465 = vector.broadcast %448 : vector<1x32xf32> to vector<4x32xf32>
    %466 = arith.mulf %464, %465 : vector<4x32xf32>
    %467 = vector.broadcast %2 : vector<4x1xf32> to vector<4x32xf32>
    %468 = arith.addf %466, %467 : vector<4x32xf32>
    %469 = vector.extract_strided_slice %0 {offsets = [0, 0], sizes = [4, 1], strides = [1, 1]} : vector<4x4xf32> to vector<4x1xf32>
    %470 = vector.extract_strided_slice %446 {offsets = [0, 0], sizes = [1, 32], strides = [1, 1]} : vector<4x32xf32> to vector<1x32xf32>
    %471 = vector.broadcast %469 : vector<4x1xf32> to vector<4x32xf32>
    %472 = vector.broadcast %470 : vector<1x32xf32> to vector<4x32xf32>
    %473 = arith.mulf %471, %472 : vector<4x32xf32>
    %474 = arith.addf %468, %473 : vector<4x32xf32>
    %475 = vector.extract_strided_slice %0 {offsets = [0, 1], sizes = [4, 1], strides = [1, 1]} : vector<4x4xf32> to vector<4x1xf32>
    %476 = vector.extract_strided_slice %446 {offsets = [1, 0], sizes = [1, 32], strides = [1, 1]} : vector<4x32xf32> to vector<1x32xf32>
    %477 = vector.broadcast %475 : vector<4x1xf32> to vector<4x32xf32>
    %478 = vector.broadcast %476 : vector<1x32xf32> to vector<4x32xf32>
    %479 = arith.mulf %477, %478 : vector<4x32xf32>
    %480 = arith.addf %474, %479 : vector<4x32xf32>
    %481 = vector.extract_strided_slice %0 {offsets = [0, 2], sizes = [4, 1], strides = [1, 1]} : vector<4x4xf32> to vector<4x1xf32>
    %482 = vector.extract_strided_slice %446 {offsets = [2, 0], sizes = [1, 32], strides = [1, 1]} : vector<4x32xf32> to vector<1x32xf32>
    %483 = vector.broadcast %481 : vector<4x1xf32> to vector<4x32xf32>
    %484 = vector.broadcast %482 : vector<1x32xf32> to vector<4x32xf32>
    %485 = arith.mulf %483, %484 : vector<4x32xf32>
    %486 = arith.addf %480, %485 : vector<4x32xf32>
    %487 = vector.extract_strided_slice %0 {offsets = [0, 3], sizes = [4, 1], strides = [1, 1]} : vector<4x4xf32> to vector<4x1xf32>
    %488 = vector.extract_strided_slice %446 {offsets = [3, 0], sizes = [1, 32], strides = [1, 1]} : vector<4x32xf32> to vector<1x32xf32>
    %489 = vector.broadcast %487 : vector<4x1xf32> to vector<4x32xf32>
    %490 = vector.broadcast %488 : vector<1x32xf32> to vector<4x32xf32>
    %491 = arith.mulf %489, %490 : vector<4x32xf32>
    %492 = arith.addf %486, %491 : vector<4x32xf32>
    %493 = vector.broadcast %454 : vector<1x32xf32> to vector<4x32xf32>
    %494 = arith.mulf %493, %446 : vector<4x32xf32>
    %495 = vector.broadcast %457 : vector<1x32xf32> to vector<4x32xf32>
    %496 = arith.mulf %495, %492 : vector<4x32xf32>
    %497 = arith.subf %494, %496 : vector<4x32xf32>
    %498 = vector.broadcast %457 : vector<1x32xf32> to vector<4x32xf32>
    %499 = arith.mulf %498, %446 : vector<4x32xf32>
    %500 = vector.broadcast %454 : vector<1x32xf32> to vector<4x32xf32>
    %501 = arith.mulf %500, %492 : vector<4x32xf32>
    %502 = arith.addf %499, %501 : vector<4x32xf32>
    %503 = vector.broadcast %460 : vector<1x32xf32> to vector<4x32xf32>
    %504 = arith.mulf %503, %497 : vector<4x32xf32>
    %505 = vector.broadcast %463 : vector<1x32xf32> to vector<4x32xf32>
    %506 = arith.mulf %505, %502 : vector<4x32xf32>
    %507 = arith.addf %504, %506 : vector<4x32xf32>
    %c0_63 = arith.constant 0 : index
    %c0_64 = arith.constant 0 : index
    %508 = vector.load %arg6[%c0_63, %c0_64] : memref<4x32xf32, #tpu.memory_space<vmem>>, vector<4x32xf32>
    tpu.vector_store %arg6[%c0_63, %c0_64], %507 {strides = array<i32>} : memref<4x32xf32, #tpu.memory_space<vmem>>, vector<4x32xf32>,
    %c8_i32 = arith.constant 8 : i32
    return
  }
  func.func @transform_0(%arg0: i32) -> (i32, i32) {
    %c0_i32 = arith.constant 0 : i32
    %c0_i32_0 = arith.constant 0 : i32
    return %c0_i32, %arg0 : i32, i32
  }
  func.func @transform_1(%arg0: i32) -> (i32, i32) {
    %c0_i32 = arith.constant 0 : i32
    %c0_i32_0 = arith.constant 0 : i32
    return %c0_i32, %arg0 : i32, i32
  }
  func.func @transform_2(%arg0: i32) -> (i32, i32) {
    %c0_i32 = arith.constant 0 : i32
    %c0_i32_0 = arith.constant 0 : i32
    %c0_i32_1 = arith.constant 0 : i32
    return %c0_i32, %c0_i32_0 : i32, i32
  }
  func.func @transform_3(%arg0: i32) -> (i32, i32) {
    %c0_i32 = arith.constant 0 : i32
    %c0_i32_0 = arith.constant 0 : i32
    %c0_i32_1 = arith.constant 0 : i32
    return %c0_i32, %c0_i32_0 : i32, i32
  }
  func.func @transform_4(%arg0: i32) -> (i32, i32) {
    %c0_i32 = arith.constant 0 : i32
    %c0_i32_0 = arith.constant 0 : i32
    %c0_i32_1 = arith.constant 0 : i32
    return %c0_i32, %c0_i32_0 : i32, i32
  }
  func.func @transform_5(%arg0: i32) -> (i32, i32) {
    %c0_i32 = arith.constant 0 : i32
    %c0_i32_0 = arith.constant 0 : i32
    return %c0_i32, %arg0 : i32, i32
  }
}

</mosaic_0001>

<bundles_post_ra>
// kernel: _sample_loop_jit.1
= control target key start
LH: loop header
LB: loop body
LE: loop exit
PB: predicated region body
PF: predicated region fallthrough
CT: control target
= control target key end

     0   :  { %v4129_v0 = vmov 0   ;;  %vm24_vm0 = vcmask 257024   ;;  %v4130_v10 = vmov 1   ;;  %v4131_v17 = vmov 2   ;;  %s6237_s3 = inlined_call_operand.vmem [shape: f32[4,1], index: 3, kind: input, shape index: {}]   ;;  %s6238_s2 = inlined_call_operand.vmem [shape: f32[4,4], index: 2, kind: input, shape index: {}]   ;;  %s6239_s4 = inlined_call_operand.vmem [shape: f32[4,1], index: 4, kind: input, shape index: {}]   ;;  %s6240_s0 = inlined_call_operand.vmem [shape: f32[4,32], index: 0, kind: input, shape index: {}, may-alias: {0,5}]   ;;  %s6241_s1 = inlined_call_operand.vmem [shape: f32[9,32], index: 1, kind: input, shape index: {}]   ;;  %s6242_s5 = inlined_call_operand.vmem [shape: f32[4,32], index: 5, kind: output, shape index: {}, may-alias: {0,5}]  }
   0x1   :  { %4059 = vset.pattern.permute.xlu0 %v4129_v0  ;;  %4060 = vset.pattern.permute.xlu1 %v4129_v0  ;;  %v21_v1 = vld [vmem:[%s6237_s3] sm:$0xf]  ;;  %v4132_v19 = vmov 3   ;;  %v6253_v34 = vmov 683565275  }
   0x2   :  { %v20_v2 = vld [vmem:[%s6238_s2] sm:$0xf]  ;;  %447 = vperm.xlu0 %4059, %v21_v1   ;;  %v6246_v36 = vmov 2475754826   ;;  %v6251_v38 = vmov 2131351028  }
   0x3   :  { %463 = vperm.xlu1 %4060, %v20_v2   ;;  %v23_v3 = vld [vmem:[%s6240_s0] sm:$0xf]  ;;  %v6249_v40 = vmov 2102212464   ;;  %v6244_v42 = vmov 920167782  }
   0x4   :  { %v4181_v4 = vld [vmem:[%s6241_s1] sm:$0x1]  ;;  %25 = vst.msk [vmem:[%s6242_s5] sm:$0xf] %vm24_vm0, %v23_v3  ;;  %v28_v6 = vld [vmem:[%s6241_s1 + $0x1] sm:$0x1] }
   0x5   :  { %v22_v5 = vld [vmem:[%s6239_s4] sm:$0xf]  ;;  %v4194_v7 = vmul.f32 1.5707964, %v4181_v4  ;;  %v4198_v11 = vmul.f32 1.5707964, %v28_v6 }
   0x6   :  { %457 = vperm.xlu0 %4059, %v22_v5   ;;  %v4209_v25 = vld [vmem:[%s6241_s1 + $0x1] sm:$0x1]  ;;  %v6256_v49 = vmov 1326507024  }
   0x7   :  { %v30_v8 = vand.u32 2147483647, %v4194_v7  ;;  %v33_v9 = vand.u32 2139095040, %v4194_v7  ;;  %4061 = vset.pattern.permute.xlu1 %v4130_v10  ;;  %v238_v14 = vand.u32 2147483647, %v4198_v11  ;;  %v241_v15 = vand.u32 2139095040, %v4198_v11 }
   0x8   :  { %473 = vperm.xlu1 %4061, %v20_v2   ;;  %v4216_v32 = vmul.f32 1.5707964, %v4209_v25 }
   0x9   :  { %v34_v12 = vshrl.u32 %v33_v9, 23  ;;  %v37_v13 = vand.u32 8388607, %v30_v8  ;;  %v242_v18 = vshrl.u32 %v241_v15, 23  ;;  %v245_v21 = vand.u32 8388607, %v238_v14 }
   0xa   :  { %4062 = vset.pattern.permute.xlu0 %v4131_v17 }
   0xb   :  { %v3857_v16 = vadd.s32 4294967169, %v34_v12  ;;  %483 = vperm.xlu0 %4062, %v20_v2   ;;  %v38_v22 = vor.u32 8388608, %v37_v13  ;;  %v3865_v23 = vadd.s32 4294967169, %v242_v18  ;;  %v246_v24 = vor.u32 8388608, %v245_v21 }
   0xc   :  { %4063 = vset.pattern.permute.xlu1 %v4132_v19 }
   0xd   :  { %v40_v20 = vadd.s32 1, %v3857_v16  ;;  %493 = vperm.xlu1 %4063, %v20_v2   ;;  %v248_v27 = vadd.s32 1, %v3865_v23  ;;  %v4211_v30 = vshll.u32 %v38_v22, 8  ;;  %v4213_v31 = vshll.u32 %v246_v24, 8 }
   0xf   :  { %vm41_vm1 = vcmp.gt.s32.totalorder %v40_v20, 0  ;;  %4064 = vset.pattern.permute.xlu0 %v4132_v19  ;;  %vm249_vm2 = vcmp.gt.s32.totalorder %v248_v27, 0 }
  0x10   :  { %v42_v26 = vsel %vm41_vm1, %v40_v20, 0  ;;  %v250_v54 = vsel %vm249_vm2, %v248_v27, 0 }
  0x11   :  { %v43_v28 = vshrl.u32 %v42_v26, 5  ;;  %v44_v29 = vand.u32 31, %v42_v26  ;;  %v251_v57 = vshrl.u32 %v250_v54, 5  ;;  %v252_v58 = vand.u32 31, %v250_v54 }
  0x13   :  { %v45_v33 = vsub.s32 32, %v44_v29  ;;  %v47_v35 = vshll.u32 %v6253_v34, %v44_v29  ;;  %v50_v37 = vshll.u32 %v6246_v36, %v44_v29  ;;  %v53_v39 = vshll.u32 %v6251_v38, %v44_v29 }
  0x14   :  { %v56_v41 = vshll.u32 %v6249_v40, %v44_v29  ;;  %v59_v43 = vshll.u32 %v6244_v42, %v44_v29  ;;  %vm62_vm3 = vcmp.lt.s32.totalorder %v43_v28, 1  ;;  %vm63_vm4 = vcmp.lt.s32.totalorder %v43_v28, 2 }
  0x15   :  { %v46_v44 = vshrl.u32 %v6253_v34, %v45_v33  ;;  %v48_v45 = vshrl.u32 %v6246_v36, %v45_v33  ;;  %v51_v46 = vshrl.u32 %v6251_v38, %v45_v33  ;;  %v54_v47 = vshrl.u32 %v6249_v40, %v45_v33 }
  0x16   :  { %v57_v48 = vshrl.u32 %v6244_v42, %v45_v33  ;;  %v60_v50 = vshrl.u32 %v6256_v49, %v45_v33  ;;  %vm64_vm5 = vcmp.lt.s32.totalorder %v43_v28, 3  ;;  %vm65_vm6 = vcmp.lt.s32.totalorder %v43_v28, 4 }
  0x17   :  { %v49_v51 = vor.u32 %v48_v45, %v47_v35  ;;  %v52_v52 = vor.u32 %v51_v46, %v50_v37  ;;  %v55_v53 = vor.u32 %v54_v47, %v53_v39  ;;  %v253_v2 = vsub.s32 32, %v252_v58 }
  0x18   :  { %v58_v55 = vor.u32 %v57_v48, %v56_v41  ;;  %v61_v56 = vor.u32 %v60_v50, %v59_v43  ;;  %v255_v9 = vshll.u32 %v6253_v34, %v252_v58  ;;  %v258_v21 = vshll.u32 %v6246_v36, %v252_v58 }
  0x19   :  { %v66_v59 = vsel %vm62_vm3, %v46_v44, %v49_v51  ;;  %v67_v60 = vsel %vm65_vm6, %v55_v53, 2102212464  ;;  %v70_v61 = vsel %vm62_vm3, %v49_v51, %v52_v52  ;;  %v74_v62 = vsel %vm62_vm3, %v52_v52, %v55_v53 }
  0x1a   :  { %v68_v63 = vsel %vm64_vm5, %v52_v52, %v67_v60  ;;  %v71_v0 = vsel %vm65_vm6, %v58_v55, 920167782  ;;  %v75_v1 = vsel %vm65_vm6, %v61_v56, 1326507024  ;;  %v254_v15 = vshrl.u32 %v6253_v34, %v253_v2 }
  0x1b   :  { %v69_v3 = vsel %vm63_vm4, %v66_v59, %v68_v63  ;;  %v72_v5 = vsel %vm64_vm5, %v55_v53, %v71_v0  ;;  %v76_v6 = vsel %vm64_vm5, %v58_v55, %v75_v1  ;;  %v256_v20 = vshrl.u32 %v6246_v36, %v253_v2 }
  0x1c   :  { %v73_v10 = vsel %vm63_vm4, %v70_v61, %v72_v5  ;;  %v77_v12 = vsel %vm63_vm4, %v74_v62, %v76_v6  ;;  %v85_v13 = vmul.u32 %v4211_v30, %v69_v3  ;;  %v259_v22 = vshrl.u32 %v6251_v38, %v253_v2 }
  0x1d   :  { %v4243_v16 = vmul.u32.u64.low %v4211_v30, %v77_v12  ;;  %v4244_v17 = vmul.u32.u64.high %v4211_v30, %v77_v12, %v4243_v16  ;;  %v4247_v18 = vmul.u32.u64.low %v4211_v30, %v73_v10  ;;  %v4248_v19 = vmul.u32.u64.high %v4211_v30, %v73_v10, %v4247_v18 }
  0x1e   :  { %v261_v23 = vshll.u32 %v6251_v38, %v252_v58  ;;  %v262_v24 = vshrl.u32 %v6249_v40, %v253_v2  ;;  %v264_v26 = vshll.u32 %v6249_v40, %v252_v58  ;;  %v265_v27 = vshrl.u32 %v6244_v42, %v253_v2 }
  0x1f   :  { %v267_v28 = vshll.u32 %v6244_v42, %v252_v58  ;;  %v257_v29 = vor.u32 %v256_v20, %v255_v9  ;;  %v260_v30 = vor.u32 %v259_v22, %v258_v21  ;;  %v268_v33 = vshrl.u32 %v6256_v49, %v253_v2  ;;  %v530_v20 = vld [vmem:[%s6241_s1 + $0x2] sm:$0x1] }
  0x20   :  { %vm270_vm7 = vcmp.lt.s32.totalorder %v251_v57, 1  ;;  %vm87_vm8 = vc.u32 %v4244_v17, %v4247_v18  ;;  %v88_v35 = vadd.s32 1, %v4248_v19  ;;  %v263_v37 = vor.u32 %v262_v24, %v261_v23 }
  0x21   :  { %v535_v39 = vand.u32 2139095040, %v4216_v32  ;;  %v266_v41 = vor.u32 %v265_v27, %v264_v26  ;;  %v269_v43 = vor.u32 %v268_v33, %v267_v28  ;;  %vm271_vm9 = vcmp.lt.s32.totalorder %v251_v57, 2 }
  0x22   :  { %vm272_vm10 = vcmp.lt.s32.totalorder %v251_v57, 3  ;;  %v89_v44 = vsel %vm87_vm8, %v88_v35, %v4248_v19  ;;  %vm273_vm11 = vcmp.lt.s32.totalorder %v251_v57, 4  ;;  %v274_v45 = vsel %vm270_vm7, %v254_v15, %v257_v29 }
  0x23   :  { %v278_v46 = vsel %vm270_vm7, %v257_v29, %v260_v30  ;;  %v90_v47 = vadd.s32 %v89_v44, %v85_v13  ;;  %v275_v48 = vsel %vm273_vm11, %v263_v37, 2102212464  ;;  %v279_v50 = vsel %vm273_vm11, %v266_v41, 920167782 }
  0x24   :  { %v282_v51 = vsel %vm270_vm7, %v260_v30, %v263_v37  ;;  %v276_v52 = vsel %vm272_vm10, %v260_v30, %v275_v48  ;;  %v280_v53 = vsel %vm272_vm10, %v263_v37, %v279_v50  ;;  %v283_v54 = vsel %vm273_vm11, %v269_v43, 1326507024 }
  0x25   :  { %v91_v55 = vadd.s32 536870912, %v90_v47  ;;  %v281_v56 = vsel %vm271_vm9, %v278_v46, %v280_v53  ;;  %v284_v58 = vsel %vm272_vm10, %v266_v41, %v283_v54  ;;  %v277_v59 = vsel %vm271_vm9, %v274_v45, %v276_v52 }
  0x26   :  { %v285_v60 = vsel %vm271_vm9, %v282_v51, %v284_v58  ;;  %v4272_v61 = vmul.u32.u64.low %v4213_v31, %v281_v56  ;;  %v4273_v62 = vmul.u32.u64.high %v4213_v31, %v281_v56, %v4272_v61  ;;  %v536_v2 = vshrl.u32 %v535_v39, 23 }
  0x27   :  { %v4275_v63 = vshrl.u32 %v91_v55, 30  ;;  %v4278_v0 = vmul.u32.u64.low %v4213_v31, %v285_v60  ;;  %v4279_v1 = vmul.u32.u64.high %v4213_v31, %v285_v60, %v4278_v0  ;;  %v293_v5 = vmul.u32 %v4213_v31, %v277_v59 }
  0x28   :  { %v3873_v6 = vadd.s32 4294967169, %v536_v2  ;;  %v296_v9 = vadd.s32 1, %v4273_v62  ;;  %v532_v16 = vand.u32 2147483647, %v4216_v32  ;;  %v4294_v27 = vmul.f32 1.5707964, %v530_v20 }
  0x29   :  { %v93_v3 = vshll.u32 %v4275_v63, 30  ;;  %vm295_vm12 = vc.u32 %v4279_v1, %v4272_v61  ;;  %v86_v33 = vadd.s32 %v4247_v18, %v4244_v17  ;;  %v450_v35 = vlaneseq }
  0x2a   :  { %v297_v10 = vsel %vm295_vm12, %v296_v9, %v4273_v62  ;;  %v542_v12 = vadd.s32 1, %v3873_v6  ;;  %v539_v26 = vand.u32 8388607, %v532_v16  ;;  %v743_v43 = vand.u32 2139095040, %v4294_v27 }
  0x2b   :  { %v94_v57 = vsub.s32 %v90_v47, %v93_v3  ;;  %v298_v15 = vadd.s32 %v297_v10, %v293_v5  ;;  %v294_v55 = vadd.s32 %v4272_v61, %v4279_v1  ;;  %vm32_vm5 = vcmp.lt.s32.totalorder %v4194_v7, 0 }
  0x2c   :  { %vm543_vm13 = vcmp.gt.s32.totalorder %v542_v12, 0  ;;  %v540_v41 = vor.u32 8388608, %v539_v26  ;;  %v744_v2 = vshrl.u32 %v743_v43, 23  ;;  %vm4340_vm6 = vcmp.le.f32.partialorder %v30_v8, 0.7853982 }
  0x2d   :  { %v96_v13 = vsub.s32 0, %v94_v57  ;;  %v299_v31 = vadd.s32 536870912, %v298_v15  ;;  %v544_v21 = vsel %vm543_vm13, %v542_v12, 0  ;;  %v740_v8 = vand.u32 2147483647, %v4294_v27 }
  0x2e   :  { %v546_v23 = vand.u32 31, %v544_v21  ;;  %v545_v58 = vshrl.u32 %v544_v21, 5  ;;  %vm240_vm9 = vcmp.lt.s32.totalorder %v4198_v11, 0  ;;  %vm4375_vm10 = vcmp.le.f32.partialorder %v238_v14, 0.7853982 }
  0x2f   :  { %v3858_v19 = vmin.u32 %v96_v13, %v94_v57  ;;  %v4290_v24 = vshrl.u32 %v299_v31, 30  ;;  %v580_v31 = vshll.u32 %v540_v41, 8 }
  0x30   :  { %v547_v30 = vsub.s32 32, %v546_v23  ;;  %v549_v47 = vshll.u32 %v6253_v34, %v546_v23  ;;  %v552_v51 = vshll.u32 %v6246_v36, %v546_v23  ;;  %v555_v17 = vshll.u32 %v6251_v38, %v546_v23 }
  0x31   :  { %v98_v22 = vclz %v3858_v19  ;;  %v301_v29 = vshll.u32 %v4290_v24, 30  ;;  %v558_v59 = vshll.u32 %v6249_v40, %v546_v23  ;;  %v561_v6 = vshll.u32 %v6244_v42, %v546_v23 }
  0x32   :  { %v550_v50 = vshrl.u32 %v6246_v36, %v547_v30  ;;  %v553_v53 = vshrl.u32 %v6251_v38, %v547_v30  ;;  %v556_v54 = vshrl.u32 %v6249_v40, %v547_v30  ;;  %v559_v0 = vshrl.u32 %v6244_v42, %v547_v30 }
  0x33   :  { %v3859_v28 = vadd.s32 4294967294, %v98_v22  ;;  %v4299_v39 = vsub.s32 %v298_v15, %v301_v29  ;;  %v548_v5 = vshrl.u32 %v6253_v34, %v547_v30  ;;  %v562_v9 = vshrl.u32 %v6256_v49, %v547_v30 }
  0x34   :  { %v551_v10 = vor.u32 %v550_v50, %v549_v47  ;;  %v554_v61 = vor.u32 %v553_v53, %v552_v51  ;;  %v557_v1 = vor.u32 %v556_v54, %v555_v17  ;;  %v560_v15 = vor.u32 %v559_v0, %v558_v59 }
  0x35   :  { %vm3860_vm14 = vcmp.lt.s32.totalorder %v3859_v28, 0  ;;  %v304_v48 = vsub.s32 0, %v4299_v39  ;;  %vm564_vm15 = vcmp.lt.s32.totalorder %v545_v58, 1  ;;  %v563_v20 = vor.u32 %v562_v9, %v561_v6 }
  0x36   :  { %v101_v37 = vsel %vm3860_vm14, 0, %v3859_v28  ;;  %vm567_vm1 = vcmp.lt.s32.totalorder %v545_v58, 4  ;;  %vm566_vm3 = vcmp.lt.s32.totalorder %v545_v58, 3  ;;  %v3881_v22 = vadd.s32 4294967169, %v744_v2 }
  0x37   :  { %v102_v44 = vsub.s32 32, %v101_v37  ;;  %v103_v45 = vshll.u32 %v94_v57, %v101_v37  ;;  %v106_v46 = vsub.s32 4294967266, %v101_v37  ;;  %v3866_v56 = vmin.u32 %v304_v48, %v4299_v39 }
  0x38   :  { %v569_v21 = vsel %vm567_vm1, %v557_v1, 2102212464  ;;  %vm565_vm4 = vcmp.lt.s32.totalorder %v545_v58, 2  ;;  %v572_v26 = vsel %vm564_vm15, %v551_v10, %v554_v61  ;;  %v573_v28 = vsel %vm567_vm1, %v560_v15, 920167782 }
  0x39   :  { %v104_v18 = vshrl.u32 %v86_v33, %v102_v44  ;;  %v107_v52 = vadd.s32 127, %v106_v46  ;;  %v306_v3 = vclz %v3866_v56  ;;  %v568_v37 = vsel %vm564_vm15, %v548_v5, %v551_v10 }
  0x3a   :  { %v570_v43 = vsel %vm566_vm3, %v554_v61, %v569_v21  ;;  %v574_v41 = vsel %vm566_vm3, %v557_v1, %v573_v28  ;;  %v576_v44 = vsel %vm564_vm15, %v554_v61, %v557_v1  ;;  %v116_v46 = vsub.s32 4, %v4275_v63  ;;  %v4367_v21 = vld [vmem:[%s6242_s5] sm:$0xf] }
  0x3b   :  { %v105_v60 = vor.u32 %v104_v18, %v103_v45  ;;  %v108_v62 = vshll.u32 %v107_v52, 23  ;;  %v3867_v13 = vadd.s32 4294967294, %v306_v3  ;;  %v577_v45 = vsel %vm567_vm1, %v563_v20, 1326507024 }
  0x3c   :  { %v575_v48 = vsel %vm565_vm4, %v572_v26, %v574_v41  ;;  %v578_v50 = vsel %vm566_vm3, %v560_v15, %v577_v45  ;;  %v571_v59 = vsel %vm565_vm4, %v568_v37, %v570_v43  ;;  %v750_v0 = vadd.s32 1, %v3881_v22 }
  0x3d   :  { %v109_v57 = vor.u32 4788187, %v108_v62  ;;  %v112_v12 = vcvt.s32.f32 %v105_v60  ;;  %vm3868_vm2 = vcmp.lt.s32.totalorder %v3867_v13, 0  ;;  %v579_v17 = vsel %vm565_vm4, %v576_v44, %v578_v50 }
  0x3e   :  { %v309_v23 = vsel %vm3868_vm2, 0, %v3867_v13  ;;  %v4329_v18 = vmul.u32.u64.low %v580_v31, %v575_v48  ;;  %v4330_v52 = vmul.u32.u64.high %v580_v31, %v575_v48, %v4329_v18  ;;  %v451_v2 = vshrl.u32 %v450_v35, 7 }
  0x3f   :  { %v110_v19 = vand.u32 2147483647, %v109_v57  ;;  %v310_v30 = vsub.s32 32, %v309_v23  ;;  %v314_v33 = vsub.s32 4294967266, %v309_v23  ;;  %v311_v51 = vshll.u32 %v4299_v39, %v309_v23 }
  0x40   :  { %v4335_v60 = vmul.u32.u64.low %v580_v31, %v579_v17  ;;  %v4336_v62 = vmul.u32.u64.high %v580_v31, %v579_v17, %v4335_v60  ;;  %v117_v3 = vsel %vm32_vm5, %v116_v46, %v4275_v63  ;;  %v590_v58 = vadd.s32 1, %v4330_v52 }
  0x41   :  { %v113_v29 = vmul.f32 %v112_v12, %v110_v19  ;;  %v315_v47 = vadd.s32 127, %v314_v33  ;;  %v312_v54 = vshrl.u32 %v294_v55, %v310_v30  ;;  %v587_v55 = vmul.u32 %v580_v31, %v571_v59  ;;  %v4414_v60 = vld [vmem:[%s6241_s1 + $0x2] sm:$0x1] }
  0x42   :  { %vm751_vm7 = vcmp.gt.s32.totalorder %v750_v0, 0  ;;  %vm589_vm8 = vc.u32 %v4336_v62, %v4329_v18  ;;  %v119_v10 = vsel %vm4340_vm6, 0, %v117_v3  ;;  %v4353_v35 = vsub.s32 0, %v451_v2 }
  0x43   :  { %v114_v53 = vxor.u32 2147483648, %v113_v29  ;;  %v316_v56 = vshll.u32 %v315_v47, 23  ;;  %v313_v6 = vor.u32 %v312_v54, %v311_v51  ;;  %v752_v57 = vsel %vm751_vm7, %v750_v0, 0 }
  0x44   :  { %v591_v63 = vsel %vm589_vm8, %v590_v58, %v4330_v52  ;;  %v324_v1 = vsub.s32 4, %v4290_v24  ;;  %v754_v13 = vand.u32 31, %v752_v57  ;;  %v4360_v20 = vsub.s32 1, %v451_v2 }
  0x45   :  { %v115_v5 = vsel %vm32_vm5, %v114_v53, %v113_v29  ;;  %v317_v9 = vor.u32 4788187, %v316_v56  ;;  %v592_v12 = vadd.s32 %v591_v63, %v587_v55  ;;  %v320_v19 = vcvt.s32.f32 %v313_v6 }
  0x46   :  { %v118_v61 = vsel %vm4340_vm6, %v4194_v7, %v115_v5  ;;  %v4362_v31 = vsub.s32 2, %v451_v2  ;;  %v4369_v22 = vsub.s32 3, %v451_v2  ;;  %v747_v26 = vand.u32 8388607, %v740_v8 }
  0x47   :  { %v318_v15 = vand.u32 2147483647, %v317_v9  ;;  %v593_v23 = vadd.s32 536870912, %v592_v12  ;;  %4065 = vcosq.f32 %v118_v61  ;;  %v226_v28 = vadd.s32 3, %v119_v10 }
  0x48   :  { %v453_v30 = vrot.slane %v4181_v4, %v4353_v35  ;;  %4067 = vsinq.f32 %v118_v61  ;;  %v325_v33 = vsel %vm240_vm9, %v324_v1, %v4290_v24  ;;  %v755_v43 = vsub.s32 32, %v754_v13 }
  0x49   :  { %v4384_v37 = vshrl.u32 %v593_v23, 30  ;;  %v321_v41 = vmul.f32 %v320_v19, %v318_v15  ;;  %v469_v44 = vrot.slane %v4367_v21, %v4353_v35  ;;  %v479_v14 = vrot.slane %v4367_v21, %v4360_v20 }
  0x4a   :  { %v489_v45 = vrot.slane %v4367_v21, %v4362_v31  ;;  %v4392_v46 = vand.u32 3, %v119_v10  ;;  %v499_v47 = vrot.slane %v4367_v21, %v4369_v22  ;;  %v748_v48 = vor.u32 8388608, %v747_v26 }
  0x4b   :  { %v595_v24 = vshll.u32 %v4384_v37, 30  ;;  %v4397_v50 = vand.u32 3, %v226_v28  ;;  %v4401_v51 = vsel %vm4375_vm10, 0, %v325_v33  ;;  %v4403_v17 = vshrl.u32 %v752_v57, 5 }
  0x4c   :  { %v757_v52 = vshll.u32 %v6253_v34, %v754_v13  ;;  %v760_v54 = vshll.u32 %v6246_v36, %v754_v13  ;;  %v766_v56 = vshll.u32 %v6249_v40, %v754_v13  ;;  %v767_v59 = vshrl.u32 %v6244_v42, %v755_v43 }
  0x4d   :  { %v4406_v53 = vsub.s32 %v592_v12, %v595_v24  ;;  %v322_v0 = vxor.u32 2147483648, %v321_v41  ;;  %v763_v39 = vshll.u32 %v6251_v38, %v754_v13  ;;  %v769_v2 = vshll.u32 %v6244_v42, %v754_v13 }
  0x4e   :  { %v770_v3 = vshrl.u32 %v6256_v49, %v755_v43  ;;  %v758_v58 = vshrl.u32 %v6246_v36, %v755_v43  ;;  %v761_v5 = vshrl.u32 %v6251_v38, %v755_v43  ;;  %v764_v6 = vshrl.u32 %v6249_v40, %v755_v43 }
  0x4f   :  { %v598_v55 = vsub.s32 0, %v4406_v53  ;;  %vm125_vm11 = vcmp.eq.s32.totalorder %v4392_v46, 0  ;;  %vm128_vm12 = vcmp.eq.s32.totalorder %v4392_v46, 2  ;;  %vm229_vm13 = vcmp.eq.s32.totalorder %v4397_v50, 0 }
  0x50   :  { %v4426_v9 = vshll.u32 %v748_v48, 8  ;;  %v4429_v57 = vmul.f32 1.5707964, %v4414_v60  ;;  %vm232_vm14 = vcmp.eq.s32.totalorder %v4397_v50, 2  ;;  %v4433_v10 = vadd.s32 3, %v4401_v51 }
  0x51   :  { %v3874_v63 = vmin.u32 %v598_v55, %v4406_v53  ;;  %v768_v61 = vor.u32 %v767_v59, %v766_v56  ;;  %v4066_v1 = vpop.eup %4065  ;;  %v323_v12 = vsel %vm240_vm9, %v322_v0, %v321_v41  ;;  %v588_v13 = vadd.s32 %v4329_v18, %v4336_v62 }
  0x52   :  { %v771_v15 = vor.u32 %v770_v3, %v769_v2  ;;  %vm775_vm15 = vcmp.lt.s32.totalorder %v4403_v17, 4  ;;  %v4068_v19 = vpop.eup %4067  ;;  %v759_v26 = vor.u32 %v758_v58, %v757_v52  ;;  %v762_v28 = vor.u32 %v761_v5, %v760_v54 }
  0x53   :  { %v600_v23 = vclz %v3874_v63  ;;  %v765_v33 = vor.u32 %v764_v6, %v763_v39  ;;  %vm124_vm1 = vcmp.lt.s32.totalorder %v4392_v46, 2  ;;  %vm228_vm2 = vcmp.lt.s32.totalorder %v4397_v50, 2 }
  0x54   :  { %v756_v24 = vshrl.u32 %v6253_v34, %v755_v43  ;;  %vm772_vm3 = vcmp.lt.s32.totalorder %v4403_v17, 1  ;;  %vm774_vm4 = vcmp.lt.s32.totalorder %v4403_v17, 3  ;;  %v1010_v18 = vand.u32 2139095040, %v4429_v57 }
  0x55   :  { %v129_v62 = vxor.u32 2147483648, %v4066_v1  ;;  %v3875_v41 = vadd.s32 4294967294, %v600_v23  ;;  %v777_v48 = vsel %vm775_vm15, %v765_v33, 2102212464  ;;  %v781_v52 = vsel %vm775_vm15, %v768_v61, 920167782 }
  0x56   :  { %v126_v54 = vxor.u32 2147483648, %v4068_v19  ;;  %v326_v56 = vsel %vm4375_vm10, %v4198_v11, %v323_v12  ;;  %vm534_vm5 = vcmp.lt.s32.totalorder %v4216_v32, 0  ;;  %vm773_vm6 = vcmp.lt.s32.totalorder %v4403_v17, 2 }
  0x57   :  { %v785_v43 = vsel %vm775_vm15, %v771_v15, 1326507024  ;;  %vm122_vm7 = vweird.f32 %v4194_v7  ;;  %vm3876_vm8 = vcmp.lt.s32.totalorder %v3875_v41, 0  ;;  %v780_v59 = vsel %vm772_vm3, %v759_v26, %v762_v28 }
  0x58   :  { %v782_v0 = vsel %vm774_vm4, %v765_v33, %v781_v52  ;;  %v784_v29 = vsel %vm772_vm3, %v762_v28, %v765_v33  ;;  %v603_v39 = vsel %vm3876_vm8, 0, %v3875_v41  ;;  %v776_v2 = vsel %vm772_vm3, %v756_v24, %v759_v26 }
  0x59   :  { %v778_v3 = vsel %vm774_vm4, %v762_v28, %v777_v48  ;;  %v786_v55 = vsel %vm774_vm4, %v768_v61, %v785_v43  ;;  %v130_v58 = vsel %vm128_vm12, %v129_v62, %v4068_v19  ;;  %v604_v5 = vsub.s32 32, %v603_v39 }
  0x5a   :  { %v605_v6 = vshll.u32 %v4406_v53, %v603_v39  ;;  %v618_v63 = vsub.s32 4, %v4384_v37  ;;  %v234_v12 = vsel %vm232_vm14, %v129_v62, %v4068_v19  ;;  %v608_v15 = vsub.s32 4294967266, %v603_v39 }
  0x5b   :  { %v783_v23 = vsel %vm773_vm6, %v780_v59, %v782_v0  ;;  %v787_v26 = vsel %vm773_vm6, %v784_v29, %v786_v55  ;;  %v127_v61 = vsel %vm125_vm11, %v4066_v1, %v126_v54  ;;  %v231_v28 = vsel %vm229_vm13, %v4066_v1, %v126_v54 }
  0x5c   :  { %v606_v33 = vshrl.u32 %v588_v13, %v604_v5  ;;  %v779_v53 = vsel %vm773_vm6, %v776_v2, %v778_v3  ;;  %v609_v24 = vadd.s32 127, %v608_v15  ;;  %v1011_v41 = vshrl.u32 %v1010_v18, 23  ;;  %v1005_v13 = vld [vmem:[%s6241_s1 + $0x3] sm:$0x1] }
  0x5d   :  { %v4488_v19 = vmul.u32.u64.low %v4426_v9, %v787_v26  ;;  %v4489_v62 = vmul.u32.u64.high %v4426_v9, %v787_v26, %v4488_v19  ;;  %4069 = vcosq.f32 %v326_v56  ;;  %vm4498_vm9 = vcmp.le.f32.partialorder %v532_v16, 0.7853982 }
  0x5e   :  { %v607_v48 = vor.u32 %v606_v33, %v605_v6  ;;  %v4492_v52 = vmul.u32.u64.low %v4426_v9, %v783_v23  ;;  %v4493_v43 = vmul.u32.u64.high %v4426_v9, %v783_v23, %v4492_v52  ;;  %4071 = vsinq.f32 %v326_v56 }
  0x5f   :  { %v610_v17 = vshll.u32 %v609_v24, 23  ;;  %v3889_v18 = vadd.s32 4294967169, %v1011_v41  ;;  %v131_v54 = vsel %vm124_vm1, %v127_v61, %v130_v58  ;;  %v235_v59 = vsel %vm228_vm2, %v231_v28, %v234_v12 }
  0x60   :  { %v619_v56 = vsel %vm534_vm5, %v618_v63, %v4384_v37  ;;  %v795_v16 = vmul.u32 %v4426_v9, %v779_v53  ;;  %v614_v29 = vcvt.s32.f32 %v607_v48  ;;  %vm797_vm10 = vc.u32 %v4489_v62, %v4492_v52 }
  0x61   :  { %v611_v0 = vor.u32 4788187, %v610_v17  ;;  %v1017_v39 = vadd.s32 1, %v3889_v18  ;;  %v4516_v2 = vand.u32 3, %v4401_v51  ;;  %v4519_v46 = vand.u32 3, %v4433_v10 }
  0x62   :  { %v798_v50 = vadd.s32 1, %v4493_v43  ;;  %v4522_v3 = vmul.f32 1.5707964, %v1005_v13  ;;  %v132_v37 = vsel %vm122_vm7, nan, %v131_v54  ;;  %v236_v9 = vsel %vm122_vm7, nan, %v235_v59 }
  0x63   :  { %v612_v55 = vand.u32 2147483647, %v611_v0  ;;  %vm1018_vm11 = vcmp.gt.s32.totalorder %v1017_v39, 0  ;;  %v621_v58 = vsel %vm4498_vm9, 0, %v619_v56  ;;  %v6243_v12 = vand.u32 2147483647, %v4429_v57 }
  0x64   :  { %v799_v51 = vsel %vm797_vm10, %v798_v50, %v4493_v43  ;;  %v1019_v5 = vsel %vm1018_vm11, %v1017_v39, 0  ;;  %vm336_vm12 = vcmp.eq.s32.totalorder %v4516_v2, 2  ;;  %vm440_vm13 = vcmp.eq.s32.totalorder %v4519_v46, 2 }
  0x65   :  { %v615_v6 = vmul.f32 %v614_v29, %v612_v55  ;;  %v800_v63 = vadd.s32 %v799_v51, %v795_v16  ;;  %v1021_v15 = vand.u32 31, %v1019_v5  ;;  %v4537_v7 = vrot.slane %v132_v37, %v4353_v35 }
  0x66   :  { %v4540_v23 = vrot.slane %v236_v9, %v4353_v35  ;;  %v4542_v26 = vand.u32 3, %v621_v58  ;;  %v728_v61 = vadd.s32 3, %v621_v58  ;;  %v1218_v53 = vand.u32 2139095040, %v4522_v3 }
  0x67   :  { %v801_v28 = vadd.s32 536870912, %v800_v63  ;;  %v1022_v33 = vsub.s32 32, %v1021_v15  ;;  %v4545_v24 = vpop.eup %4069  ;;  %v616_v19 = vxor.u32 2147483648, %v615_v6  ;;  %v1024_v41 = vshll.u32 %v6253_v34, %v1021_v15 }
  0x68   :  { %v1027_v48 = vshll.u32 %v6246_v36, %v1021_v15  ;;  %v1033_v43 = vshll.u32 %v6249_v40, %v1021_v15  ;;  %v4550_v17 = vpop.eup %4071  ;;  %v1014_v18 = vand.u32 8388607, %v6243_v12  ;;  %v4556_v54 = vshrl.u32 %v1019_v5, 5 }
  0x69   :  { %v4552_v13 = vshrl.u32 %v801_v28, 30  ;;  %v1025_v59 = vshrl.u32 %v6246_v36, %v1022_v33  ;;  %v1028_v56 = vshrl.u32 %v6251_v38, %v1022_v33  ;;  %v1030_v16 = vshll.u32 %v6251_v38, %v1021_v15 }
  0x6a   :  { %v1031_v0 = vshrl.u32 %v6249_v40, %v1022_v33  ;;  %v1034_v29 = vshrl.u32 %v6244_v42, %v1022_v33  ;;  %v337_v39 = vxor.u32 2147483648, %v4545_v24  ;;  %v1036_v37 = vshll.u32 %v6244_v42, %v1021_v15 }
  0x6b   :  { %v803_v50 = vshll.u32 %v4552_v13, 30  ;;  %v1219_v9 = vshrl.u32 %v1218_v53, 23  ;;  %vm333_vm14 = vcmp.eq.s32.totalorder %v4516_v2, 0  ;;  %vm437_vm15 = vcmp.eq.s32.totalorder %v4519_v46, 0 }
  0x6c   :  { %v617_v55 = vsel %vm534_vm5, %v616_v19, %v615_v6  ;;  %v1026_v58 = vor.u32 %v1025_v59, %v1024_v41  ;;  %v1029_v51 = vor.u32 %v1028_v56, %v1027_v48  ;;  %v1035_v5 = vor.u32 %v1034_v29, %v1033_v43 }
  0x6d   :  { %v4570_v28 = vsub.s32 %v800_v63, %v803_v50  ;;  %v1015_v12 = vor.u32 8388608, %v1014_v18  ;;  %v1037_v10 = vshrl.u32 %v6256_v49, %v1022_v33  ;;  %vm1039_vm1 = vcmp.lt.s32.totalorder %v4556_v54, 1 }
  0x6e   :  { %v334_v15 = vxor.u32 2147483648, %v4550_v17  ;;  %v4575_v53 = vand.u32 3, %v728_v61  ;;  %v1032_v42 = vor.u32 %v1031_v0, %v1030_v16  ;;  %vm1042_vm2 = vcmp.lt.s32.totalorder %v4556_v54, 4 }
  0x6f   :  { %vm332_vm3 = vcmp.lt.s32.totalorder %v4516_v2, 2  ;;  %vm436_vm4 = vcmp.lt.s32.totalorder %v4519_v46, 2  ;;  %v620_v6 = vsel %vm4498_vm9, %v4216_v32, %v617_v55  ;;  %vm742_vm5 = vcmp.lt.s32.totalorder %v4294_v27, 0 }
  0x70   :  { %v806_v63 = vsub.s32 0, %v4570_v28  ;;  %v1038_v19 = vor.u32 %v1037_v10, %v1036_v37  ;;  %vm1041_vm6 = vcmp.lt.s32.totalorder %v4556_v54, 3  ;;  %vm1040_vm7 = vcmp.lt.s32.totalorder %v4556_v54, 2 }
  0x71   :  { %v1047_v61 = vsel %vm1039_vm1, %v1026_v58, %v1029_v51  ;;  %v1048_v41 = vsel %vm1042_vm2, %v1035_v5, 920167782  ;;  %v3897_v48 = vadd.s32 4294967169, %v1219_v9  ;;  %v338_v1 = vsel %vm336_vm12, %v337_v39, %v4550_v17 }
  0x72   :  { %v442_v43 = vsel %vm440_vm13, %v337_v39, %v4550_v17  ;;  %v3882_v10 = vmin.u32 %v806_v63, %v4570_v28  ;;  %v4598_v18 = vshll.u32 %v1015_v12, 8  ;;  %vm330_vm8 = vweird.f32 %v4198_v11 }
  0x73   :  { %4073 = vcosq.f32 %v620_v6  ;;  %vm4603_vm9 = vcmp.le.f32.partialorder %v740_v8, 0.7853982  ;;  %v1023_v56 = vshrl.u32 %v6253_v34, %v1022_v33  ;;  %v1049_v16 = vsel %vm1041_vm6, %v1032_v42, %v1048_v41 }
  0x74   :  { %v1051_v17 = vsel %vm1039_vm1, %v1029_v51, %v1032_v42  ;;  %v808_v0 = vclz %v3882_v10  ;;  %v1044_v12 = vsel %vm1042_vm2, %v1032_v42, 2102212464  ;;  %v1050_v29 = vsel %vm1040_vm7, %v1047_v61, %v1049_v16 }
  0x75   :  { %v1052_v8 = vsel %vm1042_vm2, %v1038_v19, 1326507024  ;;  %4075 = vsinq.f32 %v620_v6  ;;  %v826_v39 = vsub.s32 4, %v4552_v13  ;;  %v1225_v50 = vadd.s32 1, %v3897_v48 }
  0x76   :  { %v1053_v33 = vsel %vm1041_vm6, %v1035_v5, %v1052_v8  ;;  %v3883_v37 = vadd.s32 4294967294, %v808_v0  ;;  %v4624_v55 = vmul.u32.u64.low %v4598_v18, %v1050_v29  ;;  %v4625_v42 = vmul.u32.u64.high %v4598_v18, %v1050_v29, %v4624_v55 }
  0x77   :  { %v1054_v9 = vsel %vm1040_vm7, %v1051_v17, %v1053_v33  ;;  %v1043_v63 = vsel %vm1039_vm1, %v1023_v56, %v1026_v58  ;;  %v1045_v6 = vsel %vm1041_vm6, %v1029_v51, %v1044_v12  ;;  %v335_v5 = vsel %vm333_vm14, %v4545_v24, %v334_v15 }
  0x78   :  { %v4633_v19 = vmul.u32.u64.low %v4598_v18, %v1054_v9  ;;  %v4634_v61 = vmul.u32.u64.high %v4598_v18, %v1054_v9, %v4633_v19  ;;  %v439_v41 = vsel %vm437_vm15, %v4545_v24, %v334_v15  ;;  %v796_v48 = vadd.s32 %v4492_v52, %v4489_v62 }
  0x79   :  { %vm3884_vm10 = vcmp.lt.s32.totalorder %v3883_v37, 0  ;;  %v4646_v58 = vmul.f32 %v4537_v7, %v4367_v21  ;;  %v827_v10 = vsel %vm742_vm5, %v826_v39, %v4552_v13  ;;  %vm630_vm11 = vcmp.eq.s32.totalorder %v4542_v26, 2 }
  0x7a   :  { %v811_v51 = vsel %vm3884_vm10, 0, %v3883_v37  ;;  %v1046_v62 = vsel %vm1040_vm7, %v1043_v63, %v1045_v6  ;;  %vm1226_vm12 = vcmp.gt.s32.totalorder %v1225_v50, 0  ;;  %v339_v52 = vsel %vm332_vm3, %v335_v5, %v338_v1 }
  0x7b   :  { %v812_v16 = vsub.s32 32, %v811_v51  ;;  %v813_v24 = vshll.u32 %v4570_v28, %v811_v51  ;;  %v443_v15 = vsel %vm436_vm4, %v439_v41, %v442_v43  ;;  %vm627_vm13 = vcmp.eq.s32.totalorder %v4542_v26, 0 }
  0x7c   :  { %v816_v13 = vsub.s32 4294967266, %v811_v51  ;;  %v6248_v17 = vand.u32 2147483647, %v4522_v3  ;;  %v4669_v54 = vmul.f32 %v4540_v23, %v4367_v21  ;;  %vm734_vm14 = vcmp.eq.s32.totalorder %v4575_v53, 2 }
  0x7d   :  { %v814_v2 = vshrl.u32 %v796_v48, %v812_v16  ;;  %v829_v46 = vsel %vm4603_vm9, 0, %v827_v10  ;;  %v4674_v28 = vpop.eup %4073  ;;  %v1062_v43 = vmul.u32 %v4598_v18, %v1046_v62  ;;  %vm1064_vm15 = vc.u32 %v4634_v61, %v4624_v55 }
  0x7e   :  { %v817_v1 = vadd.s32 127, %v816_v13  ;;  %v1227_v29 = vsel %vm1226_vm12, %v1225_v50, 0  ;;  %v4682_v8 = vsel %vm330_vm8, nan, %v339_v52  ;;  %v4686_v39 = vsel %vm330_vm8, nan, %v443_v15  ;;  %v4723_v52 = vld [vmem:[%s6241_s1 + $0x3] sm:$0x1] }
  0x7f   :  { %v815_v33 = vor.u32 %v814_v2, %v813_v24  ;;  %v1065_v37 = vadd.s32 1, %v4625_v42  ;;  %v4689_v9 = vpop.eup %4075  ;;  %v936_v50 = vadd.s32 3, %v829_v46  ;;  %v4697_v6 = vand.u32 8388607, %v6248_v17  ;;  %6269 = vst [vmem:[#allocation2_spill] sm:$0xff] %v4723_v52 }
  0x80   :  { %v818_v63 = vshll.u32 %v817_v1, 23  ;;  %v631_v5 = vxor.u32 2147483648, %v4674_v28  ;;  %v1229_v48 = vand.u32 31, %v1227_v29  ;;  %vm731_vm1 = vcmp.eq.s32.totalorder %v4575_v53, 0 }
  0x81   :  { %v4663_v0 = vpop.permute.xlu0 %447  ;;  %v1066_v41 = vsel %vm1064_vm15, %v1065_v37, %v4625_v42  ;;  %v822_v10 = vcvt.s32.f32 %v815_v33  ;;  %v524_v42 = vrot.slane %v4686_v39, %v4353_v35  ;;  %v628_v62 = vxor.u32 2147483648, %v4689_v9 }
  0x82   :  { %v4665_v12 = vpop.permute.xlu1 %463  ;;  %v454_v18 = vmul.f32 %v453_v30, %v4663_v0  ;;  %v819_v51 = vor.u32 4788187, %v818_v63  ;;  %v1067_v16 = vadd.s32 %v1066_v41, %v1062_v43  ;;  %v4726_v1 = vmul.f32 1.5707964, %v4723_v52 }
  0x83   :  { %v470_v11 = vmul.f32 %v469_v44, %v4665_v12  ;;  %v519_v44 = vrot.slane %v4682_v8, %v4353_v35  ;;  %v4730_v43 = vand.u32 3, %v936_v50  ;;  %v1223_v8 = vor.u32 8388608, %v4697_v6 }
  0x84   :  { %v820_v13 = vand.u32 2147483647, %v819_v51  ;;  %v1068_v2 = vadd.s32 536870912, %v1067_v16  ;;  %v4733_v39 = vsub.s32 32, %v1229_v48  ;;  %vm626_vm2 = vcmp.lt.s32.totalorder %v4542_v26, 2 }
  0x85   :  { %v4699_v19 = vpop.permute.xlu0 %457  ;;  %v629_v6 = vsel %vm627_vm13, %v4674_v28, %v628_v62  ;;  %vm730_vm3 = vcmp.lt.s32.totalorder %v4575_v53, 2  ;;  %v736_v41 = vsel %vm734_vm14, %v631_v5, %v4689_v9  ;;  %vm624_vm4 = vweird.f32 %v4216_v32 }
  0x86   :  { %v460_v30 = vadd.f32 %v4699_v19, %v454_v18  ;;  %v632_v18 = vsel %vm630_vm11, %v631_v5, %v4689_v9  ;;  %v823_v63 = vmul.f32 %v822_v10, %v820_v13  ;;  %v1233_v13 = vshrl.u32 %v6246_v36, %v4733_v39 }
  0x87   :  { %v4707_v4 = vpop.permute.xlu1 %473  ;;  %v1238_v9 = vshll.u32 %v6251_v38, %v1229_v48  ;;  %v1236_v21 = vshrl.u32 %v6251_v38, %v4733_v39  ;;  %v1063_v26 = vadd.s32 %v4624_v55, %v4634_v61  ;;  %vm1009_vm13 = vcmp.lt.s32.totalorder %v4429_v57, 0 }
  0x88   :  { %v480_v24 = vmul.f32 %v479_v14, %v4707_v4  ;;  %v471_v15 = vadd.f32 %v470_v11, %v460_v30  ;;  %v4728_v14 = vand.u32 3, %v829_v46  ;;  %v4741_v11 = vshrl.u32 %v1068_v2, 30 }
  0x89   :  { %v4756_v30 = vshrl.u32 %v1227_v29, 5  ;;  %v824_v10 = vxor.u32 2147483648, %v823_v63  ;;  %v1235_v2 = vshll.u32 %v6246_v36, %v1229_v48  ;;  %v6270_v36 = vmov 920167782  }
  0x8a   :  { %v4735_v33 = vpop.permute.xlu0 %483  ;;  %v481_v37 = vadd.f32 %v480_v24, %v471_v15  ;;  %v1232_v24 = vshll.u32 %v6253_v34, %v1229_v48  ;;  %v1242_v17 = vshrl.u32 %v6270_v36, %v4733_v39  ;;  %vm835_vm8 = vcmp.eq.s32.totalorder %v4728_v14, 0 }
  0x8b   :  { %v490_v50 = vmul.f32 %v489_v45, %v4735_v33  ;;  %v1070_v45 = vshll.u32 %v4741_v11, 30  ;;  %v825_v29 = vsel %vm742_vm5, %v824_v10, %v823_v63  ;;  %v1244_v63 = vshll.u32 %v6270_v36, %v1229_v48 }
  0x8c   :  { %v4743_v46 = vpop.permute.xlu1 %493  ;;  %v1245_v10 = vshrl.u32 %v6256_v49, %v4733_v39  ;;  %vm1247_vm5 = vcmp.lt.s32.totalorder %v4756_v30, 1  ;;  %vm1250_vm6 = vcmp.lt.s32.totalorder %v4756_v30, 4  ;;  %vm1249_vm7 = vcmp.lt.s32.totalorder %v4756_v30, 3 }
  0x8d   :  { %v500_v51 = vmul.f32 %v499_v47, %v4743_v46  ;;  %v491_v15 = vadd.f32 %v490_v50, %v481_v37  ;;  %v4770_v5 = vsub.s32 %v1067_v16, %v1070_v45  ;;  %v1239_v47 = vshrl.u32 %v6249_v40, %v4733_v39 }
  0x8e   :  { %v828_v37 = vsel %vm4603_vm9, %v4294_v27, %v825_v29  ;;  %v1241_v50 = vshll.u32 %v6249_v40, %v1229_v48  ;;  %v733_v45 = vsel %vm731_vm1, %v4674_v28, %v628_v62  ;;  %v1234_v29 = vor.u32 %v1233_v13, %v1232_v24 }
  0x8f   :  { %v501_v56 = vadd.f32 %v500_v51, %v491_v15  ;;  %4077 = vcosq.f32 %v828_v37  ;;  %v1073_v16 = vsub.s32 0, %v4770_v5  ;;  %v1237_v40 = vor.u32 %v1236_v21, %v1235_v2 }
  0x90   :  { %4079 = vsinq.f32 %v828_v37  ;;  %v1240_v38 = vor.u32 %v1239_v47, %v1238_v9  ;;  %v1243_v52 = vor.u32 %v1242_v17, %v1241_v50  ;;  %v1246_v49 = vor.u32 %v1245_v10, %v1244_v63 }
  0x91   :  { %v511_v51 = vmul.f32 %v4540_v23, %v501_v56  ;;  %v514_v59 = vmul.f32 %v4537_v7, %v501_v56  ;;  %v3890_v15 = vmin.u32 %v1073_v16, %v4770_v5  ;;  %v4797_v7 = vshll.u32 %v1223_v8, 8 }
  0x92   :  { %v633_v62 = vsel %vm626_vm2, %v629_v6, %v632_v18  ;;  %vm838_vm9 = vcmp.eq.s32.totalorder %v4728_v14, 2  ;;  %vm1248_vm10 = vcmp.lt.s32.totalorder %v4756_v30, 2  ;;  %v1259_v53 = vsel %vm1247_vm5, %v1237_v40, %v1240_v38 }
  0x93   :  { %v512_v34 = vsub.f32 %v4646_v58, %v511_v51  ;;  %v515_v48 = vadd.f32 %v514_v59, %v4669_v54  ;;  %v1075_v23 = vclz %v3890_v15  ;;  %v737_v58 = vsel %vm730_vm3, %v733_v45, %v736_v41 }
  0x94   :  { %v1255_v54 = vsel %vm1247_vm5, %v1234_v29, %v1237_v40  ;;  %v1260_v6 = vsel %vm1250_vm6, %v1246_v49, 1326507024  ;;  %vm834_vm12 = vcmp.lt.s32.totalorder %v4728_v14, 2  ;;  %v1252_v61 = vsel %vm1250_vm6, %v1240_v38, 2102212464 }
  0x95   :  { %v520_v56 = vmul.f32 %v519_v44, %v512_v34  ;;  %v525_v28 = vmul.f32 %v524_v42, %v515_v48  ;;  %v3891_v17 = vadd.s32 4294967294, %v1075_v23  ;;  %v1256_v44 = vsel %vm1250_vm6, %v1243_v52, 920167782 }
  0x96   :  { %v6271_v42 = vmov 683565275   ;;  %v1257_v18 = vsel %vm1249_vm7, %v1240_v38, %v1256_v44  ;;  %v1261_v41 = vsel %vm1249_vm7, %v1243_v52, %v1260_v6  ;;  %vm938_vm14 = vcmp.lt.s32.totalorder %v4730_v43, 2 }
  0x97   :  { %v526_v34 = vadd.f32 %v525_v28, %v520_v56  ;;  %vm3892_vm11 = vcmp.lt.s32.totalorder %v3891_v17, 0  ;;  %v1231_v8 = vshrl.u32 %v6271_v42, %v4733_v39  ;;  %v1258_v39 = vsel %vm1248_vm10, %v1255_v54, %v1257_v18 }
  0x98   :  { %v1078_v55 = vsel %vm3892_vm11, 0, %v3891_v17  ;;  %v1262_v9 = vsel %vm1248_vm10, %v1259_v53, %v1261_v41  ;;  %v634_v38 = vsel %vm624_vm4, nan, %v633_v62  ;;  %v1485_v52 = vand.u32 2139095040, %v4726_v1 }
  0x99   :  { %527 = vst.msk [vmem:[%s6242_s5] sm:$0xf] %vm24_vm0, %v526_v34  ;;  %v4078_v49 = vpop.eup %4077  ;;  %v1079_v24 = vsub.s32 32, %v1078_v55  ;;  %v1080_v13 = vshll.u32 %v4770_v5, %v1078_v55  ;;  %v1083_v2 = vsub.s32 4294967266, %v1078_v55  ;;  %v1251_v63 = vsel %vm1247_vm5, %v1231_v8, %v1234_v29 }
  0x9a   :  { %v4080_v21 = vpop.eup %4079  ;;  %v4840_v47 = vmul.u32.u64.low %v4797_v7, %v1262_v9  ;;  %v4841_v37 = vmul.u32.u64.high %v4797_v7, %v1262_v9, %v4840_v47  ;;  %v1253_v5 = vsel %vm1249_vm7, %v1237_v40, %v1252_v61  ;;  %vm832_vm15 = vweird.f32 %v4294_v27 }
  0x9b   :  { %v1081_v50 = vshrl.u32 %v1063_v26, %v1079_v24  ;;  %v1084_v16 = vadd.s32 127, %v1083_v2  ;;  %v836_v10 = vxor.u32 2147483648, %v4080_v21  ;;  %v839_v51 = vxor.u32 2147483648, %v4078_v49 }
  0x9c   :  { %v4850_v59 = vmul.u32.u64.low %v4797_v7, %v1258_v39  ;;  %v4851_v45 = vmul.u32.u64.high %v4797_v7, %v1258_v39, %v4850_v59  ;;  %v6272_v15 = vrot.slane %v4209_v25, %v4353_v35  ;;  %v6273_v23 = vand.u32 2147483647, %v4429_v57 }
  0x9d   :  { %v1082_v40 = vor.u32 %v1081_v50, %v1080_v13  ;;  %v1085_v56 = vshll.u32 %v1084_v16, 23  ;;  %v1093_v28 = vsub.s32 4, %v4741_v11  ;;  %v738_v62 = vsel %vm624_vm4, nan, %v737_v58 }
  0x9e   :  { %v951_v48 = vmul.f32 %v6272_v15, %v4663_v0  ;;  %vm4860_vm1 = vcmp.le.f32.partialorder %v6273_v23, 0.7853982  ;;  %vm939_vm2 = vcmp.eq.s32.totalorder %v4730_v43, 0  ;;  %vm942_vm3 = vcmp.eq.s32.totalorder %v4730_v43, 2 }
  0x9f   :  { %v980_v25 = vrot.slane %v634_v38, %v4353_v35  ;;  %v1086_v34 = vor.u32 4788187, %v1085_v56  ;;  %v1254_v26 = vsel %vm1248_vm10, %v1251_v63, %v1253_v5  ;;  %v1486_v44 = vshrl.u32 %v1485_v52, 23 }
  0xa0   :  { %v528_v17 = vld [vmem:[%s6242_s5] sm:$0xf]  ;;  %v952_v54 = vadd.f32 %v951_v48, %v4699_v19  ;;  %v837_v32 = vsel %vm835_vm8, %v4078_v49, %v836_v10  ;;  %v840_v58 = vsel %vm838_vm9, %v839_v51, %v4080_v21  ;;  %v941_v18 = vsel %vm939_vm2, %v4078_v49, %v836_v10 }
  0xa1   :  { %v956_v53 = vrot.slane %v528_v17, %v4353_v35  ;;  %v962_v8 = vrot.slane %v528_v17, %v4360_v20  ;;  %v944_v6 = vsel %vm942_vm3, %v839_v51, %v4080_v21  ;;  %v1089_v55 = vcvt.s32.f32 %v1082_v40 }
  0xa2   :  { %v1094_v61 = vsel %vm1009_vm13, %v1093_v28, %v4741_v11  ;;  %v968_v39 = vrot.slane %v528_v17, %v4362_v31  ;;  %v1270_v41 = vmul.u32 %v4797_v7, %v1254_v26  ;;  %vm1272_vm4 = vc.u32 %v4841_v37, %v4850_v59 }
  0xa3   :  { %v957_v30 = vmul.f32 %v956_v53, %v4665_v12  ;;  %v841_v24 = vsel %vm834_vm12, %v837_v32, %v840_v58  ;;  %v1087_v13 = vand.u32 2147483647, %v1086_v34  ;;  %v1273_v49 = vadd.s32 1, %v4851_v45 }
  0xa4   :  { %v3905_v2 = vadd.s32 4294967169, %v1486_v44  ;;  %v945_v9 = vsel %vm938_vm14, %v941_v18, %v944_v6  ;;  %v963_v21 = vmul.f32 %v962_v8, %v4707_v4  ;;  %v974_v38 = vrot.slane %v528_v17, %v4369_v22  ;;  %v1480_v44 = vld [vmem:[%s6241_s1 + $0x4] sm:$0x1] }
  0xa5   :  { %v958_v11 = vadd.f32 %v957_v30, %v952_v54  ;;  %v985_v7 = vrot.slane %v738_v62, %v4353_v35  ;;  %v1090_v47 = vmul.f32 %v1089_v55, %v1087_v13  ;;  %v1274_v52 = vsel %vm1272_vm4, %v1273_v49, %v4851_v45 }
  0xa6   :  { %v1492_v50 = vadd.s32 1, %v3905_v2  ;;  %v969_v16 = vmul.f32 %v968_v39, %v4735_v33  ;;  %v1096_v63 = vsel %vm4860_vm1, 0, %v1094_v61  ;;  %v1275_v5 = vadd.s32 %v1274_v52, %v1270_v41 }
  0xa7   :  { %v964_v14 = vadd.f32 %v963_v21, %v958_v11  ;;  %v842_v43 = vsel %vm832_vm15, nan, %v841_v24  ;;  %v946_v10 = vsel %vm832_vm15, nan, %v945_v9  ;;  %v1091_v51 = vxor.u32 2147483648, %v1090_v47 }
  0xa8   :  { %vm1493_vm5 = vcmp.gt.s32.totalorder %v1492_v50, 0  ;;  %v975_v48 = vmul.f32 %v974_v38, %v4743_v46  ;;  %v1276_v45 = vadd.s32 536870912, %v1275_v5  ;;  %v981_v40 = vmul.f32 %v980_v25, %v528_v17 }
  0xa9   :  { %v970_v15 = vadd.f32 %v969_v16, %v964_v14  ;;  %v1494_v23 = vsel %vm1493_vm5, %v1492_v50, 0  ;;  %v1092_v56 = vsel %vm1009_vm13, %v1091_v51, %v1090_v47  ;;  %v1203_v28 = vadd.s32 3, %v1096_v63 }
  0xaa   :  { %v1482_v62 = vand.u32 2147483647, %v4726_v1  ;;  %v988_v34 = vmul.f32 %v985_v7, %v528_v17  ;;  %v1095_v27 = vsel %vm4860_vm1, %v4429_v57, %v1092_v56  ;;  %v1277_v26 = vshrl.u32 %v1276_v45, 30 }
  0xab   :  { %v976_v54 = vadd.f32 %v975_v48, %v970_v15  ;;  %v994_v32 = vrot.slane %v842_v43, %v4353_v35  ;;  %v999_v58 = vrot.slane %v946_v10, %v4353_v35  ;;  %4081 = vcosq.f32 %v1095_v27 }
  0xac   :  { %v1496_v53 = vand.u32 31, %v1494_v23  ;;  %4083 = vsinq.f32 %v1095_v27  ;;  %v1278_v6 = vshll.u32 %v1277_v26, 30  ;;  %v4918_v17 = vand.u32 3, %v1096_v63 }
  0xad   :  { %v986_v8 = vmul.f32 %v985_v7, %v976_v54  ;;  %v989_v18 = vmul.f32 %v980_v25, %v976_v54  ;;  %v1489_v29 = vand.u32 8388607, %v1482_v62  ;;  %v4922_v55 = vmul.f32 1.5707964, %v1480_v44 }
  0xae   :  { %v4924_v39 = vsub.s32 %v1275_v5, %v1278_v6  ;;  %v4926_v41 = vand.u32 3, %v1203_v28  ;;  %v6276_v24 = vand.u32 2147483647, %v4522_v3  ;;  %vm1217_vm7 = vcmp.lt.s32.totalorder %v4522_v3, 0 }
  0xaf   :  { %v987_v61 = vsub.f32 %v981_v40, %v986_v8  ;;  %v990_v30 = vadd.f32 %v989_v18, %v988_v34  ;;  %v1497_v25 = vsub.s32 32, %v1496_v53  ;;  %v6279_v11 = vrot.slane %v4414_v60, %v4353_v35 }
  0xb0   :  { %vm4930_vm6 = vcmp.le.f32.partialorder %v6276_v24, 0.7853982  ;;  %v1281_v9 = vsub.s32 0, %v4924_v39  ;;  %vm1102_vm8 = vcmp.eq.s32.totalorder %v4918_v17, 0  ;;  %vm1105_vm9 = vcmp.eq.s32.totalorder %v4918_v17, 2 }
  0xb1   :  { %v995_v49 = vmul.f32 %v994_v32, %v987_v61  ;;  %v1000_v2 = vmul.f32 %v999_v58, %v990_v30  ;;  %v1426_v21 = vmul.f32 %v6279_v11, %v4663_v0  ;;  %v1301_v38 = vsub.s32 4, %v1277_v26 }
  0xb2   :  { %v1490_v7 = vor.u32 8388608, %v1489_v29  ;;  %v1693_v47 = vand.u32 2139095040, %v4922_v55  ;;  %v3898_v50 = vmin.u32 %v1281_v9, %v4924_v39  ;;  %v1499_v14 = vshll.u32 %v6271_v42, %v1496_v53 }
  0xb3   :  { %v1001_v52 = vadd.f32 %v1000_v2, %v995_v49  ;;  %v6280_v16 = vmov 2475754826   ;;  %vm1209_vm10 = vcmp.eq.s32.totalorder %v4926_v41, 2  ;;  %v6281_v5 = vmov 2131351028  }
  0xb4   :  { %v1502_v63 = vshll.u32 %v6280_v16, %v1496_v53  ;;  %v1500_v60 = vshrl.u32 %v6280_v16, %v1497_v25  ;;  %v1503_v43 = vshrl.u32 %v6281_v5, %v1497_v25  ;;  %v1505_v10 = vshll.u32 %v6281_v5, %v1496_v53 }
  0xb5   :  { %v6282_v51 = vmov 2102212464   ;;  %1002 = vst.msk [vmem:[%s6242_s5] sm:$0xf] %vm24_vm0, %v1001_v52  ;;  %vm1101_vm11 = vcmp.lt.s32.totalorder %v4918_v17, 2  ;;  %vm1206_vm12 = vcmp.eq.s32.totalorder %v4926_v41, 0  ;;  %v1271_v48 = vadd.s32 %v4850_v59, %v4841_v37  ;;  %v4082_v28 = vpop.eup %4081 }
  0xb6   :  { %v1506_v15 = vshrl.u32 %v6282_v51, %v1497_v25  ;;  %v1283_v45 = vclz %v3898_v50  ;;  %v1427_v40 = vadd.f32 %v1426_v21, %v4699_v19  ;;  %v4960_v56 = vshrl.u32 %v1494_v23, 5  ;;  %v4084_v32 = vpop.eup %4083 }
  0xb7   :  { %v1302_v54 = vsel %vm1217_vm7, %v1301_v38, %v1277_v26  ;;  %v4964_v34 = vshll.u32 %v1490_v7, 8  ;;  %v1690_v27 = vand.u32 2147483647, %v4922_v55  ;;  %v1694_v44 = vshrl.u32 %v1693_v47, 23 }
  0xb8   :  { %v3899_v58 = vadd.s32 4294967294, %v1283_v45  ;;  %v1498_v8 = vshrl.u32 %v6271_v42, %v1497_v25  ;;  %v1508_v37 = vshll.u32 %v6282_v51, %v1496_v53  ;;  %v1509_v59 = vshrl.u32 %v6270_v36, %v1497_v25 }
  0xb9   :  { %v1106_v18 = vxor.u32 2147483648, %v4082_v28  ;;  %v1501_v23 = vor.u32 %v1500_v60, %v1499_v14  ;;  %v1504_v6 = vor.u32 %v1503_v43, %v1502_v63  ;;  %v1507_v29 = vor.u32 %v1506_v15, %v1505_v10 }
  0xba   :  { %v1103_v61 = vxor.u32 2147483648, %v4084_v32  ;;  %vm3900_vm13 = vcmp.lt.s32.totalorder %v3899_v58, 0  ;;  %v1304_v26 = vsel %vm4930_vm6, 0, %v1302_v54  ;;  %vm1517_vm14 = vcmp.lt.s32.totalorder %v4960_v56, 4 }
  0xbb   :  { %vm1205_vm15 = vcmp.lt.s32.totalorder %v4926_v41, 2  ;;  %v1286_v30 = vsel %vm3900_vm13, 0, %v3899_v58  ;;  %v1511_v24 = vshll.u32 %v6270_v36, %v1496_v53  ;;  %v6283_v49 = vmov 1326507024  }
  0xbc   :  { %v1512_v2 = vshrl.u32 %v6283_v49, %v1497_v25  ;;  %v1519_v9 = vsel %vm1517_vm14, %v1507_v29, 2102212464  ;;  %vm1099_vm1 = vweird.f32 %v4429_v57  ;;  %v1287_v11 = vsub.s32 32, %v1286_v30  ;;  %v4984_v7 = vld [vmem:[%s6242_s5] sm:$0xf] }
  0xbd   :  { %v1288_v21 = vshll.u32 %v4924_v39, %v1286_v30  ;;  %v1510_v38 = vor.u32 %v1509_v59, %v1508_v37  ;;  %vm1514_vm2 = vcmp.lt.s32.totalorder %v4960_v56, 1  ;;  %v1107_v53 = vsel %vm1105_vm9, %v1106_v18, %v4084_v32 }
  0xbe   :  { %v1291_v25 = vsub.s32 4294967266, %v1286_v30  ;;  %vm1516_vm3 = vcmp.lt.s32.totalorder %v4960_v56, 3  ;;  %v1518_v47 = vsel %vm1514_vm2, %v1498_v8, %v1501_v23  ;;  %v1104_v39 = vsel %vm1102_vm8, %v4082_v28, %v1103_v61 }
  0xbf   :  { %v1289_v52 = vshrl.u32 %v1271_v48, %v1287_v11  ;;  %v1431_v50 = vrot.slane %v4984_v7, %v4353_v35  ;;  %v1520_v14 = vsel %vm1516_vm3, %v1504_v6, %v1519_v9  ;;  %v1513_v60 = vor.u32 %v1512_v2, %v1511_v24 }
  0xc0   :  { %v1292_v63 = vadd.s32 127, %v1291_v25  ;;  %vm1515_vm4 = vcmp.lt.s32.totalorder %v4960_v56, 2  ;;  %v1522_v43 = vsel %vm1514_vm2, %v1501_v23, %v1504_v6  ;;  %v1211_v10 = vsel %vm1209_vm10, %v1106_v18, %v4084_v32 }
  0xc1   :  { %v1290_v15 = vor.u32 %v1289_v52, %v1288_v21  ;;  %v1432_v45 = vmul.f32 %v1431_v50, %v4665_v12  ;;  %v1437_v48 = vrot.slane %v4984_v7, %v4360_v20  ;;  %v1108_v54 = vsel %vm1101_vm11, %v1104_v39, %v1107_v53 }
  0xc2   :  { %v1208_v58 = vsel %vm1206_vm12, %v4082_v28, %v1103_v61  ;;  %v1293_v8 = vshll.u32 %v1292_v63, 23  ;;  %v1521_v37 = vsel %vm1515_vm4, %v1518_v47, %v1520_v14  ;;  %v1443_v32 = vrot.slane %v4984_v7, %v4362_v31 }
  0xc3   :  { %v1297_v59 = vcvt.s32.f32 %v1290_v15  ;;  %v1523_v18 = vsel %vm1517_vm14, %v1510_v38, 920167782  ;;  %v1526_v23 = vsel %vm1514_vm2, %v1504_v6, %v1507_v29  ;;  %v1433_v17 = vadd.f32 %v1432_v45, %v1427_v40 }
  0xc4   :  { %v1294_v30 = vor.u32 4788187, %v1293_v8  ;;  %v1524_v24 = vsel %vm1516_vm3, %v1507_v29, %v1523_v18  ;;  %v1527_v28 = vsel %vm1517_vm14, %v1513_v60, 1326507024  ;;  %v1438_v61 = vmul.f32 %v1437_v48, %v4707_v4 }
  0xc5   :  { %v1525_v2 = vsel %vm1515_vm4, %v1522_v43, %v1524_v24  ;;  %v1528_v9 = vsel %vm1516_vm3, %v1510_v38, %v1527_v28  ;;  %v3913_v11 = vadd.s32 4294967169, %v1694_v44  ;;  %v1212_v29 = vsel %vm1205_vm15, %v1208_v58, %v1211_v10 }
  0xc6   :  { %v1295_v21 = vand.u32 2147483647, %v1294_v30  ;;  %v1529_v6 = vsel %vm1515_vm4, %v1526_v23, %v1528_v9  ;;  %v5029_v40 = vmul.u32.u64.low %v4964_v34, %v1525_v2  ;;  %v5030_v53 = vmul.u32.u64.high %v4964_v34, %v1525_v2, %v5029_v40 }
  0xc7   :  { %v1411_v25 = vadd.s32 3, %v1304_v26  ;;  %v5036_v47 = vmul.u32.u64.low %v4964_v34, %v1529_v6  ;;  %v5037_v39 = vmul.u32.u64.high %v4964_v34, %v1529_v6, %v5036_v47  ;;  %v1109_v44 = vsel %vm1099_vm1, nan, %v1108_v54 }
  0xc8   :  { %v1298_v38 = vmul.f32 %v1297_v59, %v1295_v21  ;;  %v1439_v52 = vadd.f32 %v1438_v61, %v1433_v17  ;;  %v1700_v56 = vadd.s32 1, %v3913_v11  ;;  %v5041_v50 = vand.u32 3, %v1304_v26 }
  0xc9   :  { %v1449_v14 = vrot.slane %v4984_v7, %v4369_v22  ;;  %v1537_v63 = vmul.u32 %v4964_v34, %v1521_v37  ;;  %v1697_v41 = vand.u32 8388607, %v1690_v27  ;;  %v1444_v43 = vmul.f32 %v1443_v32, %v4735_v33 }
  0xca   :  { %v1299_v60 = vxor.u32 2147483648, %v1298_v38  ;;  %v1540_v10 = vadd.s32 1, %v5030_v53  ;;  %vm1701_vm5 = vcmp.gt.s32.totalorder %v1700_v56, 0  ;;  %v1213_v15 = vsel %vm1099_vm1, nan, %v1212_v29 }
  0xcb   :  { %v5052_v45 = vand.u32 3, %v1411_v25  ;;  %v1455_v26 = vrot.slane %v1109_v44, %v4353_v35  ;;  %vm1539_vm8 = vc.u32 %v5037_v39, %v5029_v40  ;;  %v1445_v48 = vadd.f32 %v1444_v43, %v1439_v52 }
  0xcc   :  { %v1300_v34 = vsel %vm1217_vm7, %v1299_v60, %v1298_v38  ;;  %v1541_v54 = vsel %vm1539_vm8, %v1540_v10, %v5030_v53  ;;  %v1702_v58 = vsel %vm1701_vm5, %v1700_v56, 0  ;;  %v1450_v37 = vmul.f32 %v1449_v14, %v4743_v46  ;;  %v5094_v38 = vld [vmem:[%s6241_s1 + $0x4] sm:$0x1] }
  0xcd   :  { %v1303_v8 = vsel %vm4930_vm6, %v4522_v3, %v1300_v34  ;;  %v1542_v57 = vadd.s32 %v1541_v54, %v1537_v63  ;;  %v1704_v59 = vand.u32 31, %v1702_v58  ;;  %v1460_v32 = vrot.slane %v1213_v15, %v4353_v35 }
  0xce   :  { %4085 = vcosq.f32 %v1303_v8  ;;  %v1698_v23 = vor.u32 8388608, %v1697_v41  ;;  %vm1313_vm7 = vcmp.eq.s32.totalorder %v5041_v50, 2  ;;  %vm1417_vm9 = vcmp.eq.s32.totalorder %v5052_v45, 2 }
  0xcf   :  { %4087 = vsinq.f32 %v1303_v8  ;;  %v1543_v18 = vadd.s32 536870912, %v1542_v57  ;;  %v1451_v30 = vadd.f32 %v1450_v37, %v1445_v48  ;;  %v5068_v17 = vmul.f32 %v1455_v26, %v4984_v7 }
  0xd0   :  { %v5070_v13 = vshrl.u32 %v1702_v58, 5  ;;  %v1705_v24 = vsub.s32 32, %v1704_v59  ;;  %vm1310_vm6 = vcmp.eq.s32.totalorder %v5041_v50, 0  ;;  %vm1414_vm10 = vcmp.eq.s32.totalorder %v5052_v45, 0 }
  0xd1   :  { %v5074_v28 = vshrl.u32 %v1543_v18, 30  ;;  %v1707_v61 = vshll.u32 %v6271_v42, %v1704_v59  ;;  %v1713_v2 = vshll.u32 %v6281_v5, %v1704_v59  ;;  %v1716_v9 = vshll.u32 %v6282_v51, %v1704_v59 }
  0xd2   :  { %vm1309_vm11 = vcmp.lt.s32.totalorder %v5041_v50, 2  ;;  %vm1413_vm12 = vcmp.lt.s32.totalorder %v5052_v45, 2  ;;  %v1708_v11 = vshrl.u32 %v6280_v16, %v1705_v24  ;;  %v1710_v21 = vshll.u32 %v6280_v16, %v1704_v59 }
  0xd3   :  { %v1711_v6 = vshrl.u32 %v6281_v5, %v1705_v24  ;;  %v1714_v53 = vshrl.u32 %v6282_v51, %v1705_v24  ;;  %vm1307_vm13 = vweird.f32 %v4522_v3  ;;  %v1463_v29 = vmul.f32 %v1460_v32, %v4984_v7 }
  0xd4   :  { %v1545_v25 = vshll.u32 %v5074_v28, 30  ;;  %v1717_v47 = vshrl.u32 %v6270_v36, %v1705_v24  ;;  %v5089_v44 = vshll.u32 %v1698_v23, 8  ;;  %v1461_v52 = vmul.f32 %v1460_v32, %v1451_v30 }
  0xd5   :  { %v1464_v56 = vmul.f32 %v1455_v26, %v1451_v30  ;;  %v1719_v14 = vshll.u32 %v6270_v36, %v1704_v59  ;;  %v5098_v63 = vmul.f32 1.5707964, %v5094_v38  ;;  %v1715_v7 = vor.u32 %v1714_v53, %v1713_v2 }
  0xd6   :  { %v5100_v41 = vsub.s32 %v1542_v57, %v1545_v25  ;;  %v1718_v60 = vor.u32 %v1717_v47, %v1716_v9  ;;  %v1720_v43 = vshrl.u32 %v6283_v49, %v1705_v24  ;;  %v1706_v10 = vshrl.u32 %v6271_v42, %v1705_v24 }
  0xd7   :  { %v1709_v15 = vor.u32 %v1708_v11, %v1707_v61  ;;  %v1712_v34 = vor.u32 %v1711_v6, %v1710_v21  ;;  %vm1725_vm14 = vcmp.lt.s32.totalorder %v5070_v13, 4  ;;  %v1538_v26 = vadd.s32 %v5029_v40, %v5037_v39 }
  0xd8   :  { %v1548_v48 = vsub.s32 0, %v5100_v41  ;;  %vm1722_vm15 = vcmp.lt.s32.totalorder %v5070_v13, 1  ;;  %v1727_v54 = vsel %vm1725_vm14, %v1715_v7, 2102212464  ;;  %v4086_v58 = vpop.eup %4085  ;;  %v1462_v8 = vsub.f32 %v5068_v17, %v1461_v52 }
  0xd9   :  { %v1465_v57 = vadd.f32 %v1464_v56, %v1463_v29  ;;  %vm1724_vm1 = vcmp.lt.s32.totalorder %v5070_v13, 3  ;;  %v1731_v37 = vsel %vm1725_vm14, %v1718_v60, 920167782  ;;  %v4088_v59 = vpop.eup %4087  ;;  %v1314_v32 = vxor.u32 2147483648, %v4086_v58 }
  0xda   :  { %v3906_v40 = vmin.u32 %v1548_v48, %v5100_v41  ;;  %v1721_v39 = vor.u32 %v1720_v43, %v1719_v14  ;;  %vm1723_vm2 = vcmp.lt.s32.totalorder %v5070_v13, 2  ;;  %v1311_v18 = vxor.u32 2147483648, %v4088_v59 }
  0xdb   :  { %v1726_v23 = vsel %vm1722_vm15, %v1706_v10, %v1709_v15  ;;  %v1728_v30 = vsel %vm1724_vm1, %v1712_v34, %v1727_v54  ;;  %v1730_v17 = vsel %vm1722_vm15, %v1709_v15, %v1712_v34  ;;  %v1315_v24 = vsel %vm1313_vm7, %v1314_v32, %v4088_v59 }
  0xdc   :  { %v1419_v61 = vsel %vm1417_vm9, %v1314_v32, %v4088_v59  ;;  %v1550_v2 = vclz %v3906_v40  ;;  %v1732_v9 = vsel %vm1724_vm1, %v1715_v7, %v1731_v37  ;;  %v1312_v11 = vsel %vm1310_vm6, %v4086_v58, %v1311_v18 }
  0xdd   :  { %v1416_v21 = vsel %vm1414_vm10, %v4086_v58, %v1311_v18  ;;  %v1734_v6 = vsel %vm1722_vm15, %v1712_v34, %v1715_v7  ;;  %v1960_v53 = vand.u32 2139095040, %v5098_v63  ;;  %v1316_v29 = vsel %vm1309_vm11, %v1312_v11, %v1315_v24 }
  0xde   :  { %v1420_v25 = vsel %vm1413_vm12, %v1416_v21, %v1419_v61  ;;  %v3907_v47 = vadd.s32 4294967294, %v1550_v2  ;;  %v1729_v52 = vsel %vm1723_vm2, %v1726_v23, %v1728_v30  ;;  %v1317_v56 = vsel %vm1307_vm13, nan, %v1316_v29  ;;  %v6286_v29 = vld [vmem:[#allocation2_spill] sm:$0xff] }
  0xdf   :  { %v1421_v14 = vsel %vm1307_vm13, nan, %v1420_v25  ;;  %v1733_v7 = vsel %vm1723_vm2, %v1730_v17, %v1732_v9  ;;  %v1735_v50 = vsel %vm1725_vm14, %v1721_v39, 1326507024  ;;  %v1469_v43 = vrot.slane %v1317_v56, %v4353_v35 }
  0xe0   :  { %v1474_v45 = vrot.slane %v1421_v14, %v4353_v35  ;;  %vm3908_vm3 = vcmp.lt.s32.totalorder %v3907_v47, 0  ;;  %v1736_v10 = vsel %vm1724_vm1, %v1718_v60, %v1735_v50  ;;  %v1568_v40 = vsub.s32 4, %v5074_v28 }
  0xe1   :  { %v1553_v15 = vsel %vm3908_vm3, 0, %v3907_v47  ;;  %v1737_v34 = vsel %vm1723_vm2, %v1734_v6, %v1736_v10  ;;  %v5157_v3 = vmul.u32.u64.low %v5089_v44, %v1733_v7  ;;  %v5158_v48 = vmul.u32.u64.high %v5089_v44, %v1733_v7, %v5157_v3 }
  0xe2   :  { %v1470_v54 = vmul.f32 %v1469_v43, %v1462_v8  ;;  %v1475_v58 = vmul.f32 %v1474_v45, %v1465_v57  ;;  %v1554_v37 = vsub.s32 32, %v1553_v15  ;;  %v1555_v59 = vshll.u32 %v5100_v41, %v1553_v15 }
  0xe3   :  { %v1558_v32 = vsub.s32 4294967266, %v1553_v15  ;;  %v5163_v39 = vmul.u32.u64.low %v5089_v44, %v1737_v34  ;;  %v5164_v18 = vmul.u32.u64.high %v5089_v44, %v1737_v34, %v5163_v39  ;;  %v1961_v13 = vshrl.u32 %v1960_v53, 23 }
  0xe4   :  { %v1476_v60 = vadd.f32 %v1475_v58, %v1470_v54  ;;  %v1556_v23 = vshrl.u32 %v1538_v26, %v1554_v37  ;;  %v1745_v17 = vmul.u32 %v5089_v44, %v1729_v52  ;;  %v1748_v24 = vadd.s32 1, %v5158_v48 }
  0xe5   :  { %v1559_v30 = vadd.s32 127, %v1558_v32  ;;  %vm1484_vm4 = vcmp.lt.s32.totalorder %v4726_v1, 0  ;;  %v3921_v8 = vadd.s32 4294967169, %v1961_v13  ;;  %vm1747_vm5 = vc.u32 %v5164_v18, %v5157_v3 }
  0xe6   :  { %1477 = vst.msk [vmem:[%s6242_s5] sm:$0xf] %vm24_vm0, %v1476_v60  ;;  %v1557_v41 = vor.u32 %v1556_v23, %v1555_v59  ;;  %v1569_v26 = vsel %vm1484_vm4, %v1568_v40, %v5074_v28  ;;  %v1957_v44 = vand.u32 2147483647, %v5098_v63  ;;  %v1749_v61 = vsel %vm1747_vm5, %v1748_v24, %v5158_v48  ;;  %v1955_v28 = vld [vmem:[%s6241_s1 + $0x5] sm:$0x1] }
  0xe7   :  { %v1560_v57 = vshll.u32 %v1559_v30, 23  ;;  %v1967_v2 = vadd.s32 1, %v3921_v8  ;;  %vm5181_vm8 = vcmp.le.f32.partialorder %v1482_v62, 0.7853982  ;;  %v1750_v6 = vadd.s32 %v1749_v61, %v1745_v17 }
  0xe8   :  { %v1564_v21 = vcvt.s32.f32 %v1557_v41  ;;  %v1571_v53 = vsel %vm5181_vm8, 0, %v1569_v26  ;;  %v1900_v25 = vrot.slane %v6286_v29, %v4353_v35  ;;  %v1964_v62 = vand.u32 8388607, %v1957_v44 }
  0xe9   :  { %v1561_v11 = vor.u32 4788187, %v1560_v57  ;;  %vm1968_vm7 = vcmp.gt.s32.totalorder %v1967_v2, 0  ;;  %v1751_v52 = vadd.s32 536870912, %v1750_v6  ;;  %v5194_v14 = vmul.f32 1.5707964, %v1955_v28 }
  0xea   :  { %v1969_v56 = vsel %vm1968_vm7, %v1967_v2, 0  ;;  %v1678_v43 = vadd.s32 3, %v1571_v53  ;;  %v1901_v34 = vmul.f32 %v1900_v25, %v4663_v0  ;;  %v1965_v48 = vor.u32 8388608, %v1964_v62 }
  0xeb   :  { %v1562_v47 = vand.u32 2147483647, %v1561_v11  ;;  %v1752_v50 = vshrl.u32 %v1751_v52, 30  ;;  %v1971_v45 = vand.u32 31, %v1969_v56  ;;  %vm1692_vm9 = vcmp.lt.s32.totalorder %v4922_v55, 0 }
  0xec   :  { %v2168_v54 = vand.u32 2139095040, %v5194_v14  ;;  %v1902_v32 = vadd.f32 %v1901_v34, %v4699_v19  ;;  %v2165_v40 = vand.u32 2147483647, %v5194_v14  ;;  %v5213_v60 = vand.u32 3, %v1571_v53 }
  0xed   :  { %v1565_v7 = vmul.f32 %v1564_v21, %v1562_v47  ;;  %v1753_v15 = vshll.u32 %v1752_v50, 30  ;;  %v5202_v58 = vld [vmem:[%s6242_s5] sm:$0xf]  ;;  %v5215_v23 = vand.u32 3, %v1678_v43  ;;  %v1972_v13 = vsub.s32 32, %v1971_v45 }
  0xee   :  { %v1746_v30 = vadd.s32 %v5157_v3, %v5164_v18  ;;  %v5219_v24 = vshll.u32 %v1965_v48, 8  ;;  %v1906_v41 = vrot.slane %v5202_v58, %v4353_v35  ;;  %v1912_v8 = vrot.slane %v5202_v58, %v4360_v20 }
  0xef   :  { %v1566_v10 = vxor.u32 2147483648, %v1565_v7  ;;  %v5206_v59 = vsub.s32 %v1750_v6, %v1753_v15  ;;  %v2169_v57 = vshrl.u32 %v2168_v54, 23  ;;  %v1776_v61 = vsub.s32 4, %v1752_v50 }
  0xf0   :  { %v5226_v2 = vshrl.u32 %v1969_v56, 5  ;;  %v5230_v3 = vand.u32 8388607, %v2165_v40  ;;  %v1974_v18 = vshll.u32 %v6271_v42, %v1971_v45  ;;  %v1975_v9 = vshrl.u32 %v6280_v16, %v1972_v13 }
  0xf1   :  { %v1567_v37 = vsel %vm1484_vm4, %v1566_v10, %v1565_v7  ;;  %v1756_v17 = vsub.s32 0, %v5206_v59  ;;  %v1977_v11 = vshll.u32 %v6280_v16, %v1971_v45  ;;  %v1978_v21 = vshrl.u32 %v6281_v5, %v1972_v13 }
  0xf2   :  { %v1570_v39 = vsel %vm5181_vm8, %v4726_v1, %v1567_v37  ;;  %vm5238_vm6 = vcmp.le.f32.partialorder %v1690_v27, 0.7853982  ;;  %v1980_v53 = vshll.u32 %v6281_v5, %v1971_v45  ;;  %v1981_v29 = vshrl.u32 %v6282_v51, %v1972_v13 }
  0xf3   :  { %4089 = vcosq.f32 %v1570_v39  ;;  %v3914_v26 = vmin.u32 %v1756_v17, %v5206_v59  ;;  %v1983_v25 = vshll.u32 %v6282_v51, %v1971_v45  ;;  %vm1580_vm10 = vcmp.eq.s32.totalorder %v5213_v60, 2 }
  0xf4   :  { %4091 = vsinq.f32 %v1570_v39  ;;  %vm1684_vm11 = vcmp.eq.s32.totalorder %v5215_v23, 2  ;;  %v1907_v47 = vmul.f32 %v1906_v41, %v4665_v12  ;;  %v1913_v52 = vmul.f32 %v1912_v8, %v4707_v4 }
  0xf5   :  { %v1758_v28 = vclz %v3914_v26  ;;  %v1918_v27 = vrot.slane %v5202_v58, %v4362_v31  ;;  %v3929_v62 = vadd.s32 4294967169, %v2169_v57  ;;  %vm1577_vm12 = vcmp.eq.s32.totalorder %v5213_v60, 0 }
  0xf6   :  { %vm1681_vm13 = vcmp.eq.s32.totalorder %v5215_v23, 0  ;;  %v1777_v7 = vsel %vm1692_vm9, %v1776_v61, %v1752_v50  ;;  %v1973_v43 = vshrl.u32 %v6271_v42, %v1972_v13  ;;  %v1984_v10 = vshrl.u32 %v6270_v36, %v1972_v13 }
  0xf7   :  { %v3915_v56 = vadd.s32 4294967294, %v1758_v28  ;;  %v1976_v15 = vor.u32 %v1975_v9, %v1974_v18  ;;  %v1979_v34 = vor.u32 %v1978_v21, %v1977_v11  ;;  %v1986_v48 = vshll.u32 %v6270_v36, %v1971_v45 }
  0xf8   :  { %v1987_v54 = vshrl.u32 %v6283_v49, %v1972_v13  ;;  %v1982_v37 = vor.u32 %v1981_v29, %v1980_v53  ;;  %v1985_v39 = vor.u32 %v1984_v10, %v1983_v25  ;;  %vm1992_vm15 = vcmp.lt.s32.totalorder %v5226_v2, 4 }
  0xf9   :  { %vm3916_vm14 = vcmp.lt.s32.totalorder %v3915_v56, 0  ;;  %v1908_v41 = vadd.f32 %v1907_v47, %v1902_v32  ;;  %vm1989_vm1 = vcmp.lt.s32.totalorder %v5226_v2, 1  ;;  %vm1991_vm2 = vcmp.lt.s32.totalorder %v5226_v2, 3 }
  0xfa   :  { %v1761_v17 = vsel %vm3916_vm14, 0, %v3915_v56  ;;  %vm1576_vm3 = vcmp.lt.s32.totalorder %v5213_v60, 2  ;;  %vm1680_vm4 = vcmp.lt.s32.totalorder %v5215_v23, 2  ;;  %vm1990_vm5 = vcmp.lt.s32.totalorder %v5226_v2, 2 }
  0xfb   :  { %v1762_v8 = vsub.s32 32, %v1761_v17  ;;  %v1763_v45 = vshll.u32 %v5206_v59, %v1761_v17  ;;  %v1766_v13 = vsub.s32 4294967266, %v1761_v17  ;;  %v1988_v61 = vor.u32 %v1987_v54, %v1986_v48 }
  0xfc   :  { %v1994_v32 = vsel %vm1992_vm15, %v1982_v37, 2102212464  ;;  %v1998_v18 = vsel %vm1992_vm15, %v1985_v39, 920167782  ;;  %v1997_v21 = vsel %vm1989_vm1, %v1976_v15, %v1979_v34  ;;  %vm1574_vm8 = vweird.f32 %v4726_v1 }
  0xfd   :  { %v4090_v50 = vpop.eup %4089  ;;  %v1764_v9 = vshrl.u32 %v1746_v30, %v1762_v8  ;;  %v1767_v11 = vadd.s32 127, %v1766_v13  ;;  %v1999_v59 = vsel %vm1991_vm2, %v1982_v37, %v1998_v18  ;;  %v1779_v53 = vsel %vm5238_vm6, 0, %v1777_v7 }
  0xfe   :  { %v4092_v57 = vpop.eup %4091  ;;  %v1581_v26 = vxor.u32 2147483648, %v4090_v50  ;;  %v1919_v29 = vmul.f32 %v1918_v27, %v4735_v33  ;;  %v1924_v25 = vrot.slane %v5202_v58, %v4369_v22  ;;  %v1914_v56 = vadd.f32 %v1913_v52, %v1908_v41 }
  0xff   :  { %v1578_v28 = vxor.u32 2147483648, %v4092_v57  ;;  %v1765_v47 = vor.u32 %v1764_v9, %v1763_v45  ;;  %v1768_v30 = vshll.u32 %v1767_v11, 23  ;;  %v1993_v10 = vsel %vm1989_vm1, %v1973_v43, %v1976_v15 }
 0x100   :  { %v1995_v48 = vsel %vm1991_vm2, %v1979_v34, %v1994_v32  ;;  %v2000_v54 = vsel %vm1990_vm5, %v1997_v21, %v1999_v59  ;;  %v2001_v7 = vsel %vm1989_vm1, %v1979_v34, %v1982_v37  ;;  %v2002_v27 = vsel %vm1992_vm15, %v1988_v61, 1326507024 }
 0x101   :  { %v1582_v17 = vsel %vm1580_vm10, %v1581_v26, %v4092_v57  ;;  %v1686_v52 = vsel %vm1684_vm11, %v1581_v26, %v4092_v57  ;;  %v1769_v41 = vor.u32 4788187, %v1768_v30  ;;  %v1772_v43 = vcvt.s32.f32 %v1765_v47  ;;  %v5310_v57 = vld [vmem:[%s6241_s1 + $0x5] sm:$0x1] }
 0x102   :  { %v1579_v15 = vsel %vm1577_vm12, %v4090_v50, %v1578_v28  ;;  %v1683_v8 = vsel %vm1681_vm13, %v4090_v50, %v1578_v28  ;;  %v2003_v34 = vsel %vm1991_vm2, %v1985_v39, %v2002_v27  ;;  %v2175_v37 = vadd.s32 1, %v3929_v62 }
 0x103   :  { %v1770_v45 = vand.u32 2147483647, %v1769_v41  ;;  %v2004_v13 = vsel %vm1990_vm5, %v2001_v7, %v2003_v34  ;;  %v5303_v61 = vmul.u32.u64.low %v5219_v24, %v2000_v54  ;;  %v5304_v32 = vmul.u32.u64.high %v5219_v24, %v2000_v54, %v5303_v61 }
 0x104   :  { %v1886_v26 = vadd.s32 3, %v1779_v53  ;;  %v1920_v50 = vadd.f32 %v1919_v29, %v1914_v56  ;;  %v1996_v39 = vsel %vm1990_vm5, %v1993_v10, %v1995_v48  ;;  %v5315_v62 = vmul.f32 1.5707964, %v5310_v57 }
 0x105   :  { %v1773_v18 = vmul.f32 %v1772_v43, %v1770_v45  ;;  %v5318_v9 = vmul.u32.u64.low %v5219_v24, %v2004_v13  ;;  %v5319_v11 = vmul.u32.u64.high %v5219_v24, %v2004_v13, %v5318_v9  ;;  %vm2176_vm7 = vcmp.gt.s32.totalorder %v2175_v37, 0 }
 0x106   :  { %v1583_v21 = vsel %vm1576_vm3, %v1579_v15, %v1582_v17  ;;  %v1687_v59 = vsel %vm1680_vm4, %v1683_v8, %v1686_v52  ;;  %v1925_v28 = vmul.f32 %v1924_v25, %v4743_v46  ;;  %v2177_v29 = vsel %vm2176_vm7, %v2175_v37, 0 }
 0x107   :  { %v1774_v2 = vxor.u32 2147483648, %v1773_v18  ;;  %v2012_v47 = vmul.u32 %v5219_v24, %v1996_v39  ;;  %v2015_v30 = vadd.s32 1, %v5304_v32  ;;  %v2179_v56 = vand.u32 31, %v2177_v29 }
 0x108   :  { %v5328_v10 = vand.u32 3, %v1779_v53  ;;  %v5330_v48 = vand.u32 3, %v1886_v26  ;;  %v1926_v54 = vadd.f32 %v1925_v28, %v1920_v50  ;;  %v2173_v60 = vor.u32 8388608, %v5230_v3 }
 0x109   :  { %v1584_v23 = vsel %vm1574_vm8, nan, %v1583_v21  ;;  %v1775_v25 = vsel %vm1692_vm9, %v1774_v2, %v1773_v18  ;;  %vm2014_vm10 = vc.u32 %v5319_v11, %v5303_v61  ;;  %v2180_v24 = vsub.s32 32, %v2179_v56 }
 0x10a   :  { %v1688_v7 = vsel %vm1574_vm8, nan, %v1687_v59  ;;  %v1778_v53 = vsel %vm5238_vm6, %v4922_v55, %v1775_v25  ;;  %v2016_v27 = vsel %vm2014_vm10, %v2015_v30, %v5304_v32  ;;  %v2185_v3 = vshll.u32 %v6280_v16, %v2179_v56 }
 0x10b   :  { %4093 = vcosq.f32 %v1778_v53  ;;  %v2017_v17 = vadd.s32 %v2016_v27, %v2012_v47  ;;  %v5346_v52 = vshrl.u32 %v2177_v29, 5  ;;  %v2182_v41 = vshll.u32 %v6271_v42, %v2179_v56 }
 0x10c   :  { %4095 = vsinq.f32 %v1778_v53  ;;  %v2186_v43 = vshrl.u32 %v6281_v5, %v2180_v24  ;;  %v2188_v1 = vshll.u32 %v6281_v5, %v2179_v56  ;;  %v2189_v15 = vshrl.u32 %v6282_v51, %v2180_v24 }
 0x10d   :  { %vm1788_vm9 = vcmp.eq.s32.totalorder %v5328_v10, 2  ;;  %vm1892_vm6 = vcmp.eq.s32.totalorder %v5330_v48, 2  ;;  %v2018_v6 = vadd.s32 536870912, %v2017_v17  ;;  %v2183_v8 = vshrl.u32 %v6280_v16, %v2180_v24 }
 0x10e   :  { %v2191_v34 = vshll.u32 %v6282_v51, %v2179_v56  ;;  %v2192_v37 = vshrl.u32 %v6270_v36, %v2180_v24  ;;  %vm1785_vm11 = vcmp.eq.s32.totalorder %v5328_v10, 0  ;;  %vm1889_vm12 = vcmp.eq.s32.totalorder %v5330_v48, 0 }
 0x10f   :  { %v2187_v45 = vor.u32 %v2186_v43, %v2185_v3  ;;  %v2190_v13 = vor.u32 %v2189_v15, %v2188_v1  ;;  %v2194_v32 = vshll.u32 %v6270_v36, %v2179_v56  ;;  %v2195_v26 = vshrl.u32 %v6283_v49, %v2180_v24 }
 0x110   :  { %vm1784_vm13 = vcmp.lt.s32.totalorder %v5328_v10, 2  ;;  %vm1888_vm14 = vcmp.lt.s32.totalorder %v5330_v48, 2  ;;  %v1930_v50 = vrot.slane %v1584_v23, %v4353_v35  ;;  %v2019_v39 = vshrl.u32 %v2018_v6, 30 }
 0x111   :  { %v2193_v18 = vor.u32 %v2192_v37, %v2191_v34  ;;  %vm2197_vm15 = vcmp.lt.s32.totalorder %v5346_v52, 1  ;;  %vm1782_vm1 = vweird.f32 %v4922_v55  ;;  %v1935_v9 = vrot.slane %v1688_v7, %v4353_v35 }
 0x112   :  { %v2196_v21 = vor.u32 %v2195_v26, %v2194_v32  ;;  %vm2200_vm2 = vcmp.lt.s32.totalorder %v5346_v52, 4  ;;  %v2435_v59 = vand.u32 2139095040, %v5315_v62  ;;  %v2020_v28 = vshll.u32 %v2019_v39, 30 }
 0x113   :  { %v2181_v29 = vshrl.u32 %v6271_v42, %v2180_v24  ;;  %v2184_v2 = vor.u32 %v2183_v8, %v2182_v41  ;;  %vm2199_vm3 = vcmp.lt.s32.totalorder %v5346_v52, 3  ;;  %vm2198_vm4 = vcmp.lt.s32.totalorder %v5346_v52, 2 }
 0x114   :  { %v2206_v47 = vsel %vm2200_vm2, %v2193_v18, 920167782  ;;  %v2209_v30 = vsel %vm2197_vm15, %v2187_v45, %v2190_v13  ;;  %v2210_v56 = vsel %vm2200_vm2, %v2196_v21, 1326507024  ;;  %v1931_v23 = vmul.f32 %v1930_v50, %v5202_v58 }
 0x115   :  { %v1936_v25 = vmul.f32 %v1935_v9, %v1926_v54  ;;  %v5379_v7 = vsub.s32 %v2017_v17, %v2020_v28  ;;  %v5381_v24 = vshll.u32 %v2173_v60, 8  ;;  %v1938_v53 = vmul.f32 %v1935_v9, %v5202_v58  ;;  %v4094_v43 = vpop.eup %4093 }
 0x116   :  { %v1939_v27 = vmul.f32 %v1930_v50, %v1926_v54  ;;  %vm1959_vm5 = vcmp.lt.s32.totalorder %v5098_v63, 0  ;;  %v2202_v3 = vsel %vm2200_vm2, %v2190_v13, 2102212464  ;;  %v2211_v41 = vsel %vm2199_vm3, %v2193_v18, %v2210_v56  ;;  %v4096_v54 = vpop.eup %4095 }
 0x117   :  { %v2023_v1 = vsub.s32 0, %v5379_v7  ;;  %v2205_v17 = vsel %vm2197_vm15, %v2184_v2, %v2187_v45  ;;  %v2207_v60 = vsel %vm2199_vm3, %v2190_v13, %v2206_v47  ;;  %v2212_v58 = vsel %vm2198_vm4, %v2209_v30, %v2211_v41 }
 0x118   :  { %v1789_v15 = vxor.u32 2147483648, %v4094_v43  ;;  %v2043_v6 = vsub.s32 4, %v2019_v39  ;;  %v2201_v8 = vsel %vm2197_vm15, %v2181_v29, %v2184_v2  ;;  %v2436_v34 = vshrl.u32 %v2435_v59, 23 }
 0x119   :  { %v1786_v37 = vxor.u32 2147483648, %v4096_v54  ;;  %v3922_v32 = vmin.u32 %v2023_v1, %v5379_v7  ;;  %v5400_v26 = vmul.u32.u64.low %v5381_v24, %v2212_v58  ;;  %v5401_v50 = vmul.u32.u64.high %v5381_v24, %v2212_v58, %v5400_v26 }
 0x11a   :  { %v1790_v13 = vsel %vm1788_vm9, %v1789_v15, %v4096_v54  ;;  %v1894_v18 = vsel %vm1892_vm6, %v1789_v15, %v4096_v54  ;;  %vm5409_vm8 = vcmp.le.f32.partialorder %v1957_v44, 0.7853982  ;;  %v2203_v21 = vsel %vm2199_vm3, %v2187_v45, %v2202_v3 }
 0x11b   :  { %v2208_v59 = vsel %vm2198_vm4, %v2205_v17, %v2207_v60  ;;  %v1787_v28 = vsel %vm1785_vm11, %v4094_v43, %v1786_v37  ;;  %v1891_v29 = vsel %vm1889_vm12, %v4094_v43, %v1786_v37  ;;  %v2025_v2 = vclz %v3922_v32 }
 0x11c   :  { %v3937_v47 = vadd.s32 4294967169, %v2436_v34  ;;  %v1791_v44 = vsel %vm1784_vm13, %v1787_v28, %v1790_v13  ;;  %v1895_v30 = vsel %vm1888_vm14, %v1891_v29, %v1894_v18  ;;  %v1937_v56 = vsub.f32 %v1931_v23, %v1936_v25 }
 0x11d   :  { %v1940_v41 = vadd.f32 %v1939_v27, %v1938_v53  ;;  %v1792_v45 = vsel %vm1782_vm1, nan, %v1791_v44  ;;  %v1896_v3 = vsel %vm1782_vm1, nan, %v1895_v30  ;;  %v3923_v1 = vadd.s32 4294967294, %v2025_v2 }
 0x11e   :  { %v2204_v43 = vsel %vm2198_vm4, %v2201_v8, %v2203_v21  ;;  %v1944_v17 = vrot.slane %v1792_v45, %v4353_v35  ;;  %v1949_v10 = vrot.slane %v1896_v3, %v4353_v35  ;;  %v2013_v23 = vadd.s32 %v5303_v61, %v5319_v11 }
 0x11f   :  { %v5434_v60 = vmul.u32.u64.low %v5381_v24, %v2208_v59  ;;  %v5435_v48 = vmul.u32.u64.high %v5381_v24, %v2208_v59, %v5434_v60  ;;  %vm3924_vm7 = vcmp.lt.s32.totalorder %v3923_v1, 0  ;;  %v2044_v55 = vsel %vm1959_vm5, %v2043_v6, %v2019_v39 }
 0x120   :  { %v2442_v25 = vadd.s32 1, %v3937_v47  ;;  %v1945_v53 = vmul.f32 %v1944_v17, %v1937_v56  ;;  %v1950_v27 = vmul.f32 %v1949_v10, %v1940_v41  ;;  %v2028_v52 = vsel %vm3924_vm7, 0, %v3923_v1 }
 0x121   :  { %v2220_v58 = vmul.u32 %v5381_v24, %v2204_v43  ;;  %v2029_v54 = vsub.s32 32, %v2028_v52  ;;  %v2030_v15 = vshll.u32 %v5379_v7, %v2028_v52  ;;  %v2033_v8 = vsub.s32 4294967266, %v2028_v52 }
 0x122   :  { %vm2222_vm10 = vc.u32 %v5401_v50, %v5434_v60  ;;  %v1951_v34 = vadd.f32 %v1950_v27, %v1945_v53  ;;  %v2223_v37 = vadd.s32 1, %v5435_v48  ;;  %v2432_v61 = vand.u32 2147483647, %v5315_v62 }
 0x123   :  { %vm2443_vm9 = vcmp.gt.s32.totalorder %v2442_v25, 0  ;;  %v2031_v11 = vshrl.u32 %v2013_v23, %v2029_v54  ;;  %v2034_v39 = vadd.s32 127, %v2033_v8  ;;  %v2046_v6 = vsel %vm5409_vm8, 0, %v2044_v55 }
 0x124   :  { %v2444_v32 = vsel %vm2443_vm9, %v2442_v25, 0  ;;  %1952 = vst.msk [vmem:[%s6242_s5] sm:$0xf] %vm24_vm0, %v1951_v34  ;;  %v2224_v7 = vsel %vm2222_vm10, %v2223_v37, %v5435_v48  ;;  %v2375_v24 = vrot.slane %v5094_v38, %v4353_v35  ;;  %v2153_v59 = vadd.s32 3, %v2046_v6 }
 0x125   :  { %v2446_v26 = vand.u32 31, %v2444_v32  ;;  %v2032_v13 = vor.u32 %v2031_v11, %v2030_v15  ;;  %v2035_v18 = vshll.u32 %v2034_v39, 23  ;;  %v2225_v21 = vadd.s32 %v2224_v7, %v2220_v58 }
 0x126   :  { %v2439_v47 = vand.u32 8388607, %v2432_v61  ;;  %v2376_v44 = vmul.f32 %v2375_v24, %v4663_v0  ;;  %v5458_v45 = vand.u32 3, %v2046_v6  ;;  %v5460_v3 = vand.u32 3, %v2153_v59 }
 0x127   :  { %v2036_v28 = vor.u32 4788187, %v2035_v18  ;;  %v2039_v29 = vcvt.s32.f32 %v2032_v13  ;;  %v2226_v2 = vadd.s32 536870912, %v2225_v21  ;;  %v2447_v30 = vsub.s32 32, %v2446_v26 }
 0x128   :  { %v2377_v38 = vadd.f32 %v2376_v44, %v4699_v19  ;;  %v5469_v17 = vadd.s32 %v5434_v60, %v5401_v50  ;;  %v2440_v48 = vor.u32 8388608, %v2439_v47  ;;  %v2449_v23 = vshll.u32 %v6271_v42, %v2446_v26  ;;  %v2430_v50 = vld [vmem:[%s6241_s1 + $0x6] sm:$0x1] }
 0x129   :  { %v2037_v56 = vand.u32 2147483647, %v2036_v28  ;;  %v2227_v41 = vshrl.u32 %v2226_v2, 30  ;;  %v2450_v55 = vshrl.u32 %v6280_v16, %v2447_v30  ;;  %v2452_v25 = vshll.u32 %v6280_v16, %v2446_v26 }
 0x12a   :  { %v2453_v53 = vshrl.u32 %v6281_v5, %v2447_v30  ;;  %vm2167_vm6 = vcmp.lt.s32.totalorder %v5194_v14, 0  ;;  %v2455_v60 = vshll.u32 %v6281_v5, %v2446_v26  ;;  %v2456_v58 = vshrl.u32 %v6282_v51, %v2447_v30 }
 0x12b   :  { %v5466_v1 = vld [vmem:[%s6242_s5] sm:$0xf]  ;;  %v2040_v43 = vmul.f32 %v2039_v29, %v2037_v56  ;;  %v2228_v10 = vshll.u32 %v2227_v41, 30  ;;  %v2445_v15 = vshrl.u32 %v2444_v32, 5  ;;  %v2458_v8 = vshll.u32 %v6282_v51, %v2446_v26 }
 0x12c   :  { %v2381_v54 = vrot.slane %v5466_v1, %v4353_v35  ;;  %v2459_v34 = vshrl.u32 %v6270_v36, %v2447_v30  ;;  %v2461_v39 = vshll.u32 %v6270_v36, %v2446_v26  ;;  %v2462_v6 = vshrl.u32 %v6283_v49, %v2447_v30 }
 0x12d   :  { %v2041_v27 = vxor.u32 2147483648, %v2040_v43  ;;  %v5476_v52 = vsub.s32 %v2225_v21, %v2228_v10  ;;  %v2451_v24 = vor.u32 %v2450_v55, %v2449_v23  ;;  %v2454_v13 = vor.u32 %v2453_v53, %v2452_v25 }
 0x12e   :  { %v5495_v32 = vmul.f32 1.5707964, %v2430_v50  ;;  %v2251_v21 = vsub.s32 4, %v2227_v41  ;;  %v2457_v59 = vor.u32 %v2456_v58, %v2455_v60  ;;  %v2382_v28 = vmul.f32 %v2381_v54, %v4665_v12 }
 0x12f   :  { %v2042_v37 = vsel %vm1959_vm5, %v2041_v27, %v2040_v43  ;;  %v2231_v11 = vsub.s32 0, %v5476_v52  ;;  %v2460_v29 = vor.u32 %v2459_v34, %v2458_v8  ;;  %vm2464_vm11 = vcmp.lt.s32.totalorder %v2445_v15, 1 }
 0x130   :  { %v2045_v7 = vsel %vm5409_vm8, %v5098_v63, %v2042_v37  ;;  %vm2055_vm12 = vcmp.eq.s32.totalorder %v5458_v45, 2  ;;  %v2448_v9 = vshrl.u32 %v6271_v42, %v2447_v30  ;;  %v2463_v2 = vor.u32 %v2462_v6, %v2461_v39 }
 0x131   :  { %4097 = vcosq.f32 %v2045_v7  ;;  %v3930_v18 = vmin.u32 %v2231_v11, %v5476_v52  ;;  %vm2467_vm13 = vcmp.lt.s32.totalorder %v2445_v15, 4  ;;  %vm2052_vm14 = vcmp.eq.s32.totalorder %v5458_v45, 0 }
 0x132   :  { %4099 = vsinq.f32 %v2045_v7  ;;  %vm5504_vm15 = vcmp.le.f32.partialorder %v2165_v40, 0.7853982  ;;  %v2387_v44 = vrot.slane %v5466_v1, %v4360_v20  ;;  %v2393_v56 = vrot.slane %v5466_v1, %v4362_v31 }
 0x133   :  { %v2233_v26 = vclz %v3930_v18  ;;  %vm2466_vm1 = vcmp.lt.s32.totalorder %v2445_v15, 3  ;;  %v5512_v43 = vshll.u32 %v2440_v48, 8  ;;  %vm2156_vm2 = vcmp.eq.s32.totalorder %v5460_v3, 0 }
 0x134   :  { %vm2465_vm3 = vcmp.lt.s32.totalorder %v2445_v15, 2  ;;  %v2469_v10 = vsel %vm2467_vm13, %v2457_v59, 2102212464  ;;  %v2472_v40 = vsel %vm2464_vm11, %v2451_v24, %v2454_v13  ;;  %v2252_v23 = vsel %vm2167_vm6, %v2251_v21, %v2227_v41 }
 0x135   :  { %v3931_v30 = vadd.s32 4294967294, %v2233_v26  ;;  %v2383_v55 = vadd.f32 %v2382_v28, %v2377_v38  ;;  %v2473_v25 = vsel %vm2467_vm13, %v2460_v29, 920167782  ;;  %v2476_v53 = vsel %vm2464_vm11, %v2454_v13, %v2457_v59 }
 0x136   :  { %vm2051_vm4 = vcmp.lt.s32.totalorder %v5458_v45, 2  ;;  %v2468_v48 = vsel %vm2464_vm11, %v2448_v9, %v2451_v24  ;;  %v2474_v27 = vsel %vm2466_vm1, %v2457_v59, %v2473_v25  ;;  %v2477_v50 = vsel %vm2467_vm13, %v2463_v2, 1326507024 }
 0x137   :  { %vm3932_vm5 = vcmp.lt.s32.totalorder %v3931_v30, 0  ;;  %vm2155_vm8 = vcmp.lt.s32.totalorder %v5460_v3, 2  ;;  %v2470_v58 = vsel %vm2466_vm1, %v2454_v13, %v2469_v10  ;;  %v2475_v41 = vsel %vm2465_vm3, %v2472_v40, %v2474_v27 }
 0x138   :  { %v2236_v60 = vsel %vm3932_vm5, 0, %v3931_v30  ;;  %v2478_v38 = vsel %vm2466_vm1, %v2460_v29, %v2477_v50  ;;  %v5536_v6 = vmul.u32.u64.low %v5512_v43, %v2475_v41  ;;  %v5537_v7 = vmul.u32.u64.high %v5512_v43, %v2475_v41, %v5536_v6 }
 0x139   :  { %v2237_v54 = vsub.s32 32, %v2236_v60  ;;  %v2238_v8 = vshll.u32 %v5476_v52, %v2236_v60  ;;  %v2241_v34 = vsub.s32 4294967266, %v2236_v60  ;;  %v2479_v37 = vsel %vm2465_vm3, %v2476_v53, %v2478_v38 }
 0x13a   :  { %v5532_v11 = vmul.u32.u64.low %v5512_v43, %v2479_v37  ;;  %v5533_v39 = vmul.u32.u64.high %v5512_v43, %v2479_v37, %v5532_v11  ;;  %vm2159_vm7 = vcmp.eq.s32.totalorder %v5460_v3, 2  ;;  %v2471_v21 = vsel %vm2465_vm3, %v2468_v48, %v2470_v58 }
 0x13b   :  { %v4098_v24 = vpop.eup %4097  ;;  %v2239_v13 = vshrl.u32 %v5469_v17, %v2237_v54  ;;  %v2242_v18 = vadd.s32 127, %v2241_v34  ;;  %v2388_v28 = vmul.f32 %v2387_v44, %v4707_v4  ;;  %v2399_v29 = vrot.slane %v5466_v1, %v4369_v22 }
 0x13c   :  { %v4100_v52 = vpop.eup %4099  ;;  %v2056_v59 = vxor.u32 2147483648, %v4098_v24  ;;  %v2643_v26 = vand.u32 2139095040, %v5495_v32  ;;  %v2254_v10 = vsel %vm5504_vm15, 0, %v2252_v23  ;;  %v2394_v40 = vmul.f32 %v2393_v56, %v4735_v33 }
 0x13d   :  { %v2053_v9 = vxor.u32 2147483648, %v4100_v52  ;;  %v2240_v2 = vor.u32 %v2239_v13, %v2238_v8  ;;  %v2243_v30 = vshll.u32 %v2242_v18, 23  ;;  %v2389_v15 = vadd.f32 %v2388_v28, %v2383_v55 }
 0x13e   :  { %v2057_v17 = vsel %vm2055_vm12, %v2056_v59, %v4100_v52  ;;  %v2487_v25 = vmul.u32 %v5512_v43, %v2471_v21  ;;  %vm2489_vm10 = vc.u32 %v5533_v39, %v5536_v6  ;;  %v2161_v23 = vsel %vm2159_vm7, %v2056_v59, %v4100_v52 }
 0x13f   :  { %v2054_v44 = vsel %vm2052_vm14, %v4098_v24, %v2053_v9  ;;  %v2244_v53 = vor.u32 4788187, %v2243_v30  ;;  %v2247_v48 = vcvt.s32.f32 %v2240_v2  ;;  %v2158_v27 = vsel %vm2156_vm2, %v4098_v24, %v2053_v9 }
 0x140   :  { %v2490_v50 = vadd.s32 1, %v5537_v7  ;;  %v2644_v55 = vshrl.u32 %v2643_v26, 23  ;;  %vm2049_vm9 = vweird.f32 %v5098_v63  ;;  %v2361_v43 = vadd.s32 3, %v2254_v10 }
 0x141   :  { %v2245_v56 = vand.u32 2147483647, %v2244_v53  ;;  %v2058_v60 = vsel %vm2051_vm4, %v2054_v44, %v2057_v17  ;;  %v2395_v58 = vadd.f32 %v2394_v40, %v2389_v15  ;;  %v2162_v54 = vsel %vm2155_vm8, %v2158_v27, %v2161_v23  ;;  %v5600_v44 = vld [vmem:[%s6241_s1 + $0x6] sm:$0x1] }
 0x142   :  { %v2491_v41 = vsel %vm2489_vm10, %v2490_v50, %v5537_v7  ;;  %v3945_v38 = vadd.s32 4294967169, %v2644_v55  ;;  %v2640_v37 = vand.u32 2147483647, %v5495_v32  ;;  %v2400_v11 = vmul.f32 %v2399_v29, %v4743_v46 }
 0x143   :  { %v2248_v8 = vmul.f32 %v2247_v48, %v2245_v56  ;;  %v2492_v34 = vadd.s32 %v2491_v41, %v2487_v25  ;;  %v2059_v24 = vsel %vm2049_vm9, nan, %v2058_v60  ;;  %v2163_v21 = vsel %vm2049_vm9, nan, %v2162_v54 }
 0x144   :  { %v2650_v45 = vadd.s32 1, %v3945_v38  ;;  %v5572_v7 = vand.u32 3, %v2254_v10  ;;  %v5574_v52 = vand.u32 3, %v2361_v43  ;;  %v2401_v3 = vadd.f32 %v2400_v11, %v2395_v58 }
 0x145   :  { %v2249_v13 = vxor.u32 2147483648, %v2248_v8  ;;  %v2493_v18 = vadd.s32 536870912, %v2492_v34  ;;  %v2647_v29 = vand.u32 8388607, %v2640_v37  ;;  %v2405_v63 = vrot.slane %v2059_v24, %v4353_v35 }
 0x146   :  { %vm2651_vm11 = vcmp.gt.s32.totalorder %v2650_v45, 0  ;;  %v2410_v2 = vrot.slane %v2163_v21, %v4353_v35  ;;  %v5589_v10 = vadd.s32 %v5536_v6, %v5533_v39  ;;  %vm2367_vm12 = vcmp.eq.s32.totalorder %v5574_v52, 2 }
 0x147   :  { %v2250_v59 = vsel %vm2167_vm6, %v2249_v13, %v2248_v8  ;;  %v5578_v28 = vshrl.u32 %v2493_v18, 30  ;;  %v2652_v9 = vsel %vm2651_vm11, %v2650_v45, 0  ;;  %vm2263_vm6 = vcmp.eq.s32.totalorder %v5572_v7, 2 }
 0x148   :  { %v2253_v26 = vsel %vm5504_vm15, %v5194_v14, %v2250_v59  ;;  %v2654_v17 = vand.u32 31, %v2652_v9  ;;  %v5593_v15 = vmul.f32 %v2410_v2, %v2401_v3  ;;  %v2414_v47 = vmul.f32 %v2405_v63, %v2401_v3 }
 0x149   :  { %4101 = vcosq.f32 %v2253_v26  ;;  %v2495_v30 = vshll.u32 %v5578_v28, 30  ;;  %v2648_v25 = vor.u32 8388608, %v2647_v29  ;;  %vm2260_vm13 = vcmp.eq.s32.totalorder %v5572_v7, 0 }
 0x14a   :  { %4103 = vsinq.f32 %v2253_v26  ;;  %vm2364_vm14 = vcmp.eq.s32.totalorder %v5574_v52, 0  ;;  %v5605_v39 = vmul.f32 %v2405_v63, %v5466_v1  ;;  %v5607_v6 = vshrl.u32 %v2652_v9, 5 }
 0x14b   :  { %v5595_v40 = vsub.s32 %v2492_v34, %v2495_v30  ;;  %v2655_v53 = vsub.s32 32, %v2654_v17  ;;  %v5610_v48 = vmul.f32 1.5707964, %v5600_v44  ;;  %vm2259_vm15 = vcmp.lt.s32.totalorder %v5572_v7, 2 }
 0x14c   :  { %vm2363_vm1 = vcmp.lt.s32.totalorder %v5574_v52, 2  ;;  %v2413_v27 = vmul.f32 %v2410_v2, %v5466_v1  ;;  %v2657_v50 = vshll.u32 %v6271_v42, %v2654_v17  ;;  %v2660_v55 = vshll.u32 %v6280_v16, %v2654_v17 }
 0x14d   :  { %v2498_v23 = vsub.s32 0, %v5595_v40  ;;  %vm2257_vm2 = vweird.f32 %v5194_v14  ;;  %v2658_v56 = vshrl.u32 %v6280_v16, %v2655_v53  ;;  %v2661_v43 = vshrl.u32 %v6281_v5, %v2655_v53 }
 0x14e   :  { %v2663_v60 = vshll.u32 %v6281_v5, %v2654_v17  ;;  %v2664_v58 = vshrl.u32 %v6282_v51, %v2655_v53  ;;  %v2412_v41 = vsub.f32 %v5605_v39, %v5593_v15  ;;  %v2415_v1 = vadd.f32 %v2414_v47, %v2413_v27 }
 0x14f   :  { %v3938_v38 = vmin.u32 %v2498_v23, %v5595_v40  ;;  %v5626_v54 = vshll.u32 %v2648_v25, 8  ;;  %v2518_v8 = vsub.s32 4, %v5578_v28  ;;  %v2656_v34 = vshrl.u32 %v6271_v42, %v2655_v53 }
 0x150   :  { %vm2672_vm3 = vcmp.lt.s32.totalorder %v5607_v6, 1  ;;  %v2910_v11 = vand.u32 2139095040, %v5610_v48  ;;  %v2666_v13 = vshll.u32 %v6282_v51, %v2654_v17  ;;  %v2667_v18 = vshrl.u32 %v6270_v36, %v2655_v53 }
 0x151   :  { %v2500_v24 = vclz %v3938_v38  ;;  %v2669_v45 = vshll.u32 %v6270_v36, %v2654_v17  ;;  %v2659_v21 = vor.u32 %v2658_v56, %v2657_v50  ;;  %v2662_v3 = vor.u32 %v2661_v43, %v2660_v55 }
 0x152   :  { %v2665_v59 = vor.u32 %v2664_v58, %v2663_v60  ;;  %v2670_v29 = vshrl.u32 %v6283_v49, %v2655_v53  ;;  %v2668_v9 = vor.u32 %v2667_v18, %v2666_v13  ;;  %vm2673_vm4 = vcmp.lt.s32.totalorder %v5607_v6, 2 }
 0x153   :  { %v4102_v26 = vpop.eup %4101  ;;  %v3939_v63 = vadd.s32 4294967294, %v2500_v24  ;;  %vm2675_vm5 = vcmp.lt.s32.totalorder %v5607_v6, 4  ;;  %vm2674_vm8 = vcmp.lt.s32.totalorder %v5607_v6, 3  ;;  %v2676_v25 = vsel %vm2672_vm3, %v2656_v34, %v2659_v21 }
 0x154   :  { %v4104_v2 = vpop.eup %4103  ;;  %v2264_v30 = vxor.u32 2147483648, %v4102_v26  ;;  %v2671_v15 = vor.u32 %v2670_v29, %v2669_v45  ;;  %v2677_v17 = vsel %vm2675_vm5, %v2665_v59, 2102212464  ;;  %vm2434_vm10 = vcmp.lt.s32.totalorder %v5315_v62, 0 }
 0x155   :  { %v2261_v47 = vxor.u32 2147483648, %v4104_v2  ;;  %vm3940_vm7 = vcmp.lt.s32.totalorder %v3939_v63, 0  ;;  %v2678_v39 = vsel %vm2674_vm8, %v2662_v3, %v2677_v17  ;;  %v2680_v50 = vsel %vm2672_vm3, %v2659_v21, %v2662_v3 }
 0x156   :  { %v2265_v53 = vsel %vm2263_vm6, %v2264_v30, %v4104_v2  ;;  %v2369_v27 = vsel %vm2367_vm12, %v2264_v30, %v4104_v2  ;;  %v2503_v23 = vsel %vm3940_vm7, 0, %v3939_v63  ;;  %v2681_v24 = vsel %vm2675_vm5, %v2668_v9, 920167782 }
 0x157   :  { %v2262_v55 = vsel %vm2260_vm13, %v4102_v26, %v2261_v47  ;;  %v2366_v56 = vsel %vm2364_vm14, %v4102_v26, %v2261_v47  ;;  %v2504_v43 = vsub.s32 32, %v2503_v23  ;;  %v2505_v60 = vshll.u32 %v5595_v40, %v2503_v23 }
 0x158   :  { %v2266_v58 = vsel %vm2259_vm15, %v2262_v55, %v2265_v53  ;;  %v2370_v38 = vsel %vm2363_vm1, %v2366_v56, %v2369_v27  ;;  %v2508_v34 = vsub.s32 4294967266, %v2503_v23  ;;  %v2682_v40 = vsel %vm2674_vm8, %v2665_v59, %v2681_v24  ;;  %v2905_v53 = vld [vmem:[%s6241_s1 + $0x7] sm:$0x1] }
 0x159   :  { %v2267_v13 = vsel %vm2257_vm2, nan, %v2266_v58  ;;  %v2371_v18 = vsel %vm2257_vm2, nan, %v2370_v38  ;;  %v2506_v45 = vshrl.u32 %v5589_v10, %v2504_v43  ;;  %v2683_v29 = vsel %vm2673_vm4, %v2680_v50, %v2682_v40 }
 0x15a   :  { %v2419_v7 = vrot.slane %v2267_v13, %v4353_v35  ;;  %v2424_v52 = vrot.slane %v2371_v18, %v4353_v35  ;;  %v2509_v21 = vadd.s32 127, %v2508_v34  ;;  %v2679_v63 = vsel %vm2673_vm4, %v2676_v25, %v2678_v39 }
 0x15b   :  { %v2507_v26 = vor.u32 %v2506_v45, %v2505_v60  ;;  %v2684_v14 = vsel %vm2672_vm3, %v2662_v3, %v2665_v59  ;;  %v2685_v10 = vsel %vm2675_vm5, %v2671_v15, 1326507024  ;;  %v2911_v23 = vshrl.u32 %v2910_v11, 23 }
 0x15c   :  { %v2420_v2 = vmul.f32 %v2419_v7, %v2412_v41  ;;  %v2425_v30 = vmul.f32 %v2424_v52, %v2415_v1  ;;  %v2510_v17 = vshll.u32 %v2509_v21, 23  ;;  %v2686_v47 = vsel %vm2674_vm8, %v2668_v9, %v2685_v10 }
 0x15d   :  { %v2514_v27 = vcvt.s32.f32 %v2507_v26  ;;  %v2687_v25 = vsel %vm2673_vm4, %v2684_v14, %v2686_v47  ;;  %v5688_v39 = vmul.u32.u64.low %v5626_v54, %v2683_v29  ;;  %v5689_v3 = vmul.u32.u64.high %v5626_v54, %v2683_v29, %v5688_v39 }
 0x15e   :  { %v2426_v59 = vadd.f32 %v2425_v30, %v2420_v2  ;;  %v2511_v15 = vor.u32 4788187, %v2510_v17  ;;  %v5692_v41 = vmul.u32.u64.low %v5626_v54, %v2687_v25  ;;  %v5693_v1 = vmul.u32.u64.high %v5626_v54, %v2687_v25, %v5692_v41 }
 0x15f   :  { %v2519_v9 = vsel %vm2434_vm10, %v2518_v8, %v5578_v28  ;;  %v5700_v50 = vmul.f32 1.5707964, %v2905_v53  ;;  %v2695_v55 = vmul.u32 %v5626_v54, %v2679_v63  ;;  %vm5709_vm9 = vcmp.le.f32.partialorder %v2432_v61, 0.7853982 }
 0x160   :  { %2427 = vst.msk [vmem:[%s6242_s5] sm:$0xf] %vm24_vm0, %v2426_v59  ;;  %v2512_v6 = vand.u32 2147483647, %v2511_v15  ;;  %v2698_v43 = vadd.s32 1, %v5689_v3  ;;  %v3953_v28 = vadd.s32 4294967169, %v2911_v23  ;;  %vm2697_vm11 = vc.u32 %v5693_v1, %v5688_v39 }
 0x161   :  { %v2521_v11 = vsel %vm5709_vm9, 0, %v2519_v9  ;;  %v6259_v60 = vand.u32 2147483647, %v5610_v48  ;;  %v3118_v38 = vand.u32 2139095040, %v5700_v50  ;;  %v2850_v24 = vrot.slane %v5310_v57, %v4353_v35 }
 0x162   :  { %v2515_v8 = vmul.f32 %v2514_v27, %v2512_v6  ;;  %v2699_v58 = vsel %vm2697_vm11, %v2698_v43, %v5689_v3  ;;  %v2917_v54 = vadd.s32 1, %v3953_v28  ;;  %v6258_v13 = vand.u32 2147483647, %v5700_v50 }
 0x163   :  { %v2700_v34 = vadd.s32 %v2699_v58, %v2695_v55  ;;  %v2628_v18 = vadd.s32 3, %v2521_v11  ;;  %v2914_v7 = vand.u32 8388607, %v6259_v60  ;;  %v3119_v29 = vshrl.u32 %v3118_v38, 23  ;;  %v5761_v55 = vld [vmem:[%s6241_s1 + $0x7] sm:$0x1] }
 0x164   :  { %v2516_v61 = vxor.u32 2147483648, %v2515_v8  ;;  %vm2918_vm6 = vcmp.gt.s32.totalorder %v2917_v54, 0  ;;  %v2851_v63 = vmul.f32 %v2850_v24, %v4663_v0  ;;  %v3122_v14 = vand.u32 8388607, %v6258_v13  ;;  %6297 = vst [vmem:[#allocation2_spill] sm:$0xff] %v5761_v55 }
 0x165   :  { %v2701_v40 = vadd.s32 536870912, %v2700_v34  ;;  %v2919_v52 = vsel %vm2918_vm6, %v2917_v54, 0  ;;  %v5738_v10 = vand.u32 3, %v2628_v18  ;;  %v2915_v47 = vor.u32 8388608, %v2914_v7 }
 0x166   :  { %v2517_v45 = vsel %vm2434_vm10, %v2516_v61, %v2515_v8  ;;  %v2921_v30 = vand.u32 31, %v2919_v52  ;;  %vm2642_vm12 = vcmp.lt.s32.totalorder %v5495_v32, 0  ;;  %v2852_v53 = vadd.f32 %v2851_v63, %v4699_v19 }
 0x167   :  { %v5730_v21 = vld [vmem:[%s6242_s5] sm:$0xf]  ;;  %v2520_v57 = vsel %vm5709_vm9, %v5315_v62, %v2517_v45  ;;  %v2702_v26 = vshrl.u32 %v2701_v40, 30  ;;  %v3961_v27 = vadd.s32 4294967169, %v3119_v29  ;;  %v5744_v25 = vand.u32 3, %v2521_v11 }
 0x168   :  { %4105 = vcosq.f32 %v2520_v57  ;;  %v2856_v2 = vrot.slane %v5730_v21, %v4353_v35  ;;  %vm5748_vm13 = vcmp.le.f32.partialorder %v2640_v37, 0.7853982  ;;  %v2862_v15 = vrot.slane %v5730_v21, %v4360_v20 }
 0x169   :  { %4107 = vsinq.f32 %v2520_v57  ;;  %v2703_v17 = vshll.u32 %v2702_v26, 30  ;;  %v3123_v41 = vor.u32 8388608, %v3122_v14  ;;  %vm2634_vm14 = vcmp.eq.s32.totalorder %v5738_v10, 2 }
 0x16a   :  { %v2726_v9 = vsub.s32 4, %v2702_v26  ;;  %v2857_v23 = vmul.f32 %v2856_v2, %v4665_v12  ;;  %v2922_v6 = vsub.s32 32, %v2921_v30  ;;  %vm2631_vm15 = vcmp.eq.s32.totalorder %v5738_v10, 0 }
 0x16b   :  { %v5752_v59 = vsub.s32 %v2700_v34, %v2703_v17  ;;  %v2696_v37 = vadd.s32 %v5688_v39, %v5693_v1  ;;  %v5766_v43 = vshll.u32 %v2915_v47, 8  ;;  %v5769_v28 = vmul.f32 1.5707964, %v5761_v55 }
 0x16c   :  { %v2868_v8 = vrot.slane %v5730_v21, %v4362_v31  ;;  %v2874_v11 = vrot.slane %v5730_v21, %v4369_v22  ;;  %v5775_v58 = vshrl.u32 %v2919_v52, 5  ;;  %v5777_v54 = vadd.s32 1, %v3961_v27 }
 0x16d   :  { %v2706_v56 = vsub.s32 0, %v5752_v59  ;;  %vm2527_vm1 = vcmp.eq.s32.totalorder %v5744_v25, 0  ;;  %vm2530_vm2 = vcmp.eq.s32.totalorder %v5744_v25, 2  ;;  %v2863_v1 = vmul.f32 %v2862_v15, %v4707_v4 }
 0x16e   :  { %v2924_v38 = vshll.u32 %v6271_v42, %v2921_v30  ;;  %v5784_v61 = vshll.u32 %v3123_v41, 8  ;;  %vm2630_vm3 = vcmp.lt.s32.totalorder %v5738_v10, 2  ;;  %v2727_v34 = vsel %vm2642_vm12, %v2726_v9, %v2702_v26 }
 0x16f   :  { %v3946_v39 = vmin.u32 %v2706_v56, %v5752_v59  ;;  %v2858_v24 = vadd.f32 %v2857_v23, %v2852_v53  ;;  %v2925_v18 = vshrl.u32 %v6280_v16, %v2922_v6  ;;  %v2927_v45 = vshll.u32 %v6280_v16, %v2921_v30 }
 0x170   :  { %v2928_v52 = vshrl.u32 %v6281_v5, %v2922_v6  ;;  %v2933_v57 = vshll.u32 %v6282_v51, %v2921_v30  ;;  %v2934_v29 = vshrl.u32 %v6270_v36, %v2922_v6  ;;  %vm2526_vm4 = vcmp.lt.s32.totalorder %v5744_v25, 2 }
 0x171   :  { %v2708_v7 = vclz %v3946_v39  ;;  %v2869_v14 = vmul.f32 %v2868_v8, %v4735_v33  ;;  %v2875_v26 = vmul.f32 %v2874_v11, %v4743_v46  ;;  %v2930_v2 = vshll.u32 %v6281_v5, %v2921_v30 }
 0x172   :  { %v4106_v40 = vpop.eup %4105  ;;  %v2931_v17 = vshrl.u32 %v6282_v51, %v2922_v6  ;;  %v2936_v27 = vshll.u32 %v6270_v36, %v2921_v30  ;;  %v2937_v15 = vshrl.u32 %v6283_v49, %v2922_v6  ;;  %vm2524_vm5 = vweird.f32 %v5315_v62 }
 0x173   :  { %v4108_v63 = vpop.eup %4107  ;;  %v2531_v47 = vxor.u32 2147483648, %v4106_v40  ;;  %v3947_v53 = vadd.s32 4294967294, %v2708_v7  ;;  %v2729_v9 = vsel %vm5748_vm13, 0, %v2727_v34  ;;  %v2864_v23 = vadd.f32 %v2863_v1, %v2858_v24 }
 0x174   :  { %v2528_v41 = vxor.u32 2147483648, %v4108_v63  ;;  %v2923_v56 = vshrl.u32 %v6271_v42, %v2922_v6  ;;  %v2926_v8 = vor.u32 %v2925_v18, %v2924_v38  ;;  %v2929_v11 = vor.u32 %v2928_v52, %v2927_v45 }
 0x175   :  { %vm3948_vm8 = vcmp.lt.s32.totalorder %v3947_v53, 0  ;;  %v2935_v39 = vor.u32 %v2934_v29, %v2933_v57  ;;  %v2932_v60 = vor.u32 %v2931_v17, %v2930_v2  ;;  %vm2939_vm7 = vcmp.lt.s32.totalorder %v5775_v58, 1 }
 0x176   :  { %v2711_v13 = vsel %vm3948_vm8, 0, %v3947_v53  ;;  %vm2942_vm10 = vcmp.lt.s32.totalorder %v5775_v58, 4  ;;  %v2636_v30 = vsel %vm2634_vm14, %v2531_v47, %v4108_v63  ;;  %v2938_v34 = vor.u32 %v2937_v15, %v2936_v27 }
 0x177   :  { %v2712_v7 = vsub.s32 32, %v2711_v13  ;;  %v2713_v55 = vshll.u32 %v5752_v59, %v2711_v13  ;;  %v2633_v6 = vsel %vm2631_vm15, %v4106_v40, %v2528_v41  ;;  %v2716_v1 = vsub.s32 4294967266, %v2711_v13 }
 0x178   :  { %vm2940_vm9 = vcmp.lt.s32.totalorder %v5775_v58, 2  ;;  %vm2941_vm11 = vcmp.lt.s32.totalorder %v5775_v58, 3  ;;  %v2944_v24 = vsel %vm2942_vm10, %v2932_v60, 2102212464  ;;  %v2947_v18 = vsel %vm2939_vm7, %v2926_v8, %v2929_v11 }
 0x179   :  { %v2714_v38 = vshrl.u32 %v2696_v37, %v2712_v7  ;;  %v2948_v45 = vsel %vm2942_vm10, %v2935_v39, 920167782  ;;  %v2529_v59 = vsel %vm2527_vm1, %v4106_v40, %v2528_v41  ;;  %v2532_v13 = vsel %vm2530_vm2, %v2531_v47, %v4108_v63 }
 0x17a   :  { %v2717_v52 = vadd.s32 127, %v2716_v1  ;;  %v2836_v57 = vadd.s32 3, %v2729_v9  ;;  %v2637_v37 = vsel %vm2630_vm3, %v2633_v6, %v2636_v30  ;;  %v2870_v2 = vadd.f32 %v2869_v14, %v2864_v23 }
 0x17b   :  { %v2715_v29 = vor.u32 %v2714_v38, %v2713_v55  ;;  %v2949_v17 = vsel %vm2941_vm11, %v2932_v60, %v2948_v45  ;;  %v2943_v27 = vsel %vm2939_vm7, %v2923_v56, %v2926_v8  ;;  %v2945_v40 = vsel %vm2941_vm11, %v2929_v11, %v2944_v24 }
 0x17c   :  { %v2718_v53 = vshll.u32 %v2717_v52, 23  ;;  %v2950_v63 = vsel %vm2940_vm9, %v2947_v18, %v2949_v17  ;;  %v2533_v47 = vsel %vm2526_vm4, %v2529_v59, %v2532_v13  ;;  %v2951_v55 = vsel %vm2939_vm7, %v2929_v11, %v2932_v60 }
 0x17d   :  { %v2722_v10 = vcvt.s32.f32 %v2715_v29  ;;  %v2952_v14 = vsel %vm2942_vm10, %v2938_v34, 1326507024  ;;  %v5843_v23 = vmul.u32.u64.low %v5766_v43, %v2950_v63  ;;  %v5844_v56 = vmul.u32.u64.high %v5766_v43, %v2950_v63, %v5843_v23 }
 0x17e   :  { %v2719_v15 = vor.u32 4788187, %v2718_v53  ;;  %v2953_v41 = vsel %vm2941_vm11, %v2935_v39, %v2952_v14  ;;  %v2638_v25 = vsel %vm2524_vm5, nan, %v2637_v37  ;;  %v2946_v8 = vsel %vm2940_vm9, %v2943_v27, %v2945_v40 }
 0x17f   :  { %v2954_v60 = vsel %vm2940_vm9, %v2951_v55, %v2953_v41  ;;  %vm3126_vm6 = vcmp.gt.s32.totalorder %v5777_v54, 0  ;;  %v5859_v34 = vand.u32 3, %v2729_v9  ;;  %v5861_v6 = vand.u32 3, %v2836_v57 }
 0x180   :  { %v2720_v11 = vand.u32 2147483647, %v2719_v15  ;;  %v5855_v30 = vmul.u32.u64.low %v5766_v43, %v2954_v60  ;;  %v5856_v39 = vmul.u32.u64.high %v5766_v43, %v2954_v60, %v5855_v30  ;;  %v3127_v7 = vsel %vm3126_vm6, %v5777_v54, 0 }
 0x181   :  { %v2876_v1 = vadd.f32 %v2875_v26, %v2870_v2  ;;  %v3129_v38 = vand.u32 31, %v3127_v7  ;;  %v2534_v24 = vsel %vm2524_vm5, nan, %v2533_v47  ;;  %v2962_v18 = vmul.u32 %v5766_v43, %v2946_v8 }
 0x182   :  { %v2723_v58 = vmul.f32 %v2722_v10, %v2720_v11  ;;  %v2965_v45 = vadd.s32 1, %v5844_v56  ;;  %v2885_v59 = vrot.slane %v2638_v25, %v4353_v35  ;;  %vm2964_vm14 = vc.u32 %v5856_v39, %v5843_v23 }
 0x183   :  { %v3130_v13 = vsub.s32 32, %v3129_v38  ;;  %v3132_v52 = vshll.u32 %v6271_v42, %v3129_v38  ;;  %v3135_v54 = vshll.u32 %v6280_v16, %v3129_v38  ;;  %v3138_v26 = vshll.u32 %v6281_v5, %v3129_v38 }
 0x184   :  { %v2724_v9 = vxor.u32 2147483648, %v2723_v58  ;;  %v3141_v62 = vshll.u32 %v6282_v51, %v3129_v38  ;;  %v2966_v57 = vsel %vm2964_vm14, %v2965_v45, %v5844_v56  ;;  %v3128_v43 = vshrl.u32 %v3127_v7, 5 }
 0x185   :  { %v3133_v37 = vshrl.u32 %v6280_v16, %v3130_v13  ;;  %v3136_v29 = vshrl.u32 %v6281_v5, %v3130_v13  ;;  %v2967_v17 = vadd.s32 %v2966_v57, %v2962_v18  ;;  %v3139_v53 = vshrl.u32 %v6282_v51, %v3130_v13 }
 0x186   :  { %v2725_v2 = vsel %vm2642_vm12, %v2724_v9, %v2723_v58  ;;  %v3142_v27 = vshrl.u32 %v6270_v36, %v3130_v13  ;;  %v3144_v10 = vshll.u32 %v6270_v36, %v3129_v38  ;;  %v3131_v41 = vshrl.u32 %v6271_v42, %v3130_v13 }
 0x187   :  { %v2728_v40 = vsel %vm5748_vm13, %v5495_v32, %v2725_v2  ;;  %v3134_v63 = vor.u32 %v3133_v37, %v3132_v52  ;;  %v3137_v47 = vor.u32 %v3136_v29, %v3135_v54  ;;  %v2968_v55 = vadd.s32 536870912, %v2967_v17 }
 0x188   :  { %4109 = vcosq.f32 %v2728_v40  ;;  %v3140_v14 = vor.u32 %v3139_v53, %v3138_v26  ;;  %v3143_v15 = vor.u32 %v3142_v27, %v3141_v62  ;;  %v3145_v56 = vshrl.u32 %v6283_v49, %v3130_v13 }
 0x189   :  { %4111 = vsinq.f32 %v2728_v40  ;;  %vm3147_vm12 = vcmp.lt.s32.totalorder %v3128_v43, 1  ;;  %v2969_v25 = vshrl.u32 %v2968_v55, 30  ;;  %vm3148_vm15 = vcmp.lt.s32.totalorder %v3128_v43, 2 }
 0x18a   :  { %vm3149_vm1 = vcmp.lt.s32.totalorder %v3128_v43, 3  ;;  %vm3150_vm2 = vcmp.lt.s32.totalorder %v3128_v43, 4  ;;  %vm2735_vm13 = vcmp.eq.s32.totalorder %v5859_v34, 0  ;;  %v2880_v3 = vrot.slane %v2534_v24, %v4353_v35 }
 0x18b   :  { %v3146_v8 = vor.u32 %v3145_v56, %v3144_v10  ;;  %v3155_v60 = vsel %vm3147_vm12, %v3134_v63, %v3137_v47  ;;  %v3156_v11 = vsel %vm3150_vm2, %v3143_v15, 920167782  ;;  %vm2734_vm3 = vcmp.lt.s32.totalorder %v5859_v34, 2 }
 0x18c   :  { %v5891_v30 = vmul.f32 %v2885_v59, %v2876_v1  ;;  %v2970_v7 = vshll.u32 %v2969_v25, 30  ;;  %v3152_v38 = vsel %vm3150_vm2, %v3140_v14, 2102212464  ;;  %v3157_v58 = vsel %vm3149_vm1, %v3140_v14, %v3156_v11 }
 0x18d   :  { %vm2732_vm4 = vweird.f32 %v5495_v32  ;;  %v2889_v18 = vmul.f32 %v2880_v3, %v2876_v1  ;;  %v3158_v45 = vsel %vm3148_vm15, %v3155_v60, %v3157_v58  ;;  %v3159_v13 = vsel %vm3147_vm12, %v3137_v47, %v3140_v14 }
 0x18e   :  { %v3160_v24 = vsel %vm3150_vm2, %v3146_v8, 1326507024  ;;  %vm2909_vm5 = vcmp.lt.s32.totalorder %v5610_v48, 0  ;;  %v5898_v52 = vsub.s32 %v2967_v17, %v2970_v7  ;;  %v3151_v54 = vsel %vm3147_vm12, %v3131_v41, %v3134_v63 }
 0x18f   :  { %v3161_v9 = vsel %vm3149_vm1, %v3143_v15, %v3160_v24  ;;  %v3385_v26 = vand.u32 2139095040, %v5769_v28  ;;  %v3153_v62 = vsel %vm3149_vm1, %v3137_v47, %v3152_v38  ;;  %vm2738_vm8 = vcmp.eq.s32.totalorder %v5859_v34, 2 }
 0x190   :  { %v3162_v57 = vsel %vm3148_vm15, %v3159_v13, %v3161_v9  ;;  %v5906_v1 = vmul.u32.u64.low %v5784_v61, %v3158_v45  ;;  %v5907_v37 = vmul.u32.u64.high %v5784_v61, %v3158_v45, %v5906_v1  ;;  %vm2838_vm7 = vcmp.lt.s32.totalorder %v5861_v6, 2 }
 0x191   :  { %vm2839_vm10 = vcmp.eq.s32.totalorder %v5861_v6, 0  ;;  %v2973_v29 = vsub.s32 0, %v5898_v52  ;;  %v2881_v2 = vmul.f32 %v2880_v3, %v5730_v21  ;;  %v2888_v17 = vmul.f32 %v2885_v59, %v5730_v21 }
 0x192   :  { %v5917_v53 = vmul.u32.u64.low %v5784_v61, %v3162_v57  ;;  %v5918_v27 = vmul.u32.u64.high %v5784_v61, %v3162_v57, %v5917_v53  ;;  %v4110_v40 = vpop.eup %4109  ;;  %vm2842_vm9 = vcmp.eq.s32.totalorder %v5861_v6, 2  ;;  %v6298_v63 = vand.u32 2147483647, %v5610_v48 }
 0x193   :  { %v3954_v10 = vmin.u32 %v2973_v29, %v5898_v52  ;;  %v3154_v55 = vsel %vm3148_vm15, %v3151_v54, %v3153_v62  ;;  %v3386_v14 = vshrl.u32 %v3385_v26, 23  ;;  %v4112_v15 = vpop.eup %4111  ;;  %v2739_v21 = vxor.u32 2147483648, %v4110_v40 }
 0x194   :  { %vm5923_vm11 = vcmp.le.f32.partialorder %v6298_v63, 0.7853982  ;;  %v2887_v59 = vsub.f32 %v2881_v2, %v5891_v30  ;;  %v2890_v41 = vadd.f32 %v2889_v18, %v2888_v17  ;;  %v2993_v56 = vsub.s32 4, %v2969_v25 }
 0x195   :  { %v2736_v3 = vxor.u32 2147483648, %v4112_v15  ;;  %v2975_v8 = vclz %v3954_v10  ;;  %v3173_v60 = vadd.s32 1, %v5907_v37  ;;  %v3382_v11 = vand.u32 2147483647, %v5769_v28 }
 0x196   :  { %v2740_v7 = vsel %vm2738_vm8, %v2739_v21, %v4112_v15  ;;  %v2844_v43 = vsel %vm2842_vm9, %v2739_v21, %v4112_v15  ;;  %v2963_v38 = vadd.s32 %v5843_v23, %v5856_v39  ;;  %v3170_v58 = vmul.u32 %v5784_v61, %v3154_v55 }
 0x197   :  { %v2737_v30 = vsel %vm2735_vm13, %v4110_v40, %v2736_v3  ;;  %v2841_v18 = vsel %vm2839_vm10, %v4110_v40, %v2736_v3  ;;  %v3955_v45 = vadd.s32 4294967294, %v2975_v8  ;;  %v3969_v13 = vadd.s32 4294967169, %v3386_v14  ;;  %v3380_v8 = vld [vmem:[%s6241_s1 + $0x8] sm:$0x1] }
 0x198   :  { %v2741_v24 = vsel %vm2734_vm3, %v2737_v30, %v2740_v7  ;;  %v2845_v54 = vsel %vm2838_vm7, %v2841_v18, %v2844_v43  ;;  %v2994_v9 = vsel %vm2909_vm5, %v2993_v56, %v2969_v25  ;;  %vm3172_vm6 = vc.u32 %v5918_v27, %v5906_v1 }
 0x199   :  { %v2742_v61 = vsel %vm2732_vm4, nan, %v2741_v24  ;;  %v2846_v23 = vsel %vm2732_vm4, nan, %v2845_v54  ;;  %vm3956_vm14 = vcmp.lt.s32.totalorder %v3955_v45, 0  ;;  %v3174_v39 = vsel %vm3172_vm6, %v3173_v60, %v5907_v37 }
 0x19a   :  { %v2894_v34 = vrot.slane %v2742_v61, %v4353_v35  ;;  %v2899_v6 = vrot.slane %v2846_v23, %v4353_v35  ;;  %v2978_v26 = vsel %vm3956_vm14, 0, %v3955_v45  ;;  %v3175_v62 = vadd.s32 %v3174_v39, %v3170_v58 }
 0x19b   :  { %v2979_v57 = vsub.s32 32, %v2978_v26  ;;  %v2980_v25 = vshll.u32 %v5898_v52, %v2978_v26  ;;  %v2983_v29 = vsub.s32 4294967266, %v2978_v26  ;;  %v3392_v2 = vadd.s32 1, %v3969_v13 }
 0x19c   :  { %v2895_v17 = vmul.f32 %v2894_v34, %v2887_v59  ;;  %v2900_v53 = vmul.f32 %v2899_v6, %v2890_v41  ;;  %v2996_v32 = vsel %vm5923_vm11, 0, %v2994_v9  ;;  %v3176_v40 = vadd.s32 536870912, %v3175_v62 }
 0x19d   :  { %v2981_v63 = vshrl.u32 %v2963_v38, %v2979_v57  ;;  %v2984_v10 = vadd.s32 127, %v2983_v29  ;;  %v3389_v37 = vand.u32 8388607, %v3382_v11  ;;  %vm3393_vm12 = vcmp.gt.s32.totalorder %v3392_v2, 0 }
 0x19e   :  { %v2901_v55 = vadd.f32 %v2900_v53, %v2895_v17  ;;  %v3177_v14 = vshrl.u32 %v3176_v40, 30  ;;  %v3325_v15 = vrot.slane %v5600_v44, %v4353_v35  ;;  %v3394_v52 = vsel %vm3393_vm12, %v3392_v2, 0 }
 0x19f   :  { %v2982_v21 = vor.u32 %v2981_v63, %v2980_v25  ;;  %v2985_v56 = vshll.u32 %v2984_v10, 23  ;;  %v3396_v59 = vand.u32 31, %v3394_v52  ;;  %v3103_v41 = vadd.s32 3, %v2996_v32 }
 0x1a0   :  { %2902 = vst.msk [vmem:[%s6242_s5] sm:$0xf] %vm24_vm0, %v2901_v55  ;;  %v3178_v3 = vshll.u32 %v3177_v14, 30  ;;  %vm3117_vm15 = vcmp.lt.s32.totalorder %v5700_v50, 0  ;;  %v3390_v44 = vor.u32 8388608, %v3389_v37  ;;  %v3201_v38 = vsub.s32 4, %v3177_v14 }
 0x1a1   :  { %v2986_v60 = vor.u32 4788187, %v2985_v56  ;;  %v2989_v7 = vcvt.s32.f32 %v2982_v21  ;;  %v3326_v58 = vmul.f32 %v3325_v15, %v4663_v0  ;;  %v3397_v30 = vsub.s32 32, %v3396_v59 }
 0x1a2   :  { %v5973_v43 = vsub.s32 %v3175_v62, %v3178_v3  ;;  %v6301_v45 = vand.u32 2147483647, %v5700_v50  ;;  %v5982_v24 = vmul.f32 1.5707964, %v3380_v8  ;;  %v5984_v54 = vand.u32 3, %v2996_v32 }
 0x1a3   :  { %v2987_v18 = vand.u32 2147483647, %v2986_v60  ;;  %v5986_v9 = vand.u32 3, %v3103_v41  ;;  %v3327_v23 = vadd.f32 %v3326_v58, %v4699_v19  ;;  %v3171_v34 = vadd.s32 %v5906_v1, %v5918_v27 }
 0x1a4   :  { %vm5978_vm1 = vcmp.le.f32.partialorder %v6301_v45, 0.7853982  ;;  %v3181_v61 = vsub.s32 0, %v5973_v43  ;;  %v5992_v6 = vshll.u32 %v3390_v44, 8  ;;  %v3590_v26 = vand.u32 2147483647, %v5982_v24 }
 0x1a5   :  { %v2990_v39 = vmul.f32 %v2989_v7, %v2987_v18  ;;  %v3202_v57 = vsel %vm3117_vm15, %v3201_v38, %v3177_v14  ;;  %v3399_v25 = vshll.u32 %v6271_v42, %v3396_v59  ;;  %v3400_v29 = vshrl.u32 %v6280_v16, %v3397_v30 }
 0x1a6   :  { %v3962_v62 = vmin.u32 %v3181_v61, %v5973_v43  ;;  %v6005_v1 = vshrl.u32 %v3394_v52, 5  ;;  %v3402_v27 = vshll.u32 %v6280_v16, %v3396_v59  ;;  %v3593_v53 = vand.u32 2139095040, %v5982_v24 }
 0x1a7   :  { %v6003_v2 = vld [vmem:[%s6242_s5] sm:$0xf]  ;;  %v2991_v17 = vxor.u32 2147483648, %v2990_v39  ;;  %v3403_v63 = vshrl.u32 %v6281_v5, %v3397_v30  ;;  %v3405_v10 = vshll.u32 %v6281_v5, %v3396_v59  ;;  %v6017_v55 = vsel %vm5978_vm1, 0, %v3202_v57 }
 0x1a8   :  { %v3183_v32 = vclz %v3962_v62  ;;  %v3331_v40 = vrot.slane %v6003_v2, %v4353_v35  ;;  %v3406_v14 = vshrl.u32 %v6282_v51, %v3397_v30  ;;  %v3408_v15 = vshll.u32 %v6282_v51, %v3396_v59 }
 0x1a9   :  { %v2992_v37 = vsel %vm2909_vm5, %v2991_v17, %v2990_v39  ;;  %v3398_v56 = vshrl.u32 %v6271_v42, %v3397_v30  ;;  %v3401_v41 = vor.u32 %v3400_v29, %v3399_v25  ;;  %v3337_v8 = vrot.slane %v6003_v2, %v4360_v20 }
 0x1aa   :  { %v2995_v52 = vsel %vm5923_vm11, %v5610_v48, %v2992_v37  ;;  %v3963_v21 = vadd.s32 4294967294, %v3183_v32  ;;  %v3332_v3 = vmul.f32 %v3331_v40, %v4665_v12  ;;  %v3409_v60 = vshrl.u32 %v6270_v36, %v3397_v30 }
 0x1ab   :  { %4113 = vcosq.f32 %v2995_v52  ;;  %v3404_v7 = vor.u32 %v3403_v63, %v3402_v27  ;;  %v3411_v44 = vshll.u32 %v6270_v36, %v3396_v59  ;;  %vm3005_vm13 = vcmp.eq.s32.totalorder %v5984_v54, 2 }
 0x1ac   :  { %4115 = vsinq.f32 %v2995_v52  ;;  %vm3964_vm2 = vcmp.lt.s32.totalorder %v3963_v21, 0  ;;  %vm3109_vm3 = vcmp.eq.s32.totalorder %v5986_v9, 2  ;;  %v3407_v38 = vor.u32 %v3406_v14, %v3405_v10 }
 0x1ad   :  { %v3186_v47 = vsel %vm3964_vm2, 0, %v3963_v21  ;;  %v3410_v58 = vor.u32 %v3409_v60, %v3408_v15  ;;  %v3412_v18 = vshrl.u32 %v6283_v49, %v3397_v30  ;;  %vm3002_vm4 = vcmp.eq.s32.totalorder %v5984_v54, 0 }
 0x1ae   :  { %vm3106_vm5 = vcmp.eq.s32.totalorder %v5986_v9, 0  ;;  %v3187_v45 = vsub.s32 32, %v3186_v47  ;;  %v3188_v61 = vshll.u32 %v5973_v43, %v3186_v47  ;;  %v3191_v39 = vsub.s32 4294967266, %v3186_v47 }
 0x1af   :  { %v3343_v59 = vrot.slane %v6003_v2, %v4362_v31  ;;  %vm3001_vm8 = vcmp.lt.s32.totalorder %v5984_v54, 2  ;;  %vm3105_vm7 = vcmp.lt.s32.totalorder %v5986_v9, 2  ;;  %v3333_v62 = vadd.f32 %v3332_v3, %v3327_v23 }
 0x1b0   :  { %v3338_v57 = vmul.f32 %v3337_v8, %v4707_v4  ;;  %v3413_v25 = vor.u32 %v3412_v18, %v3411_v44  ;;  %vm3414_vm10 = vcmp.lt.s32.totalorder %v6005_v1, 1  ;;  %v3189_v30 = vshrl.u32 %v3171_v34, %v3187_v45 }
 0x1b1   :  { %v3192_v29 = vadd.s32 127, %v3191_v39  ;;  %vm3416_vm9 = vcmp.lt.s32.totalorder %v6005_v1, 3  ;;  %vm3417_vm11 = vcmp.lt.s32.totalorder %v6005_v1, 4  ;;  %vm2999_vm6 = vweird.f32 %v5610_v48 }
 0x1b2   :  { %vm3415_vm14 = vcmp.lt.s32.totalorder %v6005_v1, 2  ;;  %v3419_v43 = vsel %vm3417_vm11, %v3407_v38, 2102212464  ;;  %v3422_v17 = vsel %vm3414_vm10, %v3401_v41, %v3404_v7  ;;  %v3423_v23 = vsel %vm3417_vm11, %v3410_v58, 920167782 }
 0x1b3   :  { %v3190_v27 = vor.u32 %v3189_v30, %v3188_v61  ;;  %v3193_v32 = vshll.u32 %v3192_v29, 23  ;;  %v3418_v40 = vsel %vm3414_vm10, %v3398_v56, %v3401_v41  ;;  %v3420_v34 = vsel %vm3416_vm9, %v3404_v7, %v3419_v43 }
 0x1b4   :  { %v3339_v63 = vadd.f32 %v3338_v57, %v3333_v62  ;;  %v3424_v10 = vsel %vm3416_vm9, %v3407_v38, %v3423_v23  ;;  %v3426_v37 = vsel %vm3414_vm10, %v3404_v7, %v3407_v38  ;;  %v3427_v14 = vsel %vm3417_vm11, %v3413_v25, 1326507024 }
 0x1b5   :  { %v3194_v15 = vor.u32 4788187, %v3193_v32  ;;  %v3197_v52 = vcvt.s32.f32 %v3190_v27  ;;  %v3425_v21 = vsel %vm3415_vm14, %v3422_v17, %v3424_v10  ;;  %v3428_v3 = vsel %vm3416_vm9, %v3410_v58, %v3427_v14  ;;  %v4114_v56 = vpop.eup %4113 }
 0x1b6   :  { %v3421_v41 = vsel %vm3415_vm14, %v3418_v40, %v3420_v34  ;;  %v3429_v8 = vsel %vm3415_vm14, %v3426_v37, %v3428_v3  ;;  %v6065_v60 = vmul.u32.u64.low %v5992_v6, %v3425_v21  ;;  %v6066_v44 = vmul.u32.u64.high %v5992_v6, %v3425_v21, %v6065_v60  ;;  %v4116_v7 = vpop.eup %4115 }
 0x1b7   :  { %v3006_v47 = vxor.u32 2147483648, %v4114_v56  ;;  %v3195_v38 = vand.u32 2147483647, %v3194_v15  ;;  %v6069_v18 = vmul.u32.u64.low %v5992_v6, %v3429_v8  ;;  %v6070_v45 = vmul.u32.u64.high %v5992_v6, %v3429_v8, %v6069_v18 }
 0x1b8   :  { %v3003_v61 = vxor.u32 2147483648, %v4116_v7  ;;  %v3344_v58 = vmul.f32 %v3343_v59, %v4735_v33  ;;  %v3349_v39 = vrot.slane %v6003_v2, %v4369_v22  ;;  %v3594_v1 = vshrl.u32 %v3593_v53, 23 }
 0x1b9   :  { %v3007_v62 = vsel %vm3005_vm13, %v3006_v47, %v4116_v7  ;;  %v3111_v57 = vsel %vm3109_vm3, %v3006_v47, %v4116_v7  ;;  %v3198_v25 = vmul.f32 %v3197_v52, %v3195_v38  ;;  %v3437_v30 = vmul.u32 %v5992_v6, %v3421_v41 }
 0x1ba   :  { %v3004_v29 = vsel %vm3002_vm4, %v4114_v56, %v3003_v61  ;;  %v3108_v59 = vsel %vm3106_vm5, %v4114_v56, %v3003_v61  ;;  %v3440_v43 = vadd.s32 1, %v6066_v44  ;;  %v3977_v17 = vadd.s32 4294967169, %v3594_v1 }
 0x1bb   :  { %v3008_v53 = vsel %vm3001_vm8, %v3004_v29, %v3007_v62  ;;  %v3112_v23 = vsel %vm3105_vm7, %v3108_v59, %v3111_v57  ;;  %v3199_v27 = vxor.u32 2147483648, %v3198_v25  ;;  %v3345_v32 = vadd.f32 %v3344_v58, %v3339_v63 }
 0x1bc   :  { %v3311_v40 = vadd.s32 3, %v6017_v55  ;;  %vm3439_vm12 = vc.u32 %v6070_v45, %v6065_v60  ;;  %v3009_v6 = vsel %vm2999_vm6, nan, %v3008_v53  ;;  %v3350_v10 = vmul.f32 %v3349_v39, %v4743_v46 }
 0x1bd   :  { %v3200_v34 = vsel %vm3117_vm15, %v3199_v27, %v3198_v25  ;;  %v3441_v54 = vsel %vm3439_vm12, %v3440_v43, %v6066_v44  ;;  %v3113_v9 = vsel %vm2999_vm6, nan, %v3112_v23  ;;  %v3600_v14 = vadd.s32 1, %v3977_v17 }
 0x1be   :  { %v3203_v63 = vsel %vm5978_vm1, %v5700_v50, %v3200_v34  ;;  %v3442_v37 = vadd.s32 %v3441_v54, %v3437_v30  ;;  %v3351_v15 = vadd.f32 %v3350_v10, %v3345_v32  ;;  %v3597_v52 = vand.u32 8388607, %v3590_v26 }
 0x1bf   :  { %4117 = vcosq.f32 %v3203_v63  ;;  %vm3601_vm15 = vcmp.gt.s32.totalorder %v3600_v14, 0  ;;  %v3208_v3 = vand.u32 3, %v6017_v55  ;;  %v3355_v56 = vrot.slane %v3009_v6, %v4353_v35 }
 0x1c0   :  { %4119 = vsinq.f32 %v3203_v63  ;;  %v3443_v21 = vadd.s32 536870912, %v3442_v37  ;;  %v3360_v48 = vrot.slane %v3113_v9, %v4353_v35  ;;  %v3602_v41 = vsel %vm3601_vm15, %v3600_v14, 0 }
 0x1c1   :  { %v3312_v8 = vand.u32 3, %v3311_v40  ;;  %v3604_v44 = vand.u32 31, %v3602_v41  ;;  %v3598_v47 = vor.u32 8388608, %v3597_v52  ;;  %vm3207_vm1 = vweird.f32 %v5700_v50 }
 0x1c2   :  { %v6109_v13 = vshrl.u32 %v3443_v21, 30  ;;  %v3361_v7 = vmul.f32 %v3360_v48, %v3351_v15  ;;  %v3364_v38 = vmul.f32 %v3355_v56, %v3351_v15  ;;  %vm3209_vm2 = vcmp.lt.s32.totalorder %v3208_v3, 2 }
 0x1c3   :  { %v3605_v61 = vsub.s32 32, %v3604_v44  ;;  %vm3210_vm13 = vcmp.eq.s32.totalorder %v3208_v3, 0  ;;  %vm3213_vm3 = vcmp.eq.s32.totalorder %v3208_v3, 2  ;;  %v3356_v55 = vmul.f32 %v3355_v56, %v6003_v2 }
 0x1c4   :  { %v3445_v18 = vshll.u32 %v6109_v13, 30  ;;  %vm3313_vm4 = vcmp.lt.s32.totalorder %v3312_v8, 2  ;;  %vm3314_vm5 = vcmp.eq.s32.totalorder %v3312_v8, 0  ;;  %v3363_v58 = vmul.f32 %v3360_v48, %v6003_v2 }
 0x1c5   :  { %vm3317_vm8 = vcmp.eq.s32.totalorder %v3312_v8, 2  ;;  %v3362_v1 = vsub.f32 %v3356_v55, %v3361_v7  ;;  %v6118_v62 = vadd.s32 %v6065_v60, %v6070_v45  ;;  %v6120_v57 = vshll.u32 %v3598_v47, 8 }
 0x1c6   :  { %v6115_v39 = vsub.s32 %v3442_v37, %v3445_v18  ;;  %v3365_v25 = vadd.f32 %v3364_v38, %v3363_v58  ;;  %v3607_v29 = vshll.u32 %v6271_v42, %v3604_v44  ;;  %v3608_v59 = vshrl.u32 %v6280_v16, %v3605_v61 }
 0x1c7   :  { %v3603_v17 = vshrl.u32 %v3602_v41, 5  ;;  %v3610_v2 = vshll.u32 %v6280_v16, %v3604_v44  ;;  %v3611_v53 = vshrl.u32 %v6281_v5, %v3605_v61  ;;  %v3613_v23 = vshll.u32 %v6281_v5, %v3604_v44 }
 0x1c8   :  { %v3448_v30 = vsub.s32 0, %v6115_v39  ;;  %v3614_v32 = vshrl.u32 %v6282_v51, %v3605_v61  ;;  %v3616_v40 = vshll.u32 %v6282_v51, %v3604_v44  ;;  %v3606_v34 = vshrl.u32 %v6271_v42, %v3605_v61 }
 0x1c9   :  { %v4118_v43 = vpop.eup %4117  ;;  %v3617_v10 = vshrl.u32 %v6270_v36, %v3605_v61  ;;  %v3619_v54 = vshll.u32 %v6270_v36, %v3604_v44  ;;  %v3609_v63 = vor.u32 %v3608_v59, %v3607_v29  ;;  %v3612_v15 = vor.u32 %v3611_v53, %v3610_v2 }
 0x1ca   :  { %v4120_v27 = vpop.eup %4119  ;;  %v3214_v60 = vxor.u32 2147483648, %v4118_v43  ;;  %v3970_v45 = vmin.u32 %v3448_v30, %v6115_v39  ;;  %v3620_v51 = vshrl.u32 %v6283_v49, %v3605_v61  ;;  %v3615_v56 = vor.u32 %v3614_v32, %v3613_v23 }
 0x1cb   :  { %v3211_v6 = vxor.u32 2147483648, %v4120_v27  ;;  %v3618_v41 = vor.u32 %v3617_v10, %v3616_v40  ;;  %vm3622_vm7 = vcmp.lt.s32.totalorder %v3603_v17, 1  ;;  %vm3625_vm9 = vcmp.lt.s32.totalorder %v3603_v17, 4 }
 0x1cc   :  { %v3215_v16 = vsel %vm3213_vm3, %v3214_v60, %v4120_v27  ;;  %v3319_v9 = vsel %vm3317_vm8, %v3214_v60, %v4120_v27  ;;  %v3450_v5 = vclz %v3970_v45  ;;  %v3621_v3 = vor.u32 %v3620_v51, %v3619_v54 }
 0x1cd   :  { %v3212_v37 = vsel %vm3210_vm13, %v4118_v43, %v3211_v6  ;;  %v3316_v14 = vsel %vm3314_vm5, %v4118_v43, %v3211_v6  ;;  %vm3624_vm11 = vcmp.lt.s32.totalorder %v3603_v17, 3  ;;  %v3627_v8 = vsel %vm3625_vm9, %v3615_v56, 2102212464 }
 0x1ce   :  { %v3216_v52 = vsel %vm3209_vm2, %v3212_v37, %v3215_v16  ;;  %v3320_v42 = vsel %vm3313_vm4, %v3316_v14, %v3319_v9  ;;  %v3971_v21 = vadd.s32 4294967294, %v3450_v5  ;;  %vm3623_vm6 = vcmp.lt.s32.totalorder %v3603_v17, 2 }
 0x1cf   :  { %v3217_v36 = vsel %vm3207_vm1, nan, %v3216_v52  ;;  %v3321_v48 = vsel %vm3207_vm1, nan, %v3320_v42  ;;  %v3630_v18 = vsel %vm3622_vm7, %v3609_v63, %v3612_v15  ;;  %v3626_v55 = vsel %vm3622_vm7, %v3606_v34, %v3609_v63 }
 0x1d0   :  { %v3369_v44 = vrot.slane %v3217_v36, %v4353_v35  ;;  %v3374_v7 = vrot.slane %v3321_v48, %v4353_v35  ;;  %vm3972_vm10 = vcmp.lt.s32.totalorder %v3971_v21, 0  ;;  %v3631_v58 = vsel %vm3625_vm9, %v3618_v41, 920167782 }
 0x1d1   :  { %v3453_v49 = vsel %vm3972_vm10, 0, %v3971_v21  ;;  %v3628_v29 = vsel %vm3624_vm11, %v3612_v15, %v3627_v8  ;;  %v3632_v59 = vsel %vm3624_vm11, %v3615_v56, %v3631_v58  ;;  %v3634_v43 = vsel %vm3622_vm7, %v3612_v15, %v3615_v56 }
 0x1d2   :  { %v3370_v47 = vmul.f32 %v3369_v44, %v3362_v1  ;;  %v3375_v38 = vmul.f32 %v3374_v7, %v3365_v25  ;;  %v3454_v50 = vsub.s32 32, %v3453_v49  ;;  %v3458_v61 = vsub.s32 4294967266, %v3453_v49 }
 0x1d3   :  { %v3633_v1 = vsel %vm3623_vm6, %v3630_v18, %v3632_v59  ;;  %v3635_v25 = vsel %vm3625_vm9, %v3621_v3, 1326507024  ;;  %v3455_v53 = vshll.u32 %v6115_v39, %v3453_v49  ;;  %v3629_v40 = vsel %vm3623_vm6, %v3626_v55, %v3628_v29 }
 0x1d4   :  { %v3376_v30 = vadd.f32 %v3375_v38, %v3370_v47  ;;  %v3459_v2 = vadd.s32 127, %v3458_v61  ;;  %v3636_v23 = vsel %vm3624_vm11, %v3618_v41, %v3635_v25  ;;  %v3456_v45 = vshrl.u32 %v6118_v62, %v3454_v50 }
 0x1d5   :  { %v6163_v27 = vmul.u32.u64.low %v6120_v57, %v3633_v1  ;;  %v6164_v60 = vmul.u32.u64.high %v6120_v57, %v3633_v1, %v6163_v27  ;;  %v3637_v6 = vsel %vm3623_vm6, %v3634_v43, %v3636_v23  ;;  %v3645_v54 = vmul.u32 %v6120_v57, %v3629_v40 }
 0x1d6   :  { %3377 = vst.msk [vmem:[%s6242_s5] sm:$0xf] %vm24_vm0, %v3376_v30  ;;  %v3460_v32 = vshll.u32 %v3459_v2, 23  ;;  %v6170_v34 = vmul.u32.u64.low %v6120_v57, %v3637_v6  ;;  %v6171_v10 = vmul.u32.u64.high %v6120_v57, %v3637_v6, %v6170_v34  ;;  %v3457_v16 = vor.u32 %v3456_v45, %v3455_v53  ;;  %v6306_v30 = vld [vmem:[#allocation2_spill] sm:$0xff] }
 0x1d7   :  { %v3648_v39 = vadd.s32 1, %v6164_v60  ;;  %vm3384_vm12 = vcmp.lt.s32.totalorder %v5769_v28, 0  ;;  %vm6180_vm15 = vcmp.le.f32.partialorder %v3382_v11, 0.7853982  ;;  %v3468_v41 = vsub.s32 4, %v6109_v13 }
 0x1d8   :  { %v3461_v9 = vor.u32 4788187, %v3460_v32  ;;  %vm3647_vm14 = vc.u32 %v6171_v10, %v6163_v27  ;;  %v3464_v37 = vcvt.s32.f32 %v3457_v16  ;;  %v3646_v49 = vadd.s32 %v6163_v27, %v6171_v10 }
 0x1d9   :  { %v3649_v5 = vsel %vm3647_vm14, %v3648_v39, %v6164_v60  ;;  %v3469_v8 = vsel %vm3384_vm12, %v3468_v41, %v6109_v13  ;;  %v3800_v29 = vrot.slane %v6306_v30, %v4353_v35  ;;  %vm3592_vm2 = vcmp.lt.s32.totalorder %v5982_v24, 0 }
 0x1da   :  { %v3650_v62 = vadd.s32 %v3649_v5, %v3645_v54  ;;  %v3462_v63 = vand.u32 2147483647, %v3461_v9  ;;  %v3471_v61 = vsel %vm6180_vm15, 0, %v3469_v8  ;;  %vm3591_vm3 = vcmp.le.f32.partialorder %v3590_v26, 0.7853982 }
 0x1db   :  { %v3578_v43 = vadd.s32 3, %v3471_v61  ;;  %v3475_v25 = vand.u32 3, %v3471_v61  ;;  %v3801_v53 = vmul.f32 %v3800_v29, %v4663_v0  ;;  %vm3474_vm9 = vweird.f32 %v5769_v28 }
 0x1dc   :  { %v3651_v14 = vadd.s32 536870912, %v3650_v62  ;;  %v3465_v15 = vmul.f32 %v3464_v37, %v3462_v63 }
 0x1dd   :  { %v6193_v38 = vld [vmem:[%s6242_s5] sm:$0xf]  ;;  %v3579_v40 = vand.u32 3, %v3578_v43  ;;  %v3802_v6 = vadd.f32 %v3801_v53, %v4699_v19  ;;  %vm3477_vm13 = vcmp.eq.s32.totalorder %v3475_v25, 0  ;;  %vm3480_vm4 = vcmp.eq.s32.totalorder %v3475_v25, 2 }
 0x1de   :  { %v3652_v17 = vshrl.u32 %v3651_v14, 30  ;;  %v3466_v42 = vxor.u32 2147483648, %v3465_v15  ;;  %v3806_v13 = vrot.slane %v6193_v38, %v4353_v35  ;;  %v3812_v34 = vrot.slane %v6193_v38, %v4360_v20 }
 0x1df   :  { %vm3581_vm5 = vcmp.eq.s32.totalorder %v3579_v40, 0  ;;  %vm3584_vm8 = vcmp.eq.s32.totalorder %v3579_v40, 2  ;;  %v3818_v20 = vrot.slane %v6193_v38, %v4362_v31  ;;  %vm3476_vm7 = vcmp.lt.s32.totalorder %v3475_v25, 2 }
 0x1e0   :  { %v3653_v51 = vshll.u32 %v3652_v17, 30  ;;  %v3467_v36 = vsel %vm3384_vm12, %v3466_v42, %v3465_v15  ;;  %v3807_v23 = vmul.f32 %v3806_v13, %v4665_v12  ;;  %v3676_v45 = vsub.s32 4, %v3652_v17 }
 0x1e1   :  { %v3470_v44 = vsel %vm6180_vm15, %v5769_v28, %v3467_v36  ;;  %v3813_v19 = vmul.f32 %v3812_v34, %v4707_v4  ;;  %vm3580_vm10 = vcmp.lt.s32.totalorder %v3579_v40, 2  ;;  %v3819_v4 = vmul.f32 %v3818_v20, %v4735_v33 }
 0x1e2   :  { %v3654_v52 = vsub.s32 %v3650_v62, %v3653_v51  ;;  %4121 = vcosq.f32 %v3470_v44  ;;  %v3808_v0 = vadd.f32 %v3807_v23, %v3802_v6  ;;  %v3677_v16 = vsel %vm3592_vm2, %v3676_v45, %v3652_v17 }
 0x1e3   :  { %4123 = vsinq.f32 %v3470_v44  ;;  %v3679_v62 = vsel %vm3591_vm3, 0, %v3677_v16  ;;  %v3824_v31 = vrot.slane %v6193_v38, %v4369_v22  ;;  %vm3682_vm15 = vweird.f32 %v5982_v24 }
 0x1e4   :  { %v3656_v57 = vsub.s32 0, %v3654_v52  ;;  %v3814_v63 = vadd.f32 %v3813_v19, %v3808_v0  ;;  %v3786_v15 = vadd.s32 3, %v3679_v62  ;;  %v3683_v36 = vand.u32 3, %v3679_v62 }
 0x1e6   :  { %v3978_v21 = vmin.u32 %v3656_v57, %v3654_v52  ;;  %v3820_v42 = vadd.f32 %v3819_v4, %v3814_v63  ;;  %v3825_v57 = vmul.f32 %v3824_v31, %v4743_v46  ;;  %vm3685_vm11 = vcmp.eq.s32.totalorder %v3683_v36, 0 }
 0x1e7   :  { %vm3688_vm6 = vcmp.eq.s32.totalorder %v3683_v36, 2 }
 0x1e8   :  { %v3658_v48 = vclz %v3978_v21  ;;  %v3826_v41 = vadd.f32 %v3825_v57, %v3820_v42 }
 0x1ea   :  { %v3979_v7 = vadd.s32 4294967294, %v3658_v48  ;;  %v3787_v48 = vand.u32 3, %v3786_v15 }
 0x1ec   :  { %vm3980_vm1 = vcmp.lt.s32.totalorder %v3979_v7, 0  ;;  %v4122_v27 = vpop.eup %4121  ;;  %vm3792_vm14 = vcmp.eq.s32.totalorder %v3787_v48, 2  ;;  %vm3789_vm12 = vcmp.eq.s32.totalorder %v3787_v48, 0 }
 0x1ed   :  { %v3661_v3 = vsel %vm3980_vm1, 0, %v3979_v7  ;;  %v4124_v32 = vpop.eup %4123  ;;  %v3481_v54 = vxor.u32 2147483648, %v4122_v27  ;;  %vm3684_vm1 = vcmp.lt.s32.totalorder %v3683_v36, 2 }
 0x1ee   :  { %v3662_v11 = vsub.s32 32, %v3661_v3  ;;  %v3663_v47 = vshll.u32 %v3654_v52, %v3661_v3  ;;  %v3666_v18 = vsub.s32 4294967266, %v3661_v3  ;;  %v3478_v12 = vxor.u32 2147483648, %v4124_v32 }
 0x1ef   :  { %v3482_v26 = vsel %vm3480_vm4, %v3481_v54, %v4124_v32  ;;  %v3586_v17 = vsel %vm3584_vm8, %v3481_v54, %v4124_v32 }
 0x1f0   :  { %v3664_v50 = vshrl.u32 %v3646_v49, %v3662_v11  ;;  %v3667_v55 = vadd.s32 127, %v3666_v18  ;;  %v3479_v37 = vsel %vm3477_vm13, %v4122_v27, %v3478_v12  ;;  %v3583_v14 = vsel %vm3581_vm5, %v4122_v27, %v3478_v12 }
 0x1f1   :  { %v3483_v51 = vsel %vm3476_vm7, %v3479_v37, %v3482_v26  ;;  %v3587_v52 = vsel %vm3580_vm10, %v3583_v14, %v3586_v17 }
 0x1f2   :  { %v3665_v58 = vor.u32 %v3664_v50, %v3663_v47  ;;  %v3668_v59 = vshll.u32 %v3667_v55, 23  ;;  %v3484_v21 = vsel %vm3474_vm9, nan, %v3483_v51  ;;  %v3588_v56 = vsel %vm3474_vm9, nan, %v3587_v52 }
 0x1f3   :  { %v3830_v33 = vrot.slane %v3484_v21, %v4353_v35  ;;  %v3835_v44 = vrot.slane %v3588_v56, %v4353_v35 }
 0x1f4   :  { %v3669_v2 = vor.u32 4788187, %v3668_v59  ;;  %v3672_v1 = vcvt.s32.f32 %v3665_v58 }
 0x1f5   :  { %v3836_v49 = vmul.f32 %v3835_v44, %v3826_v41  ;;  %v3839_v3 = vmul.f32 %v3830_v33, %v3826_v41  ;;  %v3831_v47 = vmul.f32 %v3830_v33, %v6193_v38  ;;  %v3838_v18 = vmul.f32 %v3835_v44, %v6193_v38 }
 0x1f6   :  { %v3670_v60 = vand.u32 2147483647, %v3669_v2 }
 0x1f7   :  { %v3837_v30 = vsub.f32 %v3831_v47, %v3836_v49  ;;  %v3840_v29 = vadd.f32 %v3839_v3, %v3838_v18 }
 0x1f8   :  { %v3673_v10 = vmul.f32 %v3672_v1, %v3670_v60 }
 0x1fa   :  { %v3674_v39 = vxor.u32 2147483648, %v3673_v10 }
 0x1fc   :  { %v3675_v9 = vsel %vm3592_vm2, %v3674_v39, %v3673_v10  ;;  %vm3788_vm2 = vcmp.lt.s32.totalorder %v3787_v48, 2 }
 0x1fd   :  { %v3678_v5 = vsel %vm3591_vm3, %v5982_v24, %v3675_v9 }
 0x1fe   :  { %4125 = vcosq.f32 %v3678_v5 }
 0x1ff   :  { %4127 = vsinq.f32 %v3678_v5 }
 0x208   :  { %v4126_v22 = vpop.eup %4125 }
 0x209   :  { %v4128_v28 = vpop.eup %4127  ;;  %v3689_v7 = vxor.u32 2147483648, %v4126_v22 }
 0x20a   :  { %v3686_v46 = vxor.u32 2147483648, %v4128_v28 }
 0x20b   :  { %v3690_v8 = vsel %vm3688_vm6, %v3689_v7, %v4128_v28  ;;  %v3794_v11 = vsel %vm3792_vm14, %v3689_v7, %v4128_v28 }
 0x20c   :  { %v3687_v50 = vsel %vm3685_vm11, %v4126_v22, %v3686_v46  ;;  %v3791_v61 = vsel %vm3789_vm12, %v4126_v22, %v3686_v46 }
 0x20d   :  { %v3691_v55 = vsel %vm3684_vm1, %v3687_v50, %v3690_v8  ;;  %v3795_v58 = vsel %vm3788_vm2, %v3791_v61, %v3794_v11 }
 0x20e   :  { %v3692_v13 = vsel %vm3682_vm15, nan, %v3691_v55  ;;  %v3796_v59 = vsel %vm3682_vm15, nan, %v3795_v58 }
 0x20f   :  { %v3844_v24 = vrot.slane %v3692_v13, %v4353_v35  ;;  %v3849_v43 = vrot.slane %v3796_v59, %v4353_v35 }
 0x211   :  { %v3845_v2 = vmul.f32 %v3844_v24, %v3837_v30  ;;  %v3850_v1 = vmul.f32 %v3849_v43, %v3840_v29 }
 0x213   :  { %v3851_v25 = vadd.f32 %v3850_v1, %v3845_v2 }
 0x215   :  { %3852 = vst.msk [vmem:[%s6242_s5] sm:$0xf] %vm24_vm0, %v3851_v25 }

</bundles_post_ra>
